<compile_context>
chip_gen: v7x
topology: tpu7x:2x2x1
jax: 0.10.0
libtpu: 0.0.40
codegen_flags: <defaults>
</compile_context>

<pallas_src>
import math

import jax
import jax.numpy as jnp
from jax.experimental import pallas as pl
from jax.experimental.pallas import tpu as pltpu

# ----- model / problem dimensions (module defaults, small batch/seq) -----
B, S = 2, 8          # batch, sequence length
DIN = 16             # input_dim
D = 64               # model_dim   (module default)
NH = 2               # num_heads   (module default)
DH = D // NH         # head dim
L = 3                # num_layers  (module default)
H = 256              # hidden_dim of NdFeedForward (module default)
T = 24               # target_len  (module default)
LN_EPS = 1e-5


def _layer_norm(x, w, b):
    mean = jnp.mean(x, axis=-1, keepdims=True)
    var = jnp.mean((x - mean) ** 2, axis=-1, keepdims=True)
    return (x - mean) * jax.lax.rsqrt(var + LN_EPS) * w + b


def transformer_kernel(src_ref, emb_w_ref, emb_b_ref,
                       wq_ref, wk_ref, wv_ref, qb_ref, kb_ref, vb_ref,
                       wo_ref, ob_ref,
                       ln1w_ref, ln1b_ref, ln2w_ref, ln2b_ref,
                       fw1_ref, fb1_ref, fw2_ref, fb2_ref,
                       fcw_ref, fcb_ref, out_ref):
    BS = B * S

    # ---- embedding: Linear(input_dim -> model_dim) ----
    x = (jnp.dot(src_ref[...], emb_w_ref[...],
                 preferred_element_type=jnp.float32) + emb_b_ref[...])   # (BS, D)

    # ---- L encoder layers, fully unrolled; all weights resident in VMEM ----
    for l in range(L):
        # --- multi-head self-attention (no mask; dropout = identity) ---
        attn = None
        for h in range(NH):
            # 1/sqrt(DH) is pre-folded into wq/qb on the host.
            qh = (jnp.dot(x, wq_ref[l, h], preferred_element_type=jnp.float32)
                  + qb_ref[l, h]).reshape(B, S, DH)
            kh = (jnp.dot(x, wk_ref[l, h], preferred_element_type=jnp.float32)
                  + kb_ref[l, h]).reshape(B, S, DH)
            vh = (jnp.dot(x, wv_ref[l, h], preferred_element_type=jnp.float32)
                  + vb_ref[l, h]).reshape(B, S, DH)

            s = jnp.einsum('bqd,bkd->bqk', qh, kh,
                           preferred_element_type=jnp.float32)
            s = s - jnp.max(s, axis=-1, keepdims=True)
            p = jnp.exp(s)
            p = p * pl.reciprocal(jnp.sum(p, axis=-1, keepdims=True), approx=True)

            oh = jnp.einsum('bqk,bkd->bqd', p, vh,
                            preferred_element_type=jnp.float32).reshape(BS, DH)
            # concat-heads @ Wo  ==  sum_h oh @ Wo[h*DH:(h+1)*DH, :]
            proj = jnp.dot(oh, wo_ref[l, h], preferred_element_type=jnp.float32)
            attn = proj if attn is None else attn + proj
        attn = attn + ob_ref[l]                       # out_proj bias, added once

        # residual + LayerNorm1 (post-norm)
        x = _layer_norm(x + attn, ln1w_ref[l], ln1b_ref[l])

        # --- NdFeedForward: NdLinear->ReLU->NdLinear (scalar affines pre-folded) ---
        h1 = jnp.maximum(jnp.dot(x, fw1_ref[l], preferred_element_type=jnp.float32)
                         + fb1_ref[l], 0.0)
        h2 = (jnp.dot(h1, fw2_ref[l], preferred_element_type=jnp.float32)
              + fb2_ref[l])

        # residual + LayerNorm2
        x = _layer_norm(x + h2, ln2w_ref[l], ln2b_ref[l])

    # ---- fc_out on the last time step only ----
    last = x.reshape(B, S, D)[:, S - 1, :]            # (B, D)
    out_ref[...] = (jnp.dot(last, fcw_ref[...],
                            preferred_element_type=jnp.float32) + fcb_ref[...])


def ts_transformer_forward(src, p):
    # ---- host-side weight preprocessing (pure layout / algebraic folding) ----
    inw = p['inw']                       # (L, D, 3D), columns = [q | k | v]
    inb = p['inb'][:, 0, :]              # (L, 3D)
    scale = 1.0 / math.sqrt(DH)

    def split_heads_w(w):                # (L, D, D) -> (L, NH, D, DH)
        return w.reshape(L, D, NH, DH).transpose(0, 2, 1, 3)

    def split_heads_b(b):                # (L, D) -> (L, NH, 1, DH)
        return b.reshape(L, NH, 1, DH)

    # fold the softmax 1/sqrt(DH) scale into the query projection
    wq = split_heads_w(inw[:, :, 0 * D:1 * D]) * scale
    wk = split_heads_w(inw[:, :, 1 * D:2 * D])
    wv = split_heads_w(inw[:, :, 2 * D:3 * D])
    qb = split_heads_b(inb[:, 0 * D:1 * D]) * scale
    kb = split_heads_b(inb[:, 1 * D:2 * D])
    vb = split_heads_b(inb[:, 2 * D:3 * D])

    wo = p['outw'].reshape(L, NH, DH, D)  # rows are head-major in out_proj weight
    ob = p['outb']                        # (L, 1, D)

    # Fold NdLinear's Linear(1,1) scalar affines into the FFN weights/biases:
    #   (x@W1 + b1)*s1w + s1b == x@(W1*s1w) + (b1*s1w + s1b)   (same for layer2)
    s1w = p['fsc'][:, 0][:, None, None]
    s1b = p['fsc'][:, 1][:, None, None]
    s2w = p['fsc'][:, 2][:, None, None]
    s2b = p['fsc'][:, 3][:, None, None]
    fw1 = p['fw1'] * s1w
    fb1 = p['fb1'] * s1w + s1b
    fw2 = p['fw2'] * s2w
    fb2 = p['fb2'] * s2w + s2b

    src2 = src.reshape(B * S, DIN)

    args = (src2, p['emb_w'], p['emb_b'],
            wq, wk, wv, qb, kb, vb, wo, ob,
            p['ln1w'], p['ln1b'], p['ln2w'], p['ln2b'],
            fw1, fb1, fw2, fb2,
            p['fcw'], p['fcb'])

    vmem_spec = lambda: pl.BlockSpec(memory_space=pltpu.MemorySpace.VMEM)
    return pl.pallas_call(
        transformer_kernel,
        out_shape=jax.ShapeDtypeStruct((B, T), jnp.float32),
        in_specs=[vmem_spec() for _ in args],
        out_specs=vmem_spec(),
    )(*args)


# ---------------- pure-JAX reference (for a sanity check) ----------------
def _ln_ref(x, w, b):
    mean = jnp.mean(x, axis=-1, keepdims=True)
    var = jnp.mean((x - mean) ** 2, axis=-1, keepdims=True)
    return (x - mean) * jax.lax.rsqrt(var + LN_EPS) * w + b


def ref_forward(src, p):
    x = src @ p['emb_w'] + p['emb_b']
    for l in range(L):
        qkv = x @ p['inw'][l] + p['inb'][l]
        q, k, v = qkv[..., :D], qkv[..., D:2 * D], qkv[..., 2 * D:]
        heads = []
        for h in range(NH):
            qh = q[..., h * DH:(h + 1) * DH]
            kh = k[..., h * DH:(h + 1) * DH]
            vh = v[..., h * DH:(h + 1) * DH]
            s = jnp.einsum('bqd,bkd->bqk', qh, kh) / math.sqrt(DH)
            a = jax.nn.softmax(s, axis=-1)
            heads.append(jnp.einsum('bqk,bkd->bqd', a, vh))
        o = jnp.concatenate(heads, axis=-1) @ p['outw'][l] + p['outb'][l]
        x = _ln_ref(x + o, p['ln1w'][l], p['ln1b'][l])
        h1 = x @ p['fw1'][l] + p['fb1'][l]
        h1 = jnp.maximum(h1 * p['fsc'][l, 0] + p['fsc'][l, 1], 0.0)
        h2 = (h1 @ p['fw2'][l] + p['fb2'][l]) * p['fsc'][l, 2] + p['fsc'][l, 3]
        x = _ln_ref(x + h2, p['ln2w'][l], p['ln2b'][l])
    return x[:, -1, :] @ p['fcw'] + p['fcb']


if __name__ == "__main__":
    key = jax.random.PRNGKey(0)
    ks = jax.random.split(key, 21)

    def rnd(k, shape, scale=0.1):
        return jax.random.normal(k, shape, jnp.float32) * scale

    params = {
        'emb_w': rnd(ks[0], (DIN, D)),
        'emb_b': rnd(ks[1], (1, D), 0.01),
        'inw':   rnd(ks[2], (L, D, 3 * D)),
        'inb':   rnd(ks[3], (L, 1, 3 * D), 0.01),
        'outw':  rnd(ks[4], (L, D, D)),
        'outb':  rnd(ks[5], (L, 1, D), 0.01),
        'ln1w':  jnp.ones((L, 1, D), jnp.float32) + rnd(ks[6], (L, 1, D), 0.01),
        'ln1b':  rnd(ks[7], (L, 1, D), 0.01),
        'ln2w':  jnp.ones((L, 1, D), jnp.float32) + rnd(ks[8], (L, 1, D), 0.01),
        'ln2b':  rnd(ks[9], (L, 1, D), 0.01),
        'fw1':   rnd(ks[10], (L, D, H)),
        'fb1':   rnd(ks[11], (L, 1, H), 0.01),
        'fw2':   rnd(ks[12], (L, H, D)),
        'fb2':   rnd(ks[13], (L, 1, D), 0.01),
        # [s1_w, s1_b, s2_w, s2_b] per layer -- the Linear(1,1) pieces of NdLinear
        'fsc':   jnp.concatenate([
            1.0 + rnd(ks[14], (L, 1), 0.05),
            rnd(ks[15], (L, 1), 0.01),
            1.0 + rnd(ks[16], (L, 1), 0.05),
            rnd(ks[17], (L, 1), 0.01),
        ], axis=1),
        'fcw':   rnd(ks[18], (D, T)),
        'fcb':   rnd(ks[19], (1, T), 0.01),
    }
    src = jax.random.normal(ks[20], (B, S, DIN), jnp.float32)

    out = ts_transformer_forward(src, params)
    out = jax.block_until_ready(out)

    ref = jax.block_until_ready(ref_forward(src, params))
    assert out.shape == (B, T), out.shape
    assert bool(jnp.all(jnp.isfinite(out)))
    assert bool(jnp.allclose(out, ref, rtol=5e-2, atol=5e-2)), (
        "mismatch vs reference: max abs diff "
        f"{float(jnp.max(jnp.abs(out - ref)))}")

    print("KERNEL_OK")
</pallas_src>

<mosaic_0001>
module attributes {stable_mosaic.version = 11 : i64} {
  func.func @transformer_kernel(%arg0: memref<16x16xf32, #tpu.memory_space<vmem>>, %arg1: memref<16x64xf32, #tpu.memory_space<vmem>>, %arg2: memref<1x64xf32, #tpu.memory_space<vmem>>, %arg3: memref<3x2x64x32xf32, #tpu.memory_space<vmem>>, %arg4: memref<3x2x64x32xf32, #tpu.memory_space<vmem>>, %arg5: memref<3x2x64x32xf32, #tpu.memory_space<vmem>>, %arg6: memref<3x2x1x32xf32, #tpu.memory_space<vmem>>, %arg7: memref<3x2x1x32xf32, #tpu.memory_space<vmem>>, %arg8: memref<3x2x1x32xf32, #tpu.memory_space<vmem>>, %arg9: memref<3x2x32x64xf32, #tpu.memory_space<vmem>>, %arg10: memref<3x1x64xf32, #tpu.memory_space<vmem>>, %arg11: memref<3x1x64xf32, #tpu.memory_space<vmem>>, %arg12: memref<3x1x64xf32, #tpu.memory_space<vmem>>, %arg13: memref<3x1x64xf32, #tpu.memory_space<vmem>>, %arg14: memref<3x1x64xf32, #tpu.memory_space<vmem>>, %arg15: memref<3x64x256xf32, #tpu.memory_space<vmem>>, %arg16: memref<3x1x256xf32, #tpu.memory_space<vmem>>, %arg17: memref<3x256x64xf32, #tpu.memory_space<vmem>>, %arg18: memref<3x1x64xf32, #tpu.memory_space<vmem>>, %arg19: memref<64x24xf32, #tpu.memory_space<vmem>>, %arg20: memref<1x24xf32, #tpu.memory_space<vmem>>, %arg21: memref<2x24xf32, #tpu.memory_space<vmem>>) attributes {dimension_semantics = [], scalar_prefetch = 0 : i64, scratch_operands = 0 : i64, tpu.core_type = #tpu.core_type<tc>} {
    %c0 = arith.constant 0 : index
    %c0_0 = arith.constant 0 : index
    %0 = vector.load %arg0[%c0, %c0_0] : memref<16x16xf32, #tpu.memory_space<vmem>>, vector<16x16xf32>
    %c0_1 = arith.constant 0 : index
    %c0_2 = arith.constant 0 : index
    %1 = vector.load %arg1[%c0_1, %c0_2] : memref<16x64xf32, #tpu.memory_space<vmem>>, vector<16x64xf32>
    %cst = arith.constant dense<0.000000e+00> : vector<16x64xf32>
    %2 = tpu.matmul %0, %1, %cst {dimension_numbers = #tpu.dot_dimension_numbers<[1], [0], [0], [1], [0, 0, 1, 1], [], []>} : vector<16x16xf32>, vector<16x64xf32>, vector<16x64xf32> -> vector<16x64xf32>
    %c0_3 = arith.constant 0 : index
    %c0_4 = arith.constant 0 : index
    %3 = vector.load %arg2[%c0_3, %c0_4] : memref<1x64xf32, #tpu.memory_space<vmem>>, vector<1x64xf32>
    %4 = vector.broadcast %3 : vector<1x64xf32> to vector<16x64xf32>
    %5 = arith.addf %2, %4 : vector<16x64xf32>
    %c0_5 = arith.constant 0 : index
    %c0_6 = arith.constant 0 : index
    %c0_7 = arith.constant 0 : index
    %c0_8 = arith.constant 0 : index
    %6 = vector.load %arg3[%c0_5, %c0_6, %c0_7, %c0_8] : memref<3x2x64x32xf32, #tpu.memory_space<vmem>>, vector<1x1x64x32xf32>
    %7 = vector.shape_cast %6 : vector<1x1x64x32xf32> to vector<64x32xf32>
    %cst_9 = arith.constant dense<0.000000e+00> : vector<16x32xf32>
    %8 = tpu.matmul %5, %7, %cst_9 {dimension_numbers = #tpu.dot_dimension_numbers<[1], [0], [0], [1], [0, 0, 1, 1], [], []>} : vector<16x64xf32>, vector<64x32xf32>, vector<16x32xf32> -> vector<16x32xf32>
    %c0_10 = arith.constant 0 : index
    %c0_11 = arith.constant 0 : index
    %c0_12 = arith.constant 0 : index
    %c0_13 = arith.constant 0 : index
    %9 = vector.load %arg6[%c0_10, %c0_11, %c0_12, %c0_13] : memref<3x2x1x32xf32, #tpu.memory_space<vmem>>, vector<1x1x1x32xf32>
    %10 = vector.shape_cast %9 : vector<1x1x1x32xf32> to vector<1x32xf32>
    %11 = vector.broadcast %10 : vector<1x32xf32> to vector<16x32xf32>
    %12 = arith.addf %8, %11 : vector<16x32xf32>
    %13 = vector.shape_cast %12 : vector<16x32xf32> to vector<2x8x32xf32>
    %c0_14 = arith.constant 0 : index
    %c0_15 = arith.constant 0 : index
    %c0_16 = arith.constant 0 : index
    %c0_17 = arith.constant 0 : index
    %14 = vector.load %arg4[%c0_14, %c0_15, %c0_16, %c0_17] : memref<3x2x64x32xf32, #tpu.memory_space<vmem>>, vector<1x1x64x32xf32>
    %15 = vector.shape_cast %14 : vector<1x1x64x32xf32> to vector<64x32xf32>
    %cst_18 = arith.constant dense<0.000000e+00> : vector<16x32xf32>
    %16 = tpu.matmul %5, %15, %cst_18 {dimension_numbers = #tpu.dot_dimension_numbers<[1], [0], [0], [1], [0, 0, 1, 1], [], []>} : vector<16x64xf32>, vector<64x32xf32>, vector<16x32xf32> -> vector<16x32xf32>
    %c0_19 = arith.constant 0 : index
    %c0_20 = arith.constant 0 : index
    %c0_21 = arith.constant 0 : index
    %c0_22 = arith.constant 0 : index
    %17 = vector.load %arg7[%c0_19, %c0_20, %c0_21, %c0_22] : memref<3x2x1x32xf32, #tpu.memory_space<vmem>>, vector<1x1x1x32xf32>
    %18 = vector.shape_cast %17 : vector<1x1x1x32xf32> to vector<1x32xf32>
    %19 = vector.broadcast %18 : vector<1x32xf32> to vector<16x32xf32>
    %20 = arith.addf %16, %19 : vector<16x32xf32>
    %21 = vector.shape_cast %20 : vector<16x32xf32> to vector<2x8x32xf32>
    %c0_23 = arith.constant 0 : index
    %c0_24 = arith.constant 0 : index
    %c0_25 = arith.constant 0 : index
    %c0_26 = arith.constant 0 : index
    %22 = vector.load %arg5[%c0_23, %c0_24, %c0_25, %c0_26] : memref<3x2x64x32xf32, #tpu.memory_space<vmem>>, vector<1x1x64x32xf32>
    %23 = vector.shape_cast %22 : vector<1x1x64x32xf32> to vector<64x32xf32>
    %cst_27 = arith.constant dense<0.000000e+00> : vector<16x32xf32>
    %24 = tpu.matmul %5, %23, %cst_27 {dimension_numbers = #tpu.dot_dimension_numbers<[1], [0], [0], [1], [0, 0, 1, 1], [], []>} : vector<16x64xf32>, vector<64x32xf32>, vector<16x32xf32> -> vector<16x32xf32>
    %c0_28 = arith.constant 0 : index
    %c0_29 = arith.constant 0 : index
    %c0_30 = arith.constant 0 : index
    %c0_31 = arith.constant 0 : index
    %25 = vector.load %arg8[%c0_28, %c0_29, %c0_30, %c0_31] : memref<3x2x1x32xf32, #tpu.memory_space<vmem>>, vector<1x1x1x32xf32>
    %26 = vector.shape_cast %25 : vector<1x1x1x32xf32> to vector<1x32xf32>
    %27 = vector.broadcast %26 : vector<1x32xf32> to vector<16x32xf32>
    %28 = arith.addf %24, %27 : vector<16x32xf32>
    %29 = vector.shape_cast %28 : vector<16x32xf32> to vector<2x8x32xf32>
    "tpu.trace_start"() <{level = 10 : i32, message = "bqd,bkd->bqk"}> : () -> ()
    %cst_32 = arith.constant dense<0.000000e+00> : vector<2x8x8xf32>
    %30 = tpu.matmul %13, %21, %cst_32 {dimension_numbers = #tpu.dot_dimension_numbers<[2], [2], [1], [1], [0, 0, 0, 1, 1, 1], [0], [0]>} : vector<2x8x32xf32>, vector<2x8x32xf32>, vector<2x8x8xf32> -> vector<2x8x8xf32>
    "tpu.trace_stop"() : () -> ()
    %cst_33 = arith.constant dense<0xFF800000> : vector<2x8xf32>
    %31 = vector.multi_reduction <maximumf>, %30, %cst_33 [2] : vector<2x8x8xf32> to vector<2x8xf32>
    %32 = vector.shape_cast %31 : vector<2x8xf32> to vector<2x8x1xf32>
    %33 = vector.broadcast %32 : vector<2x8x1xf32> to vector<2x8x8xf32>
    %34 = arith.subf %30, %33 : vector<2x8x8xf32>
    %35 = math.exp %34 : vector<2x8x8xf32>
    %cst_34 = arith.constant dense<0.000000e+00> : vector<2x8xf32>
    %36 = vector.multi_reduction <add>, %35, %cst_34 [2] : vector<2x8x8xf32> to vector<2x8xf32>
    %37 = vector.shape_cast %36 : vector<2x8xf32> to vector<2x8x1xf32>
    %38 = tpu.reciprocal %37 {approx = true} : vector<2x8x1xf32> -> vector<2x8x1xf32>
    %39 = vector.broadcast %38 : vector<2x8x1xf32> to vector<2x8x8xf32>
    %40 = arith.mulf %35, %39 : vector<2x8x8xf32>
    "tpu.trace_start"() <{level = 10 : i32, message = "bqk,bkd->bqd"}> : () -> ()
    %cst_35 = arith.constant dense<0.000000e+00> : vector<2x8x32xf32>
    %41 = tpu.matmul %40, %29, %cst_35 {dimension_numbers = #tpu.dot_dimension_numbers<[2], [1], [1], [2], [0, 0, 0, 1, 1, 2], [0], [0]>} : vector<2x8x8xf32>, vector<2x8x32xf32>, vector<2x8x32xf32> -> vector<2x8x32xf32>
    "tpu.trace_stop"() : () -> ()
    %42 = vector.shape_cast %41 : vector<2x8x32xf32> to vector<16x32xf32>
    %c0_36 = arith.constant 0 : index
    %c0_37 = arith.constant 0 : index
    %c0_38 = arith.constant 0 : index
    %c0_39 = arith.constant 0 : index
    %43 = vector.load %arg9[%c0_36, %c0_37, %c0_38, %c0_39] : memref<3x2x32x64xf32, #tpu.memory_space<vmem>>, vector<1x1x32x64xf32>
    %44 = vector.shape_cast %43 : vector<1x1x32x64xf32> to vector<32x64xf32>
    %cst_40 = arith.constant dense<0.000000e+00> : vector<16x64xf32>
    %45 = tpu.matmul %42, %44, %cst_40 {dimension_numbers = #tpu.dot_dimension_numbers<[1], [0], [0], [1], [0, 0, 1, 1], [], []>} : vector<16x32xf32>, vector<32x64xf32>, vector<16x64xf32> -> vector<16x64xf32>
    %c0_41 = arith.constant 0 : index
    %c1 = arith.constant 1 : index
    %c0_42 = arith.constant 0 : index
    %c0_43 = arith.constant 0 : index
    %46 = vector.load %arg3[%c0_41, %c1, %c0_42, %c0_43] : memref<3x2x64x32xf32, #tpu.memory_space<vmem>>, vector<1x1x64x32xf32>
    %47 = vector.shape_cast %46 : vector<1x1x64x32xf32> to vector<64x32xf32>
    %cst_44 = arith.constant dense<0.000000e+00> : vector<16x32xf32>
    %48 = tpu.matmul %5, %47, %cst_44 {dimension_numbers = #tpu.dot_dimension_numbers<[1], [0], [0], [1], [0, 0, 1, 1], [], []>} : vector<16x64xf32>, vector<64x32xf32>, vector<16x32xf32> -> vector<16x32xf32>
    %c0_45 = arith.constant 0 : index
    %c1_46 = arith.constant 1 : index
    %c0_47 = arith.constant 0 : index
    %c0_48 = arith.constant 0 : index
    %49 = vector.load %arg6[%c0_45, %c1_46, %c0_47, %c0_48] : memref<3x2x1x32xf32, #tpu.memory_space<vmem>>, vector<1x1x1x32xf32>
    %50 = vector.shape_cast %49 : vector<1x1x1x32xf32> to vector<1x32xf32>
    %51 = vector.broadcast %50 : vector<1x32xf32> to vector<16x32xf32>
    %52 = arith.addf %48, %51 : vector<16x32xf32>
    %53 = vector.shape_cast %52 : vector<16x32xf32> to vector<2x8x32xf32>
    %c0_49 = arith.constant 0 : index
    %c1_50 = arith.constant 1 : index
    %c0_51 = arith.constant 0 : index
    %c0_52 = arith.constant 0 : index
    %54 = vector.load %arg4[%c0_49, %c1_50, %c0_51, %c0_52] : memref<3x2x64x32xf32, #tpu.memory_space<vmem>>, vector<1x1x64x32xf32>
    %55 = vector.shape_cast %54 : vector<1x1x64x32xf32> to vector<64x32xf32>
    %cst_53 = arith.constant dense<0.000000e+00> : vector<16x32xf32>
    %56 = tpu.matmul %5, %55, %cst_53 {dimension_numbers = #tpu.dot_dimension_numbers<[1], [0], [0], [1], [0, 0, 1, 1], [], []>} : vector<16x64xf32>, vector<64x32xf32>, vector<16x32xf32> -> vector<16x32xf32>
    %c0_54 = arith.constant 0 : index
    %c1_55 = arith.constant 1 : index
    %c0_56 = arith.constant 0 : index
    %c0_57 = arith.constant 0 : index
    %57 = vector.load %arg7[%c0_54, %c1_55, %c0_56, %c0_57] : memref<3x2x1x32xf32, #tpu.memory_space<vmem>>, vector<1x1x1x32xf32>
    %58 = vector.shape_cast %57 : vector<1x1x1x32xf32> to vector<1x32xf32>
    %59 = vector.broadcast %58 : vector<1x32xf32> to vector<16x32xf32>
    %60 = arith.addf %56, %59 : vector<16x32xf32>
    %61 = vector.shape_cast %60 : vector<16x32xf32> to vector<2x8x32xf32>
    %c0_58 = arith.constant 0 : index
    %c1_59 = arith.constant 1 : index
    %c0_60 = arith.constant 0 : index
    %c0_61 = arith.constant 0 : index
    %62 = vector.load %arg5[%c0_58, %c1_59, %c0_60, %c0_61] : memref<3x2x64x32xf32, #tpu.memory_space<vmem>>, vector<1x1x64x32xf32>
    %63 = vector.shape_cast %62 : vector<1x1x64x32xf32> to vector<64x32xf32>
    %cst_62 = arith.constant dense<0.000000e+00> : vector<16x32xf32>
    %64 = tpu.matmul %5, %63, %cst_62 {dimension_numbers = #tpu.dot_dimension_numbers<[1], [0], [0], [1], [0, 0, 1, 1], [], []>} : vector<16x64xf32>, vector<64x32xf32>, vector<16x32xf32> -> vector<16x32xf32>
    %c0_63 = arith.constant 0 : index
    %c1_64 = arith.constant 1 : index
    %c0_65 = arith.constant 0 : index
    %c0_66 = arith.constant 0 : index
    %65 = vector.load %arg8[%c0_63, %c1_64, %c0_65, %c0_66] : memref<3x2x1x32xf32, #tpu.memory_space<vmem>>, vector<1x1x1x32xf32>
    %66 = vector.shape_cast %65 : vector<1x1x1x32xf32> to vector<1x32xf32>
    %67 = vector.broadcast %66 : vector<1x32xf32> to vector<16x32xf32>
    %68 = arith.addf %64, %67 : vector<16x32xf32>
    %69 = vector.shape_cast %68 : vector<16x32xf32> to vector<2x8x32xf32>
    "tpu.trace_start"() <{level = 10 : i32, message = "bqd,bkd->bqk"}> : () -> ()
    %cst_67 = arith.constant dense<0.000000e+00> : vector<2x8x8xf32>
    %70 = tpu.matmul %53, %61, %cst_67 {dimension_numbers = #tpu.dot_dimension_numbers<[2], [2], [1], [1], [0, 0, 0, 1, 1, 1], [0], [0]>} : vector<2x8x32xf32>, vector<2x8x32xf32>, vector<2x8x8xf32> -> vector<2x8x8xf32>
    "tpu.trace_stop"() : () -> ()
    %cst_68 = arith.constant dense<0xFF800000> : vector<2x8xf32>
    %71 = vector.multi_reduction <maximumf>, %70, %cst_68 [2] : vector<2x8x8xf32> to vector<2x8xf32>
    %72 = vector.shape_cast %71 : vector<2x8xf32> to vector<2x8x1xf32>
    %73 = vector.broadcast %72 : vector<2x8x1xf32> to vector<2x8x8xf32>
    %74 = arith.subf %70, %73 : vector<2x8x8xf32>
    %75 = math.exp %74 : vector<2x8x8xf32>
    %cst_69 = arith.constant dense<0.000000e+00> : vector<2x8xf32>
    %76 = vector.multi_reduction <add>, %75, %cst_69 [2] : vector<2x8x8xf32> to vector<2x8xf32>
    %77 = vector.shape_cast %76 : vector<2x8xf32> to vector<2x8x1xf32>
    %78 = tpu.reciprocal %77 {approx = true} : vector<2x8x1xf32> -> vector<2x8x1xf32>
    %79 = vector.broadcast %78 : vector<2x8x1xf32> to vector<2x8x8xf32>
    %80 = arith.mulf %75, %79 : vector<2x8x8xf32>
    "tpu.trace_start"() <{level = 10 : i32, message = "bqk,bkd->bqd"}> : () -> ()
    %cst_70 = arith.constant dense<0.000000e+00> : vector<2x8x32xf32>
    %81 = tpu.matmul %80, %69, %cst_70 {dimension_numbers = #tpu.dot_dimension_numbers<[2], [1], [1], [2], [0, 0, 0, 1, 1, 2], [0], [0]>} : vector<2x8x8xf32>, vector<2x8x32xf32>, vector<2x8x32xf32> -> vector<2x8x32xf32>
    "tpu.trace_stop"() : () -> ()
    %82 = vector.shape_cast %81 : vector<2x8x32xf32> to vector<16x32xf32>
    %c0_71 = arith.constant 0 : index
    %c1_72 = arith.constant 1 : index
    %c0_73 = arith.constant 0 : index
    %c0_74 = arith.constant 0 : index
    %83 = vector.load %arg9[%c0_71, %c1_72, %c0_73, %c0_74] : memref<3x2x32x64xf32, #tpu.memory_space<vmem>>, vector<1x1x32x64xf32>
    %84 = vector.shape_cast %83 : vector<1x1x32x64xf32> to vector<32x64xf32>
    %cst_75 = arith.constant dense<0.000000e+00> : vector<16x64xf32>
    %85 = tpu.matmul %82, %84, %cst_75 {dimension_numbers = #tpu.dot_dimension_numbers<[1], [0], [0], [1], [0, 0, 1, 1], [], []>} : vector<16x32xf32>, vector<32x64xf32>, vector<16x64xf32> -> vector<16x64xf32>
    %86 = arith.addf %45, %85 : vector<16x64xf32>
    %c0_76 = arith.constant 0 : index
    %c0_77 = arith.constant 0 : index
    %c0_78 = arith.constant 0 : index
    %87 = vector.load %arg10[%c0_76, %c0_77, %c0_78] : memref<3x1x64xf32, #tpu.memory_space<vmem>>, vector<1x1x64xf32>
    %88 = vector.shape_cast %87 : vector<1x1x64xf32> to vector<1x64xf32>
    %89 = vector.broadcast %88 : vector<1x64xf32> to vector<16x64xf32>
    %90 = arith.addf %86, %89 : vector<16x64xf32>
    %91 = arith.addf %5, %90 : vector<16x64xf32>
    %c0_79 = arith.constant 0 : index
    %c0_80 = arith.constant 0 : index
    %c0_81 = arith.constant 0 : index
    %92 = vector.load %arg11[%c0_79, %c0_80, %c0_81] : memref<3x1x64xf32, #tpu.memory_space<vmem>>, vector<1x1x64xf32>
    %93 = vector.shape_cast %92 : vector<1x1x64xf32> to vector<1x64xf32>
    %c0_82 = arith.constant 0 : index
    %c0_83 = arith.constant 0 : index
    %c0_84 = arith.constant 0 : index
    %94 = vector.load %arg12[%c0_82, %c0_83, %c0_84] : memref<3x1x64xf32, #tpu.memory_space<vmem>>, vector<1x1x64xf32>
    %95 = vector.shape_cast %94 : vector<1x1x64xf32> to vector<1x64xf32>
    %cst_85 = arith.constant dense<0.000000e+00> : vector<16xf32>
    %96 = vector.multi_reduction <add>, %91, %cst_85 [1] : vector<16x64xf32> to vector<16xf32>
    %97 = vector.shape_cast %96 : vector<16xf32> to vector<16x1xf32>
    %cst_86 = arith.constant 6.400000e+01 : f32
    %98 = vector.broadcast %cst_86 : f32 to vector<16x1xf32>
    %99 = arith.divf %97, %98 : vector<16x1xf32>
    %100 = vector.broadcast %99 : vector<16x1xf32> to vector<16x64xf32>
    %101 = arith.subf %91, %100 : vector<16x64xf32>
    %102 = arith.mulf %101, %101 : vector<16x64xf32>
    %cst_87 = arith.constant dense<0.000000e+00> : vector<16xf32>
    %103 = vector.multi_reduction <add>, %102, %cst_87 [1] : vector<16x64xf32> to vector<16xf32>
    %104 = vector.shape_cast %103 : vector<16xf32> to vector<16x1xf32>
    %cst_88 = arith.constant 6.400000e+01 : f32
    %105 = vector.broadcast %cst_88 : f32 to vector<16x1xf32>
    %106 = arith.divf %104, %105 : vector<16x1xf32>
    %107 = vector.broadcast %99 : vector<16x1xf32> to vector<16x64xf32>
    %108 = arith.subf %91, %107 : vector<16x64xf32>
    %cst_89 = arith.constant 9.99999974E-6 : f32
    %109 = vector.broadcast %cst_89 : f32 to vector<16x1xf32>
    %110 = arith.addf %106, %109 : vector<16x1xf32>
    %111 = math.rsqrt %110 : vector<16x1xf32>
    %112 = vector.broadcast %111 : vector<16x1xf32> to vector<16x64xf32>
    %113 = arith.mulf %108, %112 : vector<16x64xf32>
    %114 = vector.broadcast %93 : vector<1x64xf32> to vector<16x64xf32>
    %115 = arith.mulf %113, %114 : vector<16x64xf32>
    %116 = vector.broadcast %95 : vector<1x64xf32> to vector<16x64xf32>
    %117 = arith.addf %115, %116 : vector<16x64xf32>
    %c0_90 = arith.constant 0 : index
    %c0_91 = arith.constant 0 : index
    %c0_92 = arith.constant 0 : index
    %118 = vector.load %arg15[%c0_90, %c0_91, %c0_92] : memref<3x64x256xf32, #tpu.memory_space<vmem>>, vector<1x64x256xf32>
    %119 = vector.shape_cast %118 : vector<1x64x256xf32> to vector<64x256xf32>
    %cst_93 = arith.constant dense<0.000000e+00> : vector<16x256xf32>
    %120 = tpu.matmul %117, %119, %cst_93 {dimension_numbers = #tpu.dot_dimension_numbers<[1], [0], [0], [1], [0, 0, 1, 1], [], []>} : vector<16x64xf32>, vector<64x256xf32>, vector<16x256xf32> -> vector<16x256xf32>
    %c0_94 = arith.constant 0 : index
    %c0_95 = arith.constant 0 : index
    %c0_96 = arith.constant 0 : index
    %121 = vector.load %arg16[%c0_94, %c0_95, %c0_96] : memref<3x1x256xf32, #tpu.memory_space<vmem>>, vector<1x1x256xf32>
    %122 = vector.shape_cast %121 : vector<1x1x256xf32> to vector<1x256xf32>
    %123 = vector.broadcast %122 : vector<1x256xf32> to vector<16x256xf32>
    %124 = arith.addf %120, %123 : vector<16x256xf32>
    %cst_97 = arith.constant 0.000000e+00 : f32
    %125 = vector.broadcast %cst_97 : f32 to vector<16x256xf32>
    %126 = arith.maximumf %124, %125 : vector<16x256xf32>
    %c0_98 = arith.constant 0 : index
    %c0_99 = arith.constant 0 : index
    %c0_100 = arith.constant 0 : index
    %127 = vector.load %arg17[%c0_98, %c0_99, %c0_100] : memref<3x256x64xf32, #tpu.memory_space<vmem>>, vector<1x256x64xf32>
    %128 = vector.shape_cast %127 : vector<1x256x64xf32> to vector<256x64xf32>
    %cst_101 = arith.constant dense<0.000000e+00> : vector<16x64xf32>
    %129 = tpu.matmul %126, %128, %cst_101 {dimension_numbers = #tpu.dot_dimension_numbers<[1], [0], [0], [1], [0, 0, 1, 1], [], []>} : vector<16x256xf32>, vector<256x64xf32>, vector<16x64xf32> -> vector<16x64xf32>
    %c0_102 = arith.constant 0 : index
    %c0_103 = arith.constant 0 : index
    %c0_104 = arith.constant 0 : index
    %130 = vector.load %arg18[%c0_102, %c0_103, %c0_104] : memref<3x1x64xf32, #tpu.memory_space<vmem>>, vector<1x1x64xf32>
    %131 = vector.shape_cast %130 : vector<1x1x64xf32> to vector<1x64xf32>
    %132 = vector.broadcast %131 : vector<1x64xf32> to vector<16x64xf32>
    %133 = arith.addf %129, %132 : vector<16x64xf32>
    %134 = arith.addf %117, %133 : vector<16x64xf32>
    %c0_105 = arith.constant 0 : index
    %c0_106 = arith.constant 0 : index
    %c0_107 = arith.constant 0 : index
    %135 = vector.load %arg13[%c0_105, %c0_106, %c0_107] : memref<3x1x64xf32, #tpu.memory_space<vmem>>, vector<1x1x64xf32>
    %136 = vector.shape_cast %135 : vector<1x1x64xf32> to vector<1x64xf32>
    %c0_108 = arith.constant 0 : index
    %c0_109 = arith.constant 0 : index
    %c0_110 = arith.constant 0 : index
    %137 = vector.load %arg14[%c0_108, %c0_109, %c0_110] : memref<3x1x64xf32, #tpu.memory_space<vmem>>, vector<1x1x64xf32>
    %138 = vector.shape_cast %137 : vector<1x1x64xf32> to vector<1x64xf32>
    %cst_111 = arith.constant dense<0.000000e+00> : vector<16xf32>
    %139 = vector.multi_reduction <add>, %134, %cst_111 [1] : vector<16x64xf32> to vector<16xf32>
    %140 = vector.shape_cast %139 : vector<16xf32> to vector<16x1xf32>
    %cst_112 = arith.constant 6.400000e+01 : f32
    %141 = vector.broadcast %cst_112 : f32 to vector<16x1xf32>
    %142 = arith.divf %140, %141 : vector<16x1xf32>
    %143 = vector.broadcast %142 : vector<16x1xf32> to vector<16x64xf32>
    %144 = arith.subf %134, %143 : vector<16x64xf32>
    %145 = arith.mulf %144, %144 : vector<16x64xf32>
    %cst_113 = arith.constant dense<0.000000e+00> : vector<16xf32>
    %146 = vector.multi_reduction <add>, %145, %cst_113 [1] : vector<16x64xf32> to vector<16xf32>
    %147 = vector.shape_cast %146 : vector<16xf32> to vector<16x1xf32>
    %cst_114 = arith.constant 6.400000e+01 : f32
    %148 = vector.broadcast %cst_114 : f32 to vector<16x1xf32>
    %149 = arith.divf %147, %148 : vector<16x1xf32>
    %150 = vector.broadcast %142 : vector<16x1xf32> to vector<16x64xf32>
    %151 = arith.subf %134, %150 : vector<16x64xf32>
    %cst_115 = arith.constant 9.99999974E-6 : f32
    %152 = vector.broadcast %cst_115 : f32 to vector<16x1xf32>
    %153 = arith.addf %149, %152 : vector<16x1xf32>
    %154 = math.rsqrt %153 : vector<16x1xf32>
    %155 = vector.broadcast %154 : vector<16x1xf32> to vector<16x64xf32>
    %156 = arith.mulf %151, %155 : vector<16x64xf32>
    %157 = vector.broadcast %136 : vector<1x64xf32> to vector<16x64xf32>
    %158 = arith.mulf %156, %157 : vector<16x64xf32>
    %159 = vector.broadcast %138 : vector<1x64xf32> to vector<16x64xf32>
    %160 = arith.addf %158, %159 : vector<16x64xf32>
    %c1_116 = arith.constant 1 : index
    %c0_117 = arith.constant 0 : index
    %c0_118 = arith.constant 0 : index
    %c0_119 = arith.constant 0 : index
    %161 = vector.load %arg3[%c1_116, %c0_117, %c0_118, %c0_119] : memref<3x2x64x32xf32, #tpu.memory_space<vmem>>, vector<1x1x64x32xf32>
    %162 = vector.shape_cast %161 : vector<1x1x64x32xf32> to vector<64x32xf32>
    %cst_120 = arith.constant dense<0.000000e+00> : vector<16x32xf32>
    %163 = tpu.matmul %160, %162, %cst_120 {dimension_numbers = #tpu.dot_dimension_numbers<[1], [0], [0], [1], [0, 0, 1, 1], [], []>} : vector<16x64xf32>, vector<64x32xf32>, vector<16x32xf32> -> vector<16x32xf32>
    %c1_121 = arith.constant 1 : index
    %c0_122 = arith.constant 0 : index
    %c0_123 = arith.constant 0 : index
    %c0_124 = arith.constant 0 : index
    %164 = vector.load %arg6[%c1_121, %c0_122, %c0_123, %c0_124] : memref<3x2x1x32xf32, #tpu.memory_space<vmem>>, vector<1x1x1x32xf32>
    %165 = vector.shape_cast %164 : vector<1x1x1x32xf32> to vector<1x32xf32>
    %166 = vector.broadcast %165 : vector<1x32xf32> to vector<16x32xf32>
    %167 = arith.addf %163, %166 : vector<16x32xf32>
    %168 = vector.shape_cast %167 : vector<16x32xf32> to vector<2x8x32xf32>
    %c1_125 = arith.constant 1 : index
    %c0_126 = arith.constant 0 : index
    %c0_127 = arith.constant 0 : index
    %c0_128 = arith.constant 0 : index
    %169 = vector.load %arg4[%c1_125, %c0_126, %c0_127, %c0_128] : memref<3x2x64x32xf32, #tpu.memory_space<vmem>>, vector<1x1x64x32xf32>
    %170 = vector.shape_cast %169 : vector<1x1x64x32xf32> to vector<64x32xf32>
    %cst_129 = arith.constant dense<0.000000e+00> : vector<16x32xf32>
    %171 = tpu.matmul %160, %170, %cst_129 {dimension_numbers = #tpu.dot_dimension_numbers<[1], [0], [0], [1], [0, 0, 1, 1], [], []>} : vector<16x64xf32>, vector<64x32xf32>, vector<16x32xf32> -> vector<16x32xf32>
    %c1_130 = arith.constant 1 : index
    %c0_131 = arith.constant 0 : index
    %c0_132 = arith.constant 0 : index
    %c0_133 = arith.constant 0 : index
    %172 = vector.load %arg7[%c1_130, %c0_131, %c0_132, %c0_133] : memref<3x2x1x32xf32, #tpu.memory_space<vmem>>, vector<1x1x1x32xf32>
    %173 = vector.shape_cast %172 : vector<1x1x1x32xf32> to vector<1x32xf32>
    %174 = vector.broadcast %173 : vector<1x32xf32> to vector<16x32xf32>
    %175 = arith.addf %171, %174 : vector<16x32xf32>
    %176 = vector.shape_cast %175 : vector<16x32xf32> to vector<2x8x32xf32>
    %c1_134 = arith.constant 1 : index
    %c0_135 = arith.constant 0 : index
    %c0_136 = arith.constant 0 : index
    %c0_137 = arith.constant 0 : index
    %177 = vector.load %arg5[%c1_134, %c0_135, %c0_136, %c0_137] : memref<3x2x64x32xf32, #tpu.memory_space<vmem>>, vector<1x1x64x32xf32>
    %178 = vector.shape_cast %177 : vector<1x1x64x32xf32> to vector<64x32xf32>
    %cst_138 = arith.constant dense<0.000000e+00> : vector<16x32xf32>
    %179 = tpu.matmul %160, %178, %cst_138 {dimension_numbers = #tpu.dot_dimension_numbers<[1], [0], [0], [1], [0, 0, 1, 1], [], []>} : vector<16x64xf32>, vector<64x32xf32>, vector<16x32xf32> -> vector<16x32xf32>
    %c1_139 = arith.constant 1 : index
    %c0_140 = arith.constant 0 : index
    %c0_141 = arith.constant 0 : index
    %c0_142 = arith.constant 0 : index
    %180 = vector.load %arg8[%c1_139, %c0_140, %c0_141, %c0_142] : memref<3x2x1x32xf32, #tpu.memory_space<vmem>>, vector<1x1x1x32xf32>
    %181 = vector.shape_cast %180 : vector<1x1x1x32xf32> to vector<1x32xf32>
    %182 = vector.broadcast %181 : vector<1x32xf32> to vector<16x32xf32>
    %183 = arith.addf %179, %182 : vector<16x32xf32>
    %184 = vector.shape_cast %183 : vector<16x32xf32> to vector<2x8x32xf32>
    "tpu.trace_start"() <{level = 10 : i32, message = "bqd,bkd->bqk"}> : () -> ()
    %cst_143 = arith.constant dense<0.000000e+00> : vector<2x8x8xf32>
    %185 = tpu.matmul %168, %176, %cst_143 {dimension_numbers = #tpu.dot_dimension_numbers<[2], [2], [1], [1], [0, 0, 0, 1, 1, 1], [0], [0]>} : vector<2x8x32xf32>, vector<2x8x32xf32>, vector<2x8x8xf32> -> vector<2x8x8xf32>
    "tpu.trace_stop"() : () -> ()
    %cst_144 = arith.constant dense<0xFF800000> : vector<2x8xf32>
    %186 = vector.multi_reduction <maximumf>, %185, %cst_144 [2] : vector<2x8x8xf32> to vector<2x8xf32>
    %187 = vector.shape_cast %186 : vector<2x8xf32> to vector<2x8x1xf32>
    %188 = vector.broadcast %187 : vector<2x8x1xf32> to vector<2x8x8xf32>
    %189 = arith.subf %185, %188 : vector<2x8x8xf32>
    %190 = math.exp %189 : vector<2x8x8xf32>
    %cst_145 = arith.constant dense<0.000000e+00> : vector<2x8xf32>
    %191 = vector.multi_reduction <add>, %190, %cst_145 [2] : vector<2x8x8xf32> to vector<2x8xf32>
    %192 = vector.shape_cast %191 : vector<2x8xf32> to vector<2x8x1xf32>
    %193 = tpu.reciprocal %192 {approx = true} : vector<2x8x1xf32> -> vector<2x8x1xf32>
    %194 = vector.broadcast %193 : vector<2x8x1xf32> to vector<2x8x8xf32>
    %195 = arith.mulf %190, %194 : vector<2x8x8xf32>
    "tpu.trace_start"() <{level = 10 : i32, message = "bqk,bkd->bqd"}> : () -> ()
    %cst_146 = arith.constant dense<0.000000e+00> : vector<2x8x32xf32>
    %196 = tpu.matmul %195, %184, %cst_146 {dimension_numbers = #tpu.dot_dimension_numbers<[2], [1], [1], [2], [0, 0, 0, 1, 1, 2], [0], [0]>} : vector<2x8x8xf32>, vector<2x8x32xf32>, vector<2x8x32xf32> -> vector<2x8x32xf32>
    "tpu.trace_stop"() : () -> ()
    %197 = vector.shape_cast %196 : vector<2x8x32xf32> to vector<16x32xf32>
    %c1_147 = arith.constant 1 : index
    %c0_148 = arith.constant 0 : index
    %c0_149 = arith.constant 0 : index
    %c0_150 = arith.constant 0 : index
    %198 = vector.load %arg9[%c1_147, %c0_148, %c0_149, %c0_150] : memref<3x2x32x64xf32, #tpu.memory_space<vmem>>, vector<1x1x32x64xf32>
    %199 = vector.shape_cast %198 : vector<1x1x32x64xf32> to vector<32x64xf32>
    %cst_151 = arith.constant dense<0.000000e+00> : vector<16x64xf32>
    %200 = tpu.matmul %197, %199, %cst_151 {dimension_numbers = #tpu.dot_dimension_numbers<[1], [0], [0], [1], [0, 0, 1, 1], [], []>} : vector<16x32xf32>, vector<32x64xf32>, vector<16x64xf32> -> vector<16x64xf32>
    %c1_152 = arith.constant 1 : index
    %c1_153 = arith.constant 1 : index
    %c0_154 = arith.constant 0 : index
    %c0_155 = arith.constant 0 : index
    %201 = vector.load %arg3[%c1_152, %c1_153, %c0_154, %c0_155] : memref<3x2x64x32xf32, #tpu.memory_space<vmem>>, vector<1x1x64x32xf32>
    %202 = vector.shape_cast %201 : vector<1x1x64x32xf32> to vector<64x32xf32>
    %cst_156 = arith.constant dense<0.000000e+00> : vector<16x32xf32>
    %203 = tpu.matmul %160, %202, %cst_156 {dimension_numbers = #tpu.dot_dimension_numbers<[1], [0], [0], [1], [0, 0, 1, 1], [], []>} : vector<16x64xf32>, vector<64x32xf32>, vector<16x32xf32> -> vector<16x32xf32>
    %c1_157 = arith.constant 1 : index
    %c1_158 = arith.constant 1 : index
    %c0_159 = arith.constant 0 : index
    %c0_160 = arith.constant 0 : index
    %204 = vector.load %arg6[%c1_157, %c1_158, %c0_159, %c0_160] : memref<3x2x1x32xf32, #tpu.memory_space<vmem>>, vector<1x1x1x32xf32>
    %205 = vector.shape_cast %204 : vector<1x1x1x32xf32> to vector<1x32xf32>
    %206 = vector.broadcast %205 : vector<1x32xf32> to vector<16x32xf32>
    %207 = arith.addf %203, %206 : vector<16x32xf32>
    %208 = vector.shape_cast %207 : vector<16x32xf32> to vector<2x8x32xf32>
    %c1_161 = arith.constant 1 : index
    %c1_162 = arith.constant 1 : index
    %c0_163 = arith.constant 0 : index
    %c0_164 = arith.constant 0 : index
    %209 = vector.load %arg4[%c1_161, %c1_162, %c0_163, %c0_164] : memref<3x2x64x32xf32, #tpu.memory_space<vmem>>, vector<1x1x64x32xf32>
    %210 = vector.shape_cast %209 : vector<1x1x64x32xf32> to vector<64x32xf32>
    %cst_165 = arith.constant dense<0.000000e+00> : vector<16x32xf32>
    %211 = tpu.matmul %160, %210, %cst_165 {dimension_numbers = #tpu.dot_dimension_numbers<[1], [0], [0], [1], [0, 0, 1, 1], [], []>} : vector<16x64xf32>, vector<64x32xf32>, vector<16x32xf32> -> vector<16x32xf32>
    %c1_166 = arith.constant 1 : index
    %c1_167 = arith.constant 1 : index
    %c0_168 = arith.constant 0 : index
    %c0_169 = arith.constant 0 : index
    %212 = vector.load %arg7[%c1_166, %c1_167, %c0_168, %c0_169] : memref<3x2x1x32xf32, #tpu.memory_space<vmem>>, vector<1x1x1x32xf32>
    %213 = vector.shape_cast %212 : vector<1x1x1x32xf32> to vector<1x32xf32>
    %214 = vector.broadcast %213 : vector<1x32xf32> to vector<16x32xf32>
    %215 = arith.addf %211, %214 : vector<16x32xf32>
    %216 = vector.shape_cast %215 : vector<16x32xf32> to vector<2x8x32xf32>
    %c1_170 = arith.constant 1 : index
    %c1_171 = arith.constant 1 : index
    %c0_172 = arith.constant 0 : index
    %c0_173 = arith.constant 0 : index
    %217 = vector.load %arg5[%c1_170, %c1_171, %c0_172, %c0_173] : memref<3x2x64x32xf32, #tpu.memory_space<vmem>>, vector<1x1x64x32xf32>
    %218 = vector.shape_cast %217 : vector<1x1x64x32xf32> to vector<64x32xf32>
    %cst_174 = arith.constant dense<0.000000e+00> : vector<16x32xf32>
    %219 = tpu.matmul %160, %218, %cst_174 {dimension_numbers = #tpu.dot_dimension_numbers<[1], [0], [0], [1], [0, 0, 1, 1], [], []>} : vector<16x64xf32>, vector<64x32xf32>, vector<16x32xf32> -> vector<16x32xf32>
    %c1_175 = arith.constant 1 : index
    %c1_176 = arith.constant 1 : index
    %c0_177 = arith.constant 0 : index
    %c0_178 = arith.constant 0 : index
    %220 = vector.load %arg8[%c1_175, %c1_176, %c0_177, %c0_178] : memref<3x2x1x32xf32, #tpu.memory_space<vmem>>, vector<1x1x1x32xf32>
    %221 = vector.shape_cast %220 : vector<1x1x1x32xf32> to vector<1x32xf32>
    %222 = vector.broadcast %221 : vector<1x32xf32> to vector<16x32xf32>
    %223 = arith.addf %219, %222 : vector<16x32xf32>
    %224 = vector.shape_cast %223 : vector<16x32xf32> to vector<2x8x32xf32>
    "tpu.trace_start"() <{level = 10 : i32, message = "bqd,bkd->bqk"}> : () -> ()
    %cst_179 = arith.constant dense<0.000000e+00> : vector<2x8x8xf32>
    %225 = tpu.matmul %208, %216, %cst_179 {dimension_numbers = #tpu.dot_dimension_numbers<[2], [2], [1], [1], [0, 0, 0, 1, 1, 1], [0], [0]>} : vector<2x8x32xf32>, vector<2x8x32xf32>, vector<2x8x8xf32> -> vector<2x8x8xf32>
    "tpu.trace_stop"() : () -> ()
    %cst_180 = arith.constant dense<0xFF800000> : vector<2x8xf32>
    %226 = vector.multi_reduction <maximumf>, %225, %cst_180 [2] : vector<2x8x8xf32> to vector<2x8xf32>
    %227 = vector.shape_cast %226 : vector<2x8xf32> to vector<2x8x1xf32>
    %228 = vector.broadcast %227 : vector<2x8x1xf32> to vector<2x8x8xf32>
    %229 = arith.subf %225, %228 : vector<2x8x8xf32>
    %230 = math.exp %229 : vector<2x8x8xf32>
    %cst_181 = arith.constant dense<0.000000e+00> : vector<2x8xf32>
    %231 = vector.multi_reduction <add>, %230, %cst_181 [2] : vector<2x8x8xf32> to vector<2x8xf32>
    %232 = vector.shape_cast %231 : vector<2x8xf32> to vector<2x8x1xf32>
    %233 = tpu.reciprocal %232 {approx = true} : vector<2x8x1xf32> -> vector<2x8x1xf32>
    %234 = vector.broadcast %233 : vector<2x8x1xf32> to vector<2x8x8xf32>
    %235 = arith.mulf %230, %234 : vector<2x8x8xf32>
    "tpu.trace_start"() <{level = 10 : i32, message = "bqk,bkd->bqd"}> : () -> ()
    %cst_182 = arith.constant dense<0.000000e+00> : vector<2x8x32xf32>
    %236 = tpu.matmul %235, %224, %cst_182 {dimension_numbers = #tpu.dot_dimension_numbers<[2], [1], [1], [2], [0, 0, 0, 1, 1, 2], [0], [0]>} : vector<2x8x8xf32>, vector<2x8x32xf32>, vector<2x8x32xf32> -> vector<2x8x32xf32>
    "tpu.trace_stop"() : () -> ()
    %237 = vector.shape_cast %236 : vector<2x8x32xf32> to vector<16x32xf32>
    %c1_183 = arith.constant 1 : index
    %c1_184 = arith.constant 1 : index
    %c0_185 = arith.constant 0 : index
    %c0_186 = arith.constant 0 : index
    %238 = vector.load %arg9[%c1_183, %c1_184, %c0_185, %c0_186] : memref<3x2x32x64xf32, #tpu.memory_space<vmem>>, vector<1x1x32x64xf32>
    %239 = vector.shape_cast %238 : vector<1x1x32x64xf32> to vector<32x64xf32>
    %cst_187 = arith.constant dense<0.000000e+00> : vector<16x64xf32>
    %240 = tpu.matmul %237, %239, %cst_187 {dimension_numbers = #tpu.dot_dimension_numbers<[1], [0], [0], [1], [0, 0, 1, 1], [], []>} : vector<16x32xf32>, vector<32x64xf32>, vector<16x64xf32> -> vector<16x64xf32>
    %241 = arith.addf %200, %240 : vector<16x64xf32>
    %c1_188 = arith.constant 1 : index
    %c0_189 = arith.constant 0 : index
    %c0_190 = arith.constant 0 : index
    %242 = vector.load %arg10[%c1_188, %c0_189, %c0_190] : memref<3x1x64xf32, #tpu.memory_space<vmem>>, vector<1x1x64xf32>
    %243 = vector.shape_cast %242 : vector<1x1x64xf32> to vector<1x64xf32>
    %244 = vector.broadcast %243 : vector<1x64xf32> to vector<16x64xf32>
    %245 = arith.addf %241, %244 : vector<16x64xf32>
    %246 = arith.addf %160, %245 : vector<16x64xf32>
    %c1_191 = arith.constant 1 : index
    %c0_192 = arith.constant 0 : index
    %c0_193 = arith.constant 0 : index
    %247 = vector.load %arg11[%c1_191, %c0_192, %c0_193] : memref<3x1x64xf32, #tpu.memory_space<vmem>>, vector<1x1x64xf32>
    %248 = vector.shape_cast %247 : vector<1x1x64xf32> to vector<1x64xf32>
    %c1_194 = arith.constant 1 : index
    %c0_195 = arith.constant 0 : index
    %c0_196 = arith.constant 0 : index
    %249 = vector.load %arg12[%c1_194, %c0_195, %c0_196] : memref<3x1x64xf32, #tpu.memory_space<vmem>>, vector<1x1x64xf32>
    %250 = vector.shape_cast %249 : vector<1x1x64xf32> to vector<1x64xf32>
    %cst_197 = arith.constant dense<0.000000e+00> : vector<16xf32>
    %251 = vector.multi_reduction <add>, %246, %cst_197 [1] : vector<16x64xf32> to vector<16xf32>
    %252 = vector.shape_cast %251 : vector<16xf32> to vector<16x1xf32>
    %cst_198 = arith.constant 6.400000e+01 : f32
    %253 = vector.broadcast %cst_198 : f32 to vector<16x1xf32>
    %254 = arith.divf %252, %253 : vector<16x1xf32>
    %255 = vector.broadcast %254 : vector<16x1xf32> to vector<16x64xf32>
    %256 = arith.subf %246, %255 : vector<16x64xf32>
    %257 = arith.mulf %256, %256 : vector<16x64xf32>
    %cst_199 = arith.constant dense<0.000000e+00> : vector<16xf32>
    %258 = vector.multi_reduction <add>, %257, %cst_199 [1] : vector<16x64xf32> to vector<16xf32>
    %259 = vector.shape_cast %258 : vector<16xf32> to vector<16x1xf32>
    %cst_200 = arith.constant 6.400000e+01 : f32
    %260 = vector.broadcast %cst_200 : f32 to vector<16x1xf32>
    %261 = arith.divf %259, %260 : vector<16x1xf32>
    %262 = vector.broadcast %254 : vector<16x1xf32> to vector<16x64xf32>
    %263 = arith.subf %246, %262 : vector<16x64xf32>
    %cst_201 = arith.constant 9.99999974E-6 : f32
    %264 = vector.broadcast %cst_201 : f32 to vector<16x1xf32>
    %265 = arith.addf %261, %264 : vector<16x1xf32>
    %266 = math.rsqrt %265 : vector<16x1xf32>
    %267 = vector.broadcast %266 : vector<16x1xf32> to vector<16x64xf32>
    %268 = arith.mulf %263, %267 : vector<16x64xf32>
    %269 = vector.broadcast %248 : vector<1x64xf32> to vector<16x64xf32>
    %270 = arith.mulf %268, %269 : vector<16x64xf32>
    %271 = vector.broadcast %250 : vector<1x64xf32> to vector<16x64xf32>
    %272 = arith.addf %270, %271 : vector<16x64xf32>
    %c1_202 = arith.constant 1 : index
    %c0_203 = arith.constant 0 : index
    %c0_204 = arith.constant 0 : index
    %273 = vector.load %arg15[%c1_202, %c0_203, %c0_204] : memref<3x64x256xf32, #tpu.memory_space<vmem>>, vector<1x64x256xf32>
    %274 = vector.shape_cast %273 : vector<1x64x256xf32> to vector<64x256xf32>
    %cst_205 = arith.constant dense<0.000000e+00> : vector<16x256xf32>
    %275 = tpu.matmul %272, %274, %cst_205 {dimension_numbers = #tpu.dot_dimension_numbers<[1], [0], [0], [1], [0, 0, 1, 1], [], []>} : vector<16x64xf32>, vector<64x256xf32>, vector<16x256xf32> -> vector<16x256xf32>
    %c1_206 = arith.constant 1 : index
    %c0_207 = arith.constant 0 : index
    %c0_208 = arith.constant 0 : index
    %276 = vector.load %arg16[%c1_206, %c0_207, %c0_208] : memref<3x1x256xf32, #tpu.memory_space<vmem>>, vector<1x1x256xf32>
    %277 = vector.shape_cast %276 : vector<1x1x256xf32> to vector<1x256xf32>
    %278 = vector.broadcast %277 : vector<1x256xf32> to vector<16x256xf32>
    %279 = arith.addf %275, %278 : vector<16x256xf32>
    %cst_209 = arith.constant 0.000000e+00 : f32
    %280 = vector.broadcast %cst_209 : f32 to vector<16x256xf32>
    %281 = arith.maximumf %279, %280 : vector<16x256xf32>
    %c1_210 = arith.constant 1 : index
    %c0_211 = arith.constant 0 : index
    %c0_212 = arith.constant 0 : index
    %282 = vector.load %arg17[%c1_210, %c0_211, %c0_212] : memref<3x256x64xf32, #tpu.memory_space<vmem>>, vector<1x256x64xf32>
    %283 = vector.shape_cast %282 : vector<1x256x64xf32> to vector<256x64xf32>
    %cst_213 = arith.constant dense<0.000000e+00> : vector<16x64xf32>
    %284 = tpu.matmul %281, %283, %cst_213 {dimension_numbers = #tpu.dot_dimension_numbers<[1], [0], [0], [1], [0, 0, 1, 1], [], []>} : vector<16x256xf32>, vector<256x64xf32>, vector<16x64xf32> -> vector<16x64xf32>
    %c1_214 = arith.constant 1 : index
    %c0_215 = arith.constant 0 : index
    %c0_216 = arith.constant 0 : index
    %285 = vector.load %arg18[%c1_214, %c0_215, %c0_216] : memref<3x1x64xf32, #tpu.memory_space<vmem>>, vector<1x1x64xf32>
    %286 = vector.shape_cast %285 : vector<1x1x64xf32> to vector<1x64xf32>
    %287 = vector.broadcast %286 : vector<1x64xf32> to vector<16x64xf32>
    %288 = arith.addf %284, %287 : vector<16x64xf32>
    %289 = arith.addf %272, %288 : vector<16x64xf32>
    %c1_217 = arith.constant 1 : index
    %c0_218 = arith.constant 0 : index
    %c0_219 = arith.constant 0 : index
    %290 = vector.load %arg13[%c1_217, %c0_218, %c0_219] : memref<3x1x64xf32, #tpu.memory_space<vmem>>, vector<1x1x64xf32>
    %291 = vector.shape_cast %290 : vector<1x1x64xf32> to vector<1x64xf32>
    %c1_220 = arith.constant 1 : index
    %c0_221 = arith.constant 0 : index
    %c0_222 = arith.constant 0 : index
    %292 = vector.load %arg14[%c1_220, %c0_221, %c0_222] : memref<3x1x64xf32, #tpu.memory_space<vmem>>, vector<1x1x64xf32>
    %293 = vector.shape_cast %292 : vector<1x1x64xf32> to vector<1x64xf32>
    %cst_223 = arith.constant dense<0.000000e+00> : vector<16xf32>
    %294 = vector.multi_reduction <add>, %289, %cst_223 [1] : vector<16x64xf32> to vector<16xf32>
    %295 = vector.shape_cast %294 : vector<16xf32> to vector<16x1xf32>
    %cst_224 = arith.constant 6.400000e+01 : f32
    %296 = vector.broadcast %cst_224 : f32 to vector<16x1xf32>
    %297 = arith.divf %295, %296 : vector<16x1xf32>
    %298 = vector.broadcast %297 : vector<16x1xf32> to vector<16x64xf32>
    %299 = arith.subf %289, %298 : vector<16x64xf32>
    %300 = arith.mulf %299, %299 : vector<16x64xf32>
    %cst_225 = arith.constant dense<0.000000e+00> : vector<16xf32>
    %301 = vector.multi_reduction <add>, %300, %cst_225 [1] : vector<16x64xf32> to vector<16xf32>
    %302 = vector.shape_cast %301 : vector<16xf32> to vector<16x1xf32>
    %cst_226 = arith.constant 6.400000e+01 : f32
    %303 = vector.broadcast %cst_226 : f32 to vector<16x1xf32>
    %304 = arith.divf %302, %303 : vector<16x1xf32>
    %305 = vector.broadcast %297 : vector<16x1xf32> to vector<16x64xf32>
    %306 = arith.subf %289, %305 : vector<16x64xf32>
    %cst_227 = arith.constant 9.99999974E-6 : f32
    %307 = vector.broadcast %cst_227 : f32 to vector<16x1xf32>
    %308 = arith.addf %304, %307 : vector<16x1xf32>
    %309 = math.rsqrt %308 : vector<16x1xf32>
    %310 = vector.broadcast %309 : vector<16x1xf32> to vector<16x64xf32>
    %311 = arith.mulf %306, %310 : vector<16x64xf32>
    %312 = vector.broadcast %291 : vector<1x64xf32> to vector<16x64xf32>
    %313 = arith.mulf %311, %312 : vector<16x64xf32>
    %314 = vector.broadcast %293 : vector<1x64xf32> to vector<16x64xf32>
    %315 = arith.addf %313, %314 : vector<16x64xf32>
    %c2 = arith.constant 2 : index
    %c0_228 = arith.constant 0 : index
    %c0_229 = arith.constant 0 : index
    %c0_230 = arith.constant 0 : index
    %316 = vector.load %arg3[%c2, %c0_228, %c0_229, %c0_230] : memref<3x2x64x32xf32, #tpu.memory_space<vmem>>, vector<1x1x64x32xf32>
    %317 = vector.shape_cast %316 : vector<1x1x64x32xf32> to vector<64x32xf32>
    %cst_231 = arith.constant dense<0.000000e+00> : vector<16x32xf32>
    %318 = tpu.matmul %315, %317, %cst_231 {dimension_numbers = #tpu.dot_dimension_numbers<[1], [0], [0], [1], [0, 0, 1, 1], [], []>} : vector<16x64xf32>, vector<64x32xf32>, vector<16x32xf32> -> vector<16x32xf32>
    %c2_232 = arith.constant 2 : index
    %c0_233 = arith.constant 0 : index
    %c0_234 = arith.constant 0 : index
    %c0_235 = arith.constant 0 : index
    %319 = vector.load %arg6[%c2_232, %c0_233, %c0_234, %c0_235] : memref<3x2x1x32xf32, #tpu.memory_space<vmem>>, vector<1x1x1x32xf32>
    %320 = vector.shape_cast %319 : vector<1x1x1x32xf32> to vector<1x32xf32>
    %321 = vector.broadcast %320 : vector<1x32xf32> to vector<16x32xf32>
    %322 = arith.addf %318, %321 : vector<16x32xf32>
    %323 = vector.shape_cast %322 : vector<16x32xf32> to vector<2x8x32xf32>
    %c2_236 = arith.constant 2 : index
    %c0_237 = arith.constant 0 : index
    %c0_238 = arith.constant 0 : index
    %c0_239 = arith.constant 0 : index
    %324 = vector.load %arg4[%c2_236, %c0_237, %c0_238, %c0_239] : memref<3x2x64x32xf32, #tpu.memory_space<vmem>>, vector<1x1x64x32xf32>
    %325 = vector.shape_cast %324 : vector<1x1x64x32xf32> to vector<64x32xf32>
    %cst_240 = arith.constant dense<0.000000e+00> : vector<16x32xf32>
    %326 = tpu.matmul %315, %325, %cst_240 {dimension_numbers = #tpu.dot_dimension_numbers<[1], [0], [0], [1], [0, 0, 1, 1], [], []>} : vector<16x64xf32>, vector<64x32xf32>, vector<16x32xf32> -> vector<16x32xf32>
    %c2_241 = arith.constant 2 : index
    %c0_242 = arith.constant 0 : index
    %c0_243 = arith.constant 0 : index
    %c0_244 = arith.constant 0 : index
    %327 = vector.load %arg7[%c2_241, %c0_242, %c0_243, %c0_244] : memref<3x2x1x32xf32, #tpu.memory_space<vmem>>, vector<1x1x1x32xf32>
    %328 = vector.shape_cast %327 : vector<1x1x1x32xf32> to vector<1x32xf32>
    %329 = vector.broadcast %328 : vector<1x32xf32> to vector<16x32xf32>
    %330 = arith.addf %326, %329 : vector<16x32xf32>
    %331 = vector.shape_cast %330 : vector<16x32xf32> to vector<2x8x32xf32>
    %c2_245 = arith.constant 2 : index
    %c0_246 = arith.constant 0 : index
    %c0_247 = arith.constant 0 : index
    %c0_248 = arith.constant 0 : index
    %332 = vector.load %arg5[%c2_245, %c0_246, %c0_247, %c0_248] : memref<3x2x64x32xf32, #tpu.memory_space<vmem>>, vector<1x1x64x32xf32>
    %333 = vector.shape_cast %332 : vector<1x1x64x32xf32> to vector<64x32xf32>
    %cst_249 = arith.constant dense<0.000000e+00> : vector<16x32xf32>
    %334 = tpu.matmul %315, %333, %cst_249 {dimension_numbers = #tpu.dot_dimension_numbers<[1], [0], [0], [1], [0, 0, 1, 1], [], []>} : vector<16x64xf32>, vector<64x32xf32>, vector<16x32xf32> -> vector<16x32xf32>
    %c2_250 = arith.constant 2 : index
    %c0_251 = arith.constant 0 : index
    %c0_252 = arith.constant 0 : index
    %c0_253 = arith.constant 0 : index
    %335 = vector.load %arg8[%c2_250, %c0_251, %c0_252, %c0_253] : memref<3x2x1x32xf32, #tpu.memory_space<vmem>>, vector<1x1x1x32xf32>
    %336 = vector.shape_cast %335 : vector<1x1x1x32xf32> to vector<1x32xf32>
    %337 = vector.broadcast %336 : vector<1x32xf32> to vector<16x32xf32>
    %338 = arith.addf %334, %337 : vector<16x32xf32>
    %339 = vector.shape_cast %338 : vector<16x32xf32> to vector<2x8x32xf32>
    "tpu.trace_start"() <{level = 10 : i32, message = "bqd,bkd->bqk"}> : () -> ()
    %cst_254 = arith.constant dense<0.000000e+00> : vector<2x8x8xf32>
    %340 = tpu.matmul %323, %331, %cst_254 {dimension_numbers = #tpu.dot_dimension_numbers<[2], [2], [1], [1], [0, 0, 0, 1, 1, 1], [0], [0]>} : vector<2x8x32xf32>, vector<2x8x32xf32>, vector<2x8x8xf32> -> vector<2x8x8xf32>
    "tpu.trace_stop"() : () -> ()
    %cst_255 = arith.constant dense<0xFF800000> : vector<2x8xf32>
    %341 = vector.multi_reduction <maximumf>, %340, %cst_255 [2] : vector<2x8x8xf32> to vector<2x8xf32>
    %342 = vector.shape_cast %341 : vector<2x8xf32> to vector<2x8x1xf32>
    %343 = vector.broadcast %342 : vector<2x8x1xf32> to vector<2x8x8xf32>
    %344 = arith.subf %340, %343 : vector<2x8x8xf32>
    %345 = math.exp %344 : vector<2x8x8xf32>
    %cst_256 = arith.constant dense<0.000000e+00> : vector<2x8xf32>
    %346 = vector.multi_reduction <add>, %345, %cst_256 [2] : vector<2x8x8xf32> to vector<2x8xf32>
    %347 = vector.shape_cast %346 : vector<2x8xf32> to vector<2x8x1xf32>
    %348 = tpu.reciprocal %347 {approx = true} : vector<2x8x1xf32> -> vector<2x8x1xf32>
    %349 = vector.broadcast %348 : vector<2x8x1xf32> to vector<2x8x8xf32>
    %350 = arith.mulf %345, %349 : vector<2x8x8xf32>
    "tpu.trace_start"() <{level = 10 : i32, message = "bqk,bkd->bqd"}> : () -> ()
    %cst_257 = arith.constant dense<0.000000e+00> : vector<2x8x32xf32>
    %351 = tpu.matmul %350, %339, %cst_257 {dimension_numbers = #tpu.dot_dimension_numbers<[2], [1], [1], [2], [0, 0, 0, 1, 1, 2], [0], [0]>} : vector<2x8x8xf32>, vector<2x8x32xf32>, vector<2x8x32xf32> -> vector<2x8x32xf32>
    "tpu.trace_stop"() : () -> ()
    %352 = vector.shape_cast %351 : vector<2x8x32xf32> to vector<16x32xf32>
    %c2_258 = arith.constant 2 : index
    %c0_259 = arith.constant 0 : index
    %c0_260 = arith.constant 0 : index
    %c0_261 = arith.constant 0 : index
    %353 = vector.load %arg9[%c2_258, %c0_259, %c0_260, %c0_261] : memref<3x2x32x64xf32, #tpu.memory_space<vmem>>, vector<1x1x32x64xf32>
    %354 = vector.shape_cast %353 : vector<1x1x32x64xf32> to vector<32x64xf32>
    %cst_262 = arith.constant dense<0.000000e+00> : vector<16x64xf32>
    %355 = tpu.matmul %352, %354, %cst_262 {dimension_numbers = #tpu.dot_dimension_numbers<[1], [0], [0], [1], [0, 0, 1, 1], [], []>} : vector<16x32xf32>, vector<32x64xf32>, vector<16x64xf32> -> vector<16x64xf32>
    %c2_263 = arith.constant 2 : index
    %c1_264 = arith.constant 1 : index
    %c0_265 = arith.constant 0 : index
    %c0_266 = arith.constant 0 : index
    %356 = vector.load %arg3[%c2_263, %c1_264, %c0_265, %c0_266] : memref<3x2x64x32xf32, #tpu.memory_space<vmem>>, vector<1x1x64x32xf32>
    %357 = vector.shape_cast %356 : vector<1x1x64x32xf32> to vector<64x32xf32>
    %cst_267 = arith.constant dense<0.000000e+00> : vector<16x32xf32>
    %358 = tpu.matmul %315, %357, %cst_267 {dimension_numbers = #tpu.dot_dimension_numbers<[1], [0], [0], [1], [0, 0, 1, 1], [], []>} : vector<16x64xf32>, vector<64x32xf32>, vector<16x32xf32> -> vector<16x32xf32>
    %c2_268 = arith.constant 2 : index
    %c1_269 = arith.constant 1 : index
    %c0_270 = arith.constant 0 : index
    %c0_271 = arith.constant 0 : index
    %359 = vector.load %arg6[%c2_268, %c1_269, %c0_270, %c0_271] : memref<3x2x1x32xf32, #tpu.memory_space<vmem>>, vector<1x1x1x32xf32>
    %360 = vector.shape_cast %359 : vector<1x1x1x32xf32> to vector<1x32xf32>
    %361 = vector.broadcast %360 : vector<1x32xf32> to vector<16x32xf32>
    %362 = arith.addf %358, %361 : vector<16x32xf32>
    %363 = vector.shape_cast %362 : vector<16x32xf32> to vector<2x8x32xf32>
    %c2_272 = arith.constant 2 : index
    %c1_273 = arith.constant 1 : index
    %c0_274 = arith.constant 0 : index
    %c0_275 = arith.constant 0 : index
    %364 = vector.load %arg4[%c2_272, %c1_273, %c0_274, %c0_275] : memref<3x2x64x32xf32, #tpu.memory_space<vmem>>, vector<1x1x64x32xf32>
    %365 = vector.shape_cast %364 : vector<1x1x64x32xf32> to vector<64x32xf32>
    %cst_276 = arith.constant dense<0.000000e+00> : vector<16x32xf32>
    %366 = tpu.matmul %315, %365, %cst_276 {dimension_numbers = #tpu.dot_dimension_numbers<[1], [0], [0], [1], [0, 0, 1, 1], [], []>} : vector<16x64xf32>, vector<64x32xf32>, vector<16x32xf32> -> vector<16x32xf32>
    %c2_277 = arith.constant 2 : index
    %c1_278 = arith.constant 1 : index
    %c0_279 = arith.constant 0 : index
    %c0_280 = arith.constant 0 : index
    %367 = vector.load %arg7[%c2_277, %c1_278, %c0_279, %c0_280] : memref<3x2x1x32xf32, #tpu.memory_space<vmem>>, vector<1x1x1x32xf32>
    %368 = vector.shape_cast %367 : vector<1x1x1x32xf32> to vector<1x32xf32>
    %369 = vector.broadcast %368 : vector<1x32xf32> to vector<16x32xf32>
    %370 = arith.addf %366, %369 : vector<16x32xf32>
    %371 = vector.shape_cast %370 : vector<16x32xf32> to vector<2x8x32xf32>
    %c2_281 = arith.constant 2 : index
    %c1_282 = arith.constant 1 : index
    %c0_283 = arith.constant 0 : index
    %c0_284 = arith.constant 0 : index
    %372 = vector.load %arg5[%c2_281, %c1_282, %c0_283, %c0_284] : memref<3x2x64x32xf32, #tpu.memory_space<vmem>>, vector<1x1x64x32xf32>
    %373 = vector.shape_cast %372 : vector<1x1x64x32xf32> to vector<64x32xf32>
    %cst_285 = arith.constant dense<0.000000e+00> : vector<16x32xf32>
    %374 = tpu.matmul %315, %373, %cst_285 {dimension_numbers = #tpu.dot_dimension_numbers<[1], [0], [0], [1], [0, 0, 1, 1], [], []>} : vector<16x64xf32>, vector<64x32xf32>, vector<16x32xf32> -> vector<16x32xf32>
    %c2_286 = arith.constant 2 : index
    %c1_287 = arith.constant 1 : index
    %c0_288 = arith.constant 0 : index
    %c0_289 = arith.constant 0 : index
    %375 = vector.load %arg8[%c2_286, %c1_287, %c0_288, %c0_289] : memref<3x2x1x32xf32, #tpu.memory_space<vmem>>, vector<1x1x1x32xf32>
    %376 = vector.shape_cast %375 : vector<1x1x1x32xf32> to vector<1x32xf32>
    %377 = vector.broadcast %376 : vector<1x32xf32> to vector<16x32xf32>
    %378 = arith.addf %374, %377 : vector<16x32xf32>
    %379 = vector.shape_cast %378 : vector<16x32xf32> to vector<2x8x32xf32>
    "tpu.trace_start"() <{level = 10 : i32, message = "bqd,bkd->bqk"}> : () -> ()
    %cst_290 = arith.constant dense<0.000000e+00> : vector<2x8x8xf32>
    %380 = tpu.matmul %363, %371, %cst_290 {dimension_numbers = #tpu.dot_dimension_numbers<[2], [2], [1], [1], [0, 0, 0, 1, 1, 1], [0], [0]>} : vector<2x8x32xf32>, vector<2x8x32xf32>, vector<2x8x8xf32> -> vector<2x8x8xf32>
    "tpu.trace_stop"() : () -> ()
    %cst_291 = arith.constant dense<0xFF800000> : vector<2x8xf32>
    %381 = vector.multi_reduction <maximumf>, %380, %cst_291 [2] : vector<2x8x8xf32> to vector<2x8xf32>
    %382 = vector.shape_cast %381 : vector<2x8xf32> to vector<2x8x1xf32>
    %383 = vector.broadcast %382 : vector<2x8x1xf32> to vector<2x8x8xf32>
    %384 = arith.subf %380, %383 : vector<2x8x8xf32>
    %385 = math.exp %384 : vector<2x8x8xf32>
    %cst_292 = arith.constant dense<0.000000e+00> : vector<2x8xf32>
    %386 = vector.multi_reduction <add>, %385, %cst_292 [2] : vector<2x8x8xf32> to vector<2x8xf32>
    %387 = vector.shape_cast %386 : vector<2x8xf32> to vector<2x8x1xf32>
    %388 = tpu.reciprocal %387 {approx = true} : vector<2x8x1xf32> -> vector<2x8x1xf32>
    %389 = vector.broadcast %388 : vector<2x8x1xf32> to vector<2x8x8xf32>
    %390 = arith.mulf %385, %389 : vector<2x8x8xf32>
    "tpu.trace_start"() <{level = 10 : i32, message = "bqk,bkd->bqd"}> : () -> ()
    %cst_293 = arith.constant dense<0.000000e+00> : vector<2x8x32xf32>
    %391 = tpu.matmul %390, %379, %cst_293 {dimension_numbers = #tpu.dot_dimension_numbers<[2], [1], [1], [2], [0, 0, 0, 1, 1, 2], [0], [0]>} : vector<2x8x8xf32>, vector<2x8x32xf32>, vector<2x8x32xf32> -> vector<2x8x32xf32>
    "tpu.trace_stop"() : () -> ()
    %392 = vector.shape_cast %391 : vector<2x8x32xf32> to vector<16x32xf32>
    %c2_294 = arith.constant 2 : index
    %c1_295 = arith.constant 1 : index
    %c0_296 = arith.constant 0 : index
    %c0_297 = arith.constant 0 : index
    %393 = vector.load %arg9[%c2_294, %c1_295, %c0_296, %c0_297] : memref<3x2x32x64xf32, #tpu.memory_space<vmem>>, vector<1x1x32x64xf32>
    %394 = vector.shape_cast %393 : vector<1x1x32x64xf32> to vector<32x64xf32>
    %cst_298 = arith.constant dense<0.000000e+00> : vector<16x64xf32>
    %395 = tpu.matmul %392, %394, %cst_298 {dimension_numbers = #tpu.dot_dimension_numbers<[1], [0], [0], [1], [0, 0, 1, 1], [], []>} : vector<16x32xf32>, vector<32x64xf32>, vector<16x64xf32> -> vector<16x64xf32>
    %396 = arith.addf %355, %395 : vector<16x64xf32>
    %c2_299 = arith.constant 2 : index
    %c0_300 = arith.constant 0 : index
    %c0_301 = arith.constant 0 : index
    %397 = vector.load %arg10[%c2_299, %c0_300, %c0_301] : memref<3x1x64xf32, #tpu.memory_space<vmem>>, vector<1x1x64xf32>
    %398 = vector.shape_cast %397 : vector<1x1x64xf32> to vector<1x64xf32>
    %399 = vector.broadcast %398 : vector<1x64xf32> to vector<16x64xf32>
    %400 = arith.addf %396, %399 : vector<16x64xf32>
    %401 = arith.addf %315, %400 : vector<16x64xf32>
    %c2_302 = arith.constant 2 : index
    %c0_303 = arith.constant 0 : index
    %c0_304 = arith.constant 0 : index
    %402 = vector.load %arg11[%c2_302, %c0_303, %c0_304] : memref<3x1x64xf32, #tpu.memory_space<vmem>>, vector<1x1x64xf32>
    %403 = vector.shape_cast %402 : vector<1x1x64xf32> to vector<1x64xf32>
    %c2_305 = arith.constant 2 : index
    %c0_306 = arith.constant 0 : index
    %c0_307 = arith.constant 0 : index
    %404 = vector.load %arg12[%c2_305, %c0_306, %c0_307] : memref<3x1x64xf32, #tpu.memory_space<vmem>>, vector<1x1x64xf32>
    %405 = vector.shape_cast %404 : vector<1x1x64xf32> to vector<1x64xf32>
    %cst_308 = arith.constant dense<0.000000e+00> : vector<16xf32>
    %406 = vector.multi_reduction <add>, %401, %cst_308 [1] : vector<16x64xf32> to vector<16xf32>
    %407 = vector.shape_cast %406 : vector<16xf32> to vector<16x1xf32>
    %cst_309 = arith.constant 6.400000e+01 : f32
    %408 = vector.broadcast %cst_309 : f32 to vector<16x1xf32>
    %409 = arith.divf %407, %408 : vector<16x1xf32>
    %410 = vector.broadcast %409 : vector<16x1xf32> to vector<16x64xf32>
    %411 = arith.subf %401, %410 : vector<16x64xf32>
    %412 = arith.mulf %411, %411 : vector<16x64xf32>
    %cst_310 = arith.constant dense<0.000000e+00> : vector<16xf32>
    %413 = vector.multi_reduction <add>, %412, %cst_310 [1] : vector<16x64xf32> to vector<16xf32>
    %414 = vector.shape_cast %413 : vector<16xf32> to vector<16x1xf32>
    %cst_311 = arith.constant 6.400000e+01 : f32
    %415 = vector.broadcast %cst_311 : f32 to vector<16x1xf32>
    %416 = arith.divf %414, %415 : vector<16x1xf32>
    %417 = vector.broadcast %409 : vector<16x1xf32> to vector<16x64xf32>
    %418 = arith.subf %401, %417 : vector<16x64xf32>
    %cst_312 = arith.constant 9.99999974E-6 : f32
    %419 = vector.broadcast %cst_312 : f32 to vector<16x1xf32>
    %420 = arith.addf %416, %419 : vector<16x1xf32>
    %421 = math.rsqrt %420 : vector<16x1xf32>
    %422 = vector.broadcast %421 : vector<16x1xf32> to vector<16x64xf32>
    %423 = arith.mulf %418, %422 : vector<16x64xf32>
    %424 = vector.broadcast %403 : vector<1x64xf32> to vector<16x64xf32>
    %425 = arith.mulf %423, %424 : vector<16x64xf32>
    %426 = vector.broadcast %405 : vector<1x64xf32> to vector<16x64xf32>
    %427 = arith.addf %425, %426 : vector<16x64xf32>
    %c2_313 = arith.constant 2 : index
    %c0_314 = arith.constant 0 : index
    %c0_315 = arith.constant 0 : index
    %428 = vector.load %arg15[%c2_313, %c0_314, %c0_315] : memref<3x64x256xf32, #tpu.memory_space<vmem>>, vector<1x64x256xf32>
    %429 = vector.shape_cast %428 : vector<1x64x256xf32> to vector<64x256xf32>
    %cst_316 = arith.constant dense<0.000000e+00> : vector<16x256xf32>
    %430 = tpu.matmul %427, %429, %cst_316 {dimension_numbers = #tpu.dot_dimension_numbers<[1], [0], [0], [1], [0, 0, 1, 1], [], []>} : vector<16x64xf32>, vector<64x256xf32>, vector<16x256xf32> -> vector<16x256xf32>
    %c2_317 = arith.constant 2 : index
    %c0_318 = arith.constant 0 : index
    %c0_319 = arith.constant 0 : index
    %431 = vector.load %arg16[%c2_317, %c0_318, %c0_319] : memref<3x1x256xf32, #tpu.memory_space<vmem>>, vector<1x1x256xf32>
    %432 = vector.shape_cast %431 : vector<1x1x256xf32> to vector<1x256xf32>
    %433 = vector.broadcast %432 : vector<1x256xf32> to vector<16x256xf32>
    %434 = arith.addf %430, %433 : vector<16x256xf32>
    %cst_320 = arith.constant 0.000000e+00 : f32
    %435 = vector.broadcast %cst_320 : f32 to vector<16x256xf32>
    %436 = arith.maximumf %434, %435 : vector<16x256xf32>
    %c2_321 = arith.constant 2 : index
    %c0_322 = arith.constant 0 : index
    %c0_323 = arith.constant 0 : index
    %437 = vector.load %arg17[%c2_321, %c0_322, %c0_323] : memref<3x256x64xf32, #tpu.memory_space<vmem>>, vector<1x256x64xf32>
    %438 = vector.shape_cast %437 : vector<1x256x64xf32> to vector<256x64xf32>
    %cst_324 = arith.constant dense<0.000000e+00> : vector<16x64xf32>
    %439 = tpu.matmul %436, %438, %cst_324 {dimension_numbers = #tpu.dot_dimension_numbers<[1], [0], [0], [1], [0, 0, 1, 1], [], []>} : vector<16x256xf32>, vector<256x64xf32>, vector<16x64xf32> -> vector<16x64xf32>
    %c2_325 = arith.constant 2 : index
    %c0_326 = arith.constant 0 : index
    %c0_327 = arith.constant 0 : index
    %440 = vector.load %arg18[%c2_325, %c0_326, %c0_327] : memref<3x1x64xf32, #tpu.memory_space<vmem>>, vector<1x1x64xf32>
    %441 = vector.shape_cast %440 : vector<1x1x64xf32> to vector<1x64xf32>
    %442 = vector.broadcast %441 : vector<1x64xf32> to vector<16x64xf32>
    %443 = arith.addf %439, %442 : vector<16x64xf32>
    %444 = arith.addf %427, %443 : vector<16x64xf32>
    %c2_328 = arith.constant 2 : index
    %c0_329 = arith.constant 0 : index
    %c0_330 = arith.constant 0 : index
    %445 = vector.load %arg13[%c2_328, %c0_329, %c0_330] : memref<3x1x64xf32, #tpu.memory_space<vmem>>, vector<1x1x64xf32>
    %446 = vector.shape_cast %445 : vector<1x1x64xf32> to vector<1x64xf32>
    %c2_331 = arith.constant 2 : index
    %c0_332 = arith.constant 0 : index
    %c0_333 = arith.constant 0 : index
    %447 = vector.load %arg14[%c2_331, %c0_332, %c0_333] : memref<3x1x64xf32, #tpu.memory_space<vmem>>, vector<1x1x64xf32>
    %448 = vector.shape_cast %447 : vector<1x1x64xf32> to vector<1x64xf32>
    %cst_334 = arith.constant dense<0.000000e+00> : vector<16xf32>
    %449 = vector.multi_reduction <add>, %444, %cst_334 [1] : vector<16x64xf32> to vector<16xf32>
    %450 = vector.shape_cast %449 : vector<16xf32> to vector<16x1xf32>
    %cst_335 = arith.constant 6.400000e+01 : f32
    %451 = vector.broadcast %cst_335 : f32 to vector<16x1xf32>
    %452 = arith.divf %450, %451 : vector<16x1xf32>
    %453 = vector.broadcast %452 : vector<16x1xf32> to vector<16x64xf32>
    %454 = arith.subf %444, %453 : vector<16x64xf32>
    %455 = arith.mulf %454, %454 : vector<16x64xf32>
    %cst_336 = arith.constant dense<0.000000e+00> : vector<16xf32>
    %456 = vector.multi_reduction <add>, %455, %cst_336 [1] : vector<16x64xf32> to vector<16xf32>
    %457 = vector.shape_cast %456 : vector<16xf32> to vector<16x1xf32>
    %cst_337 = arith.constant 6.400000e+01 : f32
    %458 = vector.broadcast %cst_337 : f32 to vector<16x1xf32>
    %459 = arith.divf %457, %458 : vector<16x1xf32>
    %460 = vector.broadcast %452 : vector<16x1xf32> to vector<16x64xf32>
    %461 = arith.subf %444, %460 : vector<16x64xf32>
    %cst_338 = arith.constant 9.99999974E-6 : f32
    %462 = vector.broadcast %cst_338 : f32 to vector<16x1xf32>
    %463 = arith.addf %459, %462 : vector<16x1xf32>
    %464 = math.rsqrt %463 : vector<16x1xf32>
    %465 = vector.broadcast %464 : vector<16x1xf32> to vector<16x64xf32>
    %466 = arith.mulf %461, %465 : vector<16x64xf32>
    %467 = vector.broadcast %446 : vector<1x64xf32> to vector<16x64xf32>
    %468 = arith.mulf %466, %467 : vector<16x64xf32>
    %469 = vector.broadcast %448 : vector<1x64xf32> to vector<16x64xf32>
    %470 = arith.addf %468, %469 : vector<16x64xf32>
    %471 = vector.shape_cast %470 : vector<16x64xf32> to vector<2x8x64xf32>
    %472 = vector.extract_strided_slice %471 {offsets = [0, 7, 0], sizes = [2, 1, 64], strides = [1, 1, 1]} : vector<2x8x64xf32> to vector<2x1x64xf32>
    %473 = vector.shape_cast %472 : vector<2x1x64xf32> to vector<2x64xf32>
    %c0_339 = arith.constant 0 : index
    %c0_340 = arith.constant 0 : index
    %474 = vector.load %arg19[%c0_339, %c0_340] : memref<64x24xf32, #tpu.memory_space<vmem>>, vector<64x24xf32>
    %cst_341 = arith.constant dense<0.000000e+00> : vector<2x24xf32>
    %475 = tpu.matmul %473, %474, %cst_341 {dimension_numbers = #tpu.dot_dimension_numbers<[1], [0], [0], [1], [0, 0, 1, 1], [], []>} : vector<2x64xf32>, vector<64x24xf32>, vector<2x24xf32> -> vector<2x24xf32>
    %c0_342 = arith.constant 0 : index
    %c0_343 = arith.constant 0 : index
    %476 = vector.load %arg20[%c0_342, %c0_343] : memref<1x24xf32, #tpu.memory_space<vmem>>, vector<1x24xf32>
    %477 = vector.broadcast %476 : vector<1x24xf32> to vector<2x24xf32>
    %478 = arith.addf %475, %477 : vector<2x24xf32>
    %c0_344 = arith.constant 0 : index
    %c0_345 = arith.constant 0 : index
    %479 = vector.load %arg21[%c0_344, %c0_345] : memref<2x24xf32, #tpu.memory_space<vmem>>, vector<2x24xf32>
    tpu.vector_store %arg21[%c0_344, %c0_345], %478 {strides = array<i32>} : memref<2x24xf32, #tpu.memory_space<vmem>>, vector<2x24xf32>,
    return
  }
}

</mosaic_0001>

<bundles_post_ra>
// kernel: tpu_custom_call.1
= control target key start
LH: loop header
LB: loop body
LE: loop exit
PB: predicated region body
PF: predicated region fallthrough
CT: control target
= control target key end

     0   :  { %s8945_s0 = inlined_call_operand.vmem [shape: f32[16,16], index: 0, kind: input, shape index: {}]   ;;  %s8946_s1 = inlined_call_operand.vmem [shape: f32[16,64], index: 1, kind: input, shape index: {}]   ;;  %s8947_s2 = inlined_call_operand.vmem [shape: f32[1,64], index: 2, kind: input, shape index: {}]   ;;  %s8948_s3 = inlined_call_operand.vmem [shape: f32[3,2,64,32], index: 3, kind: input, shape index: {}]   ;;  %s8949_s4 = inlined_call_operand.vmem [shape: f32[3,2,64,32], index: 4, kind: input, shape index: {}]   ;;  %s8950_s5 = inlined_call_operand.vmem [shape: f32[3,2,64,32], index: 5, kind: input, shape index: {}]   ;;  %s8951_s6 = inlined_call_operand.vmem [shape: f32[3,2,1,32], index: 6, kind: input, shape index: {}]   ;;  %s8952_s7 = inlined_call_operand.vmem [shape: f32[3,2,1,32], index: 7, kind: input, shape index: {}]   ;;  %s8953_s8 = inlined_call_operand.vmem [shape: f32[3,2,1,32], index: 8, kind: input, shape index: {}]   ;;  %s8954_s9 = inlined_call_operand.vmem [shape: f32[3,2,32,64], index: 9, kind: input, shape index: {}]   ;;  %s8955_s10 = inlined_call_operand.vmem [shape: f32[3,1,64], index: 10, kind: input, shape index: {}]   ;;  %s8956_s11 = inlined_call_operand.vmem [shape: f32[3,1,64], index: 11, kind: input, shape index: {}]   ;;  %s8957_s12 = inlined_call_operand.vmem [shape: f32[3,1,64], index: 12, kind: input, shape index: {}]   ;;  %s8958_s13 = inlined_call_operand.vmem [shape: f32[3,1,64], index: 13, kind: input, shape index: {}]   ;;  %s8959_s14 = inlined_call_operand.vmem [shape: f32[3,1,64], index: 14, kind: input, shape index: {}]   ;;  %s8960_s15 = inlined_call_operand.vmem [shape: f32[3,64,256], index: 15, kind: input, shape index: {}]   ;;  %s8961_s16 = inlined_call_operand.vmem [shape: f32[3,1,256], index: 16, kind: input, shape index: {}]   ;;  %s8962_s17 = inlined_call_operand.vmem [shape: f32[3,256,64], index: 17, kind: input, shape index: {}]   ;;  %s8963_s18 = inlined_call_operand.vmem [shape: f32[3,1,64], index: 18, kind: input, shape index: {}]   ;;  %s8964_s19 = inlined_call_operand.vmem [shape: f32[64,24], index: 19, kind: input, shape index: {}]   ;;  %s8965_s20 = inlined_call_operand.vmem [shape: f32[1,24], index: 20, kind: input, shape index: {}]   ;;  %s8966_s21 = inlined_call_operand.hbm [shape: f32[2,24], index: 21, kind: output, shape index: {}]  }
   0x1   :  { %8972 = sst [smem:[#allocation5_spill]] %s8945_s0 }
   0x2   :  { %8973 = sst [smem:[#allocation6_spill]] %s8946_s1 }
   0x3   :  { %8974 = sst [smem:[#allocation7_spill]] %s8947_s2 }
   0x4   :  { %8975 = sst [smem:[#allocation8_spill]] %s8948_s3 }
   0x5   :  { %8976 = sst [smem:[#allocation9_spill]] %s8949_s4 }
   0x6   :  { %8977 = sst [smem:[#allocation10_spill]] %s8950_s5 }
   0x7   :  { %s8978_s26 = sld [smem:[#allocation6_spill]]  ;;  %s8979_s0 = sld [smem:[#allocation5_spill]]  ;;  %vm80_vm0 = vcmask 130048  }
   0x8   :  { %s8980_s5 = sld [smem:[#allocation8_spill]]  ;;  %s8981_s2 = sld [smem:[#allocation9_spill]] }
   0xd   :  { %v71_v0 = vld [vmem:[%s8978_s26] sm:$0xff]  ;;  %v72_v1 = vld [vmem:[%s8978_s26 + $0x8] sm:$0xff] }
   0xe   :  { %v69_v2 = vld [vmem:[%s8979_s0] sm:$0xff]  ;;  %v6727_v3 = vpack.c.bf16 %v72_v1, %v71_v0  ;;  %v163_v5 = vld [vmem:[%s8980_s5 + $0x8] sm:$0xff]  ;;  %v164_v9 = vld [vmem:[%s8980_s5 + $0x10] sm:$0xff] }
   0xf   :  { %6177 = vmatprep.mubr.msk.f32.mxu0 %vm80_vm0, %v69_v2  ;;  %v162_v4 = vld [vmem:[%s8980_s5] sm:$0xff]  ;;  %v260_v8 = vld [vmem:[%s8981_s2 + $0x8] sm:$0xff]  ;;  %v165_v11 = vld [vmem:[%s8980_s5 + $0x18] sm:$0xff] }
  0x10   :  { %v6731_v6 = vpack.c.bf16 %v163_v5, %v162_v4  ;;  %v259_v7 = vld [vmem:[%s8981_s2] sm:$0xff]  ;;  %6728 = vmatprep.subr.bf16.mxu0 %v6727_v3  ;;  %v261_v12 = vld [vmem:[%s8981_s2 + $0x10] sm:$0xff]  ;;  %v262_v13 = vld [vmem:[%s8981_s2 + $0x18] sm:$0xff]  ;;  %v6735_v15 = vpack.c.bf16 %v165_v11, %v164_v9 }
  0x11   :  { %v6747_v10 = vpack.c.bf16 %v260_v8, %v259_v7  ;;  %6730 = vmatpush3.bf16.msra.mxu0 %v6727_v3  ;;  %v70_v14 = vld [vmem:[%s8979_s0 + $0x8] sm:$0xff]  ;;  %v166_v16 = vld [vmem:[%s8980_s5 + $0x20] sm:$0xff]  ;;  %v6751_v18 = vpack.c.bf16 %v262_v13, %v261_v12 }
  0x12   :  { %6732 = vmatprep.subr.bf16.mxu1 %v6731_v6  ;;  %v167_v17 = vld [vmem:[%s8980_s5 + $0x28] sm:$0xff] }
  0x13   :  { %6734 = vmatpush3.bf16.msra.mxu1 %v6731_v6  ;;  %6748 = vmatprep.subr.bf16.mxu0 %v6747_v10 }
  0x14   :  { %26 = vsyncpa [#allocation3], 0  ;;  %6736 = vmatprep.subr.bf16.mxu1 %v6735_v15  ;;  %v6739_v19 = vpack.c.bf16 %v167_v17, %v166_v16  ;;  %v263_v20 = vld [vmem:[%s8981_s2 + $0x20] sm:$0xff]  ;;  %v264_v21 = vld [vmem:[%s8981_s2 + $0x28] sm:$0xff]  ;;  %6178 = vmatmul.mubr.msk.f32.vlgmr.msra.gmra.mrb[0].mxu0 %vm80_vm0, %v70_v14  ;;  %s8982_s29 = sld [smem:[#allocation10_spill]]  ;;  %s8983_s23 = sld [smem:[#allocation7_spill]] }
  0x15   :  { %6750 = vmatpush3.bf16.msra.mxu0 %v6747_v10  ;;  %v6755_v22 = vpack.c.bf16 %v264_v21, %v263_v20  ;;  %v168_v23 = vld [vmem:[%s8980_s5 + $0x30] sm:$0xff]  ;;  %v169_v24 = vld [vmem:[%s8980_s5 + $0x38] sm:$0xff]  ;;  %vm177_vm1 = vcmask 523264   ;;  %v5404_v46 = vld [vmem:[%s8980_s5 + $0x40] sm:$0xff]  ;;  %v7329_v6 = vmov 0.0   ;;  %vm7330_vm2 = vmmov 0  }
  0x16   :  { %6752 = vmatprep.subr.bf16.mxu0 %v6751_v18  ;;  %v6743_v25 = vpack.c.bf16 %v169_v24, %v168_v23  ;;  %v265_v26 = vld [vmem:[%s8981_s2 + $0x30] sm:$0xff]  ;;  %v266_v27 = vld [vmem:[%s8981_s2 + $0x38] sm:$0xff]  ;;  %v5405_v47 = vld [vmem:[%s8980_s5 + $0x48] sm:$0xff]  ;;  %vm439_vm3 = vcmask 261120   ;;  %vm592_vm4 = vcmask 64512   ;;  %vm5296_vm5 = vcmask 1041409  }
  0x17   :  { %6738 = vmatpush3.bf16.msra.mxu1 %v6735_v15  ;;  %v6759_v28 = vpack.c.bf16 %v266_v27, %v265_v26  ;;  %v6779_v48 = vpack.c.bf16 %v5405_v47, %v5404_v46  ;;  %v5406_v49 = vld [vmem:[%s8980_s5 + $0x50] sm:$0xff]  ;;  %v5407_v50 = vld [vmem:[%s8980_s5 + $0x58] sm:$0xff]  ;;  %v5408_v52 = vld [vmem:[%s8980_s5 + $0x60] sm:$0xff]  ;;  %vm5370_vm6 = vcmask 189440  }
  0x18   :  { %6740 = vmatprep.subr.bf16.mxu1 %v6739_v19  ;;  %v6783_v51 = vpack.c.bf16 %v5407_v50, %v5406_v49  ;;  %v5409_v53 = vld [vmem:[%s8980_s5 + $0x68] sm:$0xff]  ;;  %v5410_v55 = vld [vmem:[%s8980_s5 + $0x70] sm:$0xff]  ;;  %v5411_v56 = vld [vmem:[%s8980_s5 + $0x78] sm:$0xff] }
  0x19   :  { %6754 = vmatpush3.bf16.msra.mxu0 %v6751_v18  ;;  %v6787_v54 = vpack.c.bf16 %v5409_v53, %v5408_v52  ;;  %v6791_v57 = vpack.c.bf16 %v5411_v56, %v5410_v55  ;;  %v5392_v7 = vld [vmem:[%s8952_s7] ss:$0 sm:$0xff]  ;;  %v7634_v24 = vld [vmem:[%s8953_s8 + $0x1] ss:$0 sm:$0xff]  ;;  %v762_v47 = vld [vmem:[%s8954_s9 + $0x8] sm:$0xff] }
  0x1a   :  { %6756 = vmatprep.subr.bf16.mxu0 %v6755_v22  ;;  %v349_v29 = vld [vmem:[%s8982_s29] sm:$0xff]  ;;  %v350_v30 = vld [vmem:[%s8982_s29 + $0x8] sm:$0xff]  ;;  %v351_v34 = vld [vmem:[%s8982_s29 + $0x10] sm:$0xff] }
  0x1b   :  { %6742 = vmatpush3.bf16.msra.mxu1 %v6739_v19  ;;  %v6763_v31 = vpack.c.bf16 %v350_v30, %v349_v29  ;;  %v5386_v32 = vld [vmem:[%s8983_s23] ss:$0 sm:$0xff]  ;;  %v352_v35 = vld [vmem:[%s8982_s29 + $0x18] sm:$0xff]  ;;  %v354_v41 = vld [vmem:[%s8982_s29 + $0x28] sm:$0xff] }
  0x1c   :  { %6744 = vmatprep.subr.bf16.mxu1 %v6743_v25  ;;  %v6767_v39 = vpack.c.bf16 %v352_v35, %v351_v34  ;;  %v353_v40 = vld [vmem:[%s8982_s29 + $0x20] sm:$0xff]  ;;  %v355_v43 = vld [vmem:[%s8982_s29 + $0x30] sm:$0xff]  ;;  %v356_v44 = vld [vmem:[%s8982_s29 + $0x38] sm:$0xff] }
  0x1d   :  { %6758 = vmatpush3.bf16.msra.mxu0 %v6755_v22  ;;  %v6771_v42 = vpack.c.bf16 %v354_v41, %v353_v40  ;;  %v6775_v45 = vpack.c.bf16 %v356_v44, %v355_v43  ;;  %v5428_v58 = vld [vmem:[%s8982_s29 + $0x40] sm:$0xff]  ;;  %v5429_v59 = vld [vmem:[%s8982_s29 + $0x48] sm:$0xff]  ;;  %v5430_v61 = vld [vmem:[%s8982_s29 + $0x50] sm:$0xff] }
  0x1e   :  { %6760 = vmatprep.subr.bf16.mxu0 %v6759_v28  ;;  %v6811_v60 = vpack.c.bf16 %v5429_v59, %v5428_v58  ;;  %v5431_v62 = vld [vmem:[%s8982_s29 + $0x58] sm:$0xff]  ;;  %v5432_v0 = vld [vmem:[%s8982_s29 + $0x60] sm:$0xff]  ;;  %v5433_v1 = vld [vmem:[%s8982_s29 + $0x68] sm:$0xff] }
  0x1f   :  { %6746 = vmatpush3.bf16.msra.mxu1 %v6743_v25  ;;  %v6815_v63 = vpack.c.bf16 %v5431_v62, %v5430_v61  ;;  %v6819_v2 = vpack.c.bf16 %v5433_v1, %v5432_v0  ;;  %v5434_v3 = vld [vmem:[%s8982_s29 + $0x70] sm:$0xff]  ;;  %v5435_v4 = vld [vmem:[%s8982_s29 + $0x78] sm:$0xff]  ;;  %v5389_v12 = vld [vmem:[%s8951_s6] ss:$0 sm:$0xff] }
  0x20   :  { %6764 = vmatprep.subr.bf16.mxu1 %v6763_v31  ;;  %v6823_v5 = vpack.c.bf16 %v5435_v4, %v5434_v3  ;;  %v5395_v17 = vld [vmem:[%s8953_s8] ss:$0 sm:$0xff]  ;;  %v5417_v52 = vld [vmem:[%s8981_s2 + $0x48] sm:$0xff]  ;;  %v5418_v56 = vld [vmem:[%s8981_s2 + $0x50] sm:$0xff] }
  0x21   :  { %6762 = vmatpush3.bf16.msra.mxu0 %v6759_v28  ;;  %v761_v46 = vld [vmem:[%s8954_s9] sm:$0xff]  ;;  %v5421_v62 = vld [vmem:[%s8981_s2 + $0x68] sm:$0xff]  ;;  %v5422_v0 = vld [vmem:[%s8981_s2 + $0x70] sm:$0xff] }
  0x22   :  { %6237 = vmatprep.subr.mxu0 %v7329_v6  ;;  %v5420_v61 = vld [vmem:[%s8981_s2 + $0x60] sm:$0xff]  ;;  %v5423_v1 = vld [vmem:[%s8981_s2 + $0x78] sm:$0xff]  ;;  %v763_v3 = vld [vmem:[%s8954_s9 + $0x10] sm:$0xff] }
  0x23   :  { %v764_v4 = vld [vmem:[%s8954_s9 + $0x18] sm:$0xff] }
  0xe7   :  { %v6179_v33 = vpop.f32.mrb[0].mxu0 }
  0xe8   :  { %v153_v36 = vpop.f32.mrb[1].mxu0  ;;  %v7522_v38 = vadd.f32 %v6179_v33, %v5386_v32 }
  0xe9   :  { %v7520_v37 = vadd.f32 %v5386_v32, %v153_v36 }
  0xeb   :  { %6196 = vmatprep.mubr.msk.f32.mxu1 %vm177_vm1, %v7520_v37  ;;  %6215 = vmatprep.mubr.msk.f32.mxu0 %vm177_vm1, %v7520_v37 }
  0xec   :  { %6197 = vmatmul.mubr.msk.f32.vlgmr.msra.gmra.mrb[0].mxu1 %vm177_vm1, %v7522_v38  ;;  %6216 = vmatmul.mubr.msk.f32.vlgmr.msra.gmra.mrb[2].mxu0 %vm177_vm1, %v7522_v38 }
  0xed   :  { %6766 = vmatpush3.bf16.msra.mxu1 %v6763_v31  ;;  %6234 = vmatprep.mubr.msk.f32.mxu1 %vm177_vm1, %v7520_v37 }
  0xee   :  { %6768 = vmatprep.subr.bf16.mxu1 %v6767_v39  ;;  %6239 = vmatprep.mubr.msk.f32.mxu0 %vm7330_vm2, %v7329_v6 }
  0xf1   :  { %6770 = vmatpush3.bf16.msra.mxu1 %v6767_v39 }
  0xf2   :  { %6772 = vmatprep.subr.bf16.mxu1 %v6771_v42 }
  0xf5   :  { %6774 = vmatpush3.bf16.msra.mxu1 %v6771_v42 }
  0xf6   :  { %6776 = vmatprep.subr.bf16.mxu1 %v6775_v45 }
  0xf9   :  { %6778 = vmatpush3.bf16.msra.mxu1 %v6775_v45 }
  0xfa   :  { %6780 = vmatprep.subr.bf16.mxu1 %v6779_v48 }
  0xfc   :  { %6235 = vmatmul.mubr.msk.f32.vlgmr.msra.gmra.mrb[2].mxu1 %vm177_vm1, %v7522_v38 }
  0xfd   :  { %6782 = vmatpush3.bf16.msra.mxu1 %v6779_v48  ;;  %6273 = vmatprep.mubr.msk.f32.mxu1 %vm177_vm1, %v7520_v37  ;;  %v6835_v48 = vpack.c.bf16 %v762_v47, %v761_v46 }
  0xfe   :  { %6784 = vmatprep.subr.bf16.mxu1 %v6783_v51 }
 0x101   :  { %6786 = vmatpush3.bf16.msra.mxu1 %v6783_v51  ;;  %v5416_v51 = vld [vmem:[%s8981_s2 + $0x40] sm:$0xff] }
 0x102   :  { %6788 = vmatprep.subr.bf16.mxu1 %v6787_v54  ;;  %v6795_v55 = vpack.c.bf16 %v5417_v52, %v5416_v51  ;;  %v5449_v51 = vld [vmem:[%s8954_s9 + $0x38] sm:$0xff] }
 0x105   :  { %6790 = vmatpush3.bf16.msra.mxu1 %v6787_v54 }
 0x106   :  { %6792 = vmatprep.subr.bf16.mxu1 %v6791_v57 }
 0x109   :  { %6794 = vmatpush3.bf16.msra.mxu1 %v6791_v57  ;;  %v5419_v57 = vld [vmem:[%s8981_s2 + $0x58] sm:$0xff] }
 0x10a   :  { %6812 = vmatprep.subr.bf16.mxu1 %v6811_v60 }
 0x10c   :  { %6274 = vmatmul.mubr.msk.f32.vlgmr.msra.gmra.mrb[4].mxu1 %vm177_vm1, %v7522_v38 }
 0x10d   :  { %6814 = vmatpush3.bf16.msra.mxu1 %v6811_v60  ;;  %6311 = vmatprep.mubr.msk.f32.mxu1 %vm177_vm1, %v7520_v37  ;;  %v6799_v60 = vpack.c.bf16 %v5419_v57, %v5418_v56  ;;  %v5454_v57 = vld [vmem:[%s8955_s10] ss:$0 sm:$0xff] }
 0x10e   :  { %6816 = vmatprep.subr.bf16.mxu1 %v6815_v63 }
 0x111   :  { %6818 = vmatpush3.bf16.msra.mxu1 %v6815_v63  ;;  %v6803_v63 = vpack.c.bf16 %v5421_v62, %v5420_v61 }
 0x112   :  { %6820 = vmatprep.subr.bf16.mxu1 %v6819_v2 }
 0x115   :  { %6822 = vmatpush3.bf16.msra.mxu1 %v6819_v2  ;;  %v6807_v2 = vpack.c.bf16 %v5423_v1, %v5422_v0 }
 0x116   :  { %6824 = vmatprep.subr.bf16.mxu1 %v6823_v5 }
 0x119   :  { %6826 = vmatpush3.bf16.msra.mxu1 %v6823_v5  ;;  %v6839_v5 = vpack.c.bf16 %v764_v4, %v763_v3 }
 0x11a   :  { %6836 = vmatprep.subr.bf16.mxu1 %v6835_v48 }
 0x11c   :  { %6312 = vmatmul.mubr.msk.f32.vlgmr.msra.gmra.mrb[6].mxu1 %vm177_vm1, %v7522_v38 }
 0x11d   :  { %6838 = vmatpush3.bf16.msra.mxu1 %v6835_v48 }
 0x11e   :  { %6840 = vmatprep.subr.bf16.mxu1 %v6839_v5 }
 0x121   :  { %6842 = vmatpush3.bf16.msra.mxu1 %v6839_v5 }
 0x1bf   :  { %v6198_v8 = vpop.f32.mrb[0].mxu1  ;;  %v6217_v9 = vpop.f32.mrb[2].mxu0 }
 0x1c0   :  { %v250_v10 = vpop.f32.mrb[1].mxu1  ;;  %v340_v11 = vpop.f32.mrb[3].mxu0  ;;  %v346_v15 = vadd.f32 %v6217_v9, %v5392_v7  ;;  %v256_v16 = vadd.f32 %v6198_v8, %v5389_v12 }
 0x1c1   :  { %v341_v13 = vadd.f32 %v5392_v7, %v340_v11  ;;  %v251_v14 = vadd.f32 %v5389_v12, %v250_v10  ;;  %v5425_v11 = vld [vmem:[%s8952_s7 + $0x1] ss:$0 sm:$0xff] }
 0x1c3   :  { %6238 = vmatpush3.xpose.msk.msra.mxu0 %vm439_vm3, %v341_v13 }
 0x1c4   :  { %6242 = vmatprep.subr.mxu0 %v7329_v6 }
 0x1c6   :  { %6240 = vmatmul.mubr.msk.f32.vlgmr.msra.gmra.mrb[4].mxu0 %vm439_vm3, %v251_v14  ;;  %v5413_v14 = vld [vmem:[%s8951_s6 + $0x1] ss:$0 sm:$0xff] }
 0x1c7   :  { %6243 = vmatpush3.xpose.msk.msra.mxu0 %vm439_vm3, %v346_v15  ;;  %6244 = vmatprep.mubr.msk.f32.mxu0 %vm7330_vm2, %v7329_v6 }
 0x1c8   :  { %6247 = vmatprep.subr.mxu0 %v7329_v6 }
 0x1ca   :  { %6245 = vmatmul.mubr.msk.f32.vlgmr.msra.gmra.mrb[6].mxu0 %vm439_vm3, %v256_v16 }
 0x1cb   :  { %6249 = vmatprep.mubr.msk.f32.mxu0 %vm7330_vm2, %v7329_v6 }
 0x1cf   :  { %v6236_v18 = vpop.f32.mrb[2].mxu1 }
 0x1d0   :  { %v436_v19 = vadd.f32 %v6236_v18, %v5395_v17  ;;  %v430_v20 = vpop.f32.mrb[3].mxu1 }
 0x1d1   :  { %v431_v21 = vadd.f32 %v5395_v17, %v430_v20 }
 0x1d3   :  { %6248 = vmatpush3.msra.mxu0 %v431_v21 }
 0x1d4   :  { %6252 = vmatprep.subr.mxu0 %v7329_v6 }
 0x1df   :  { %v7627_v22 = vpop.f32.mrb[4].mxu1 }
 0x1e0   :  { %v7629_v23 = vpop.f32.mrb[5].mxu1  ;;  %v854_v18 = vadd.f32 %v7627_v22, %v5413_v14 }
 0x1e1   :  { %v849_v16 = vadd.f32 %v5413_v14, %v7629_v23 }
 0x1ef   :  { %v6313_v25 = vpop.f32.mrb[6].mxu1 }
 0x1f0   :  { %v7637_v26 = vadd.f32 %v6313_v25, %v7634_v24  ;;  %v7639_v27 = vpop.f32.mrb[7].mxu1 }
 0x299   :  { %v512_v28 = vpop.f32.mrb[4].mxu0 }
 0x29a   :  { %v6241_v29 = vpop.f32.mrb[5].mxu0  ;;  %v593_v30 = vsel %vm592_vm4, %v512_v28, -inf }
 0x29b   :  { %594 = vmax.xlane.f32.xlu0 %v593_v30 }
 0x29d   :  { %v588_v31 = vpop.f32.mrb[6].mxu0 }
 0x29e   :  { %v6246_v32 = vpop.f32.mrb[7].mxu0  ;;  %v596_v33 = vsel %vm592_vm4, %v588_v31, -inf }
 0x29f   :  { %597 = vmax.xlane.f32.xlu0 %v596_v33 }
 0x328   :  { %v595_v34 = vpop.xlane.xlu0 %594 }
 0x329   :  { %v599_v35 = vsub.f32 %v512_v28, %v595_v34 }
 0x32b   :  { %v601_v36 = vmul.f32 1.442695, %v599_v35 }
 0x32c   :  { %v598_v39 = vpop.xlane.xlu0 %597 }
 0x32d   :  { %7233 = vpow2.f32 %v601_v36  ;;  %v600_v40 = vsub.f32 %v588_v31, %v598_v39 }
 0x32f   :  { %v603_v41 = vmul.f32 1.442695, %v600_v40 }
 0x331   :  { %7235 = vpow2.f32 %v603_v41 }
 0x337   :  { %v7234_v42 = vpop.eup %7233 }
 0x338   :  { %v605_v43 = vsel %vm592_vm4, %v7234_v42, 0.0 }
 0x339   :  { %606 = vadd.xlane.f32.xlu1 %v605_v43  ;;  %v5446_v43 = vld [vmem:[%s8954_s9 + $0x20] sm:$0xff] }
 0x33b   :  { %v7236_v44 = vpop.eup %7235 }
 0x33c   :  { %v608_v45 = vsel %vm592_vm4, %v7236_v44, 0.0 }
 0x33d   :  { %609 = vadd.xlane.f32.xlu1 %v608_v45 }
 0x3c6   :  { %v607_v49 = vpop.xlane.xlu1 %606 }
 0x3c7   :  { %7237 = vrcp.f32 %v607_v49 }
 0x3ca   :  { %v610_v50 = vpop.xlane.xlu1 %609 }
 0x3cb   :  { %7239 = vrcp.f32 %v610_v50  ;;  %v5448_v50 = vld [vmem:[%s8954_s9 + $0x30] sm:$0xff] }
 0x3cc   :  { %v6831_v52 = vpack.c.bf16 %v5449_v51, %v5448_v50  ;;  %v1719_v50 = vld [vmem:[%s8962_s17 + $0xa0] sm:$0xff]  ;;  %v1720_v51 = vld [vmem:[%s8962_s17 + $0xa8] sm:$0xff] }
 0x3d1   :  { %v7238_v53 = vpop.eup %7237 }
 0x3d2   :  { %v613_v54 = vmul.f32 %v7238_v53, %v7234_v42 }
 0x3d4   :  { %6250 = vmatmul.mubr.msk.f32.vlgmr.msra.gmra.mrb[8].mxu0 %vm592_vm4, %v613_v54 }
 0x3d5   :  { %v7240_v58 = vpop.eup %7239  ;;  %6253 = vmatpush3.msra.mxu0 %v436_v19  ;;  %6254 = vmatprep.mubr.msk.f32.mxu0 %vm7330_vm2, %v7329_v6  ;;  %v1033_v19 = vadd.f32 %v7634_v24, %v7639_v27 }
 0x3d6   :  { %v614_v59 = vmul.f32 %v7240_v58, %v7236_v44  ;;  %6796 = vmatprep.subr.bf16.mxu0 %v6795_v55  ;;  %v5447_v44 = vld [vmem:[%s8954_s9 + $0x28] sm:$0xff] }
 0x3d7   :  { %v6827_v47 = vpack.c.bf16 %v5447_v44, %v5446_v43  ;;  %v1700_v43 = vld [vmem:[%s8962_s17 + $0x8] sm:$0xff]  ;;  %v1717_v44 = vld [vmem:[%s8962_s17 + $0x90] sm:$0xff] }
 0x3d8   :  { %6255 = vmatmul.mubr.msk.f32.vlgmr.msra.gmra.mrb[10].mxu0 %vm592_vm4, %v614_v59 }
 0x3d9   :  { %6798 = vmatpush3.bf16.msra.mxu0 %v6795_v55  ;;  %6292 = vmatprep.mubr.msk.f32.mxu0 %vm177_vm1, %v7520_v37 }
 0x3da   :  { %6800 = vmatprep.subr.bf16.mxu0 %v6799_v60 }
 0x3dd   :  { %6802 = vmatpush3.bf16.msra.mxu0 %v6799_v60 }
 0x3de   :  { %6804 = vmatprep.subr.bf16.mxu0 %v6803_v63 }
 0x3e1   :  { %6806 = vmatpush3.bf16.msra.mxu0 %v6803_v63 }
 0x3e2   :  { %6808 = vmatprep.subr.bf16.mxu0 %v6807_v2 }
 0x3e5   :  { %6810 = vmatpush3.bf16.msra.mxu0 %v6807_v2 }
 0x3e6   :  { %6314 = vmatprep.subr.mxu0 %v7329_v6 }
 0x3e8   :  { %6293 = vmatmul.mubr.msk.f32.vlgmr.msra.gmra.mrb[12].mxu0 %vm177_vm1, %v7522_v38 }
 0x3e9   :  { %6316 = vmatprep.mubr.msk.f32.mxu0 %vm7330_vm2, %v7329_v6 }
 0x4a7   :  { %v684_v7 = vpop.f32.mrb[8].mxu0 }
 0x4a8   :  { %v6251_v8 = vpop.f32.mrb[9].mxu0  ;;  %6353 = vmatprep.mubr.msk.f32.mxu1 %vm439_vm3, %v684_v7 }
 0x4ab   :  { %v757_v9 = vpop.f32.mrb[10].mxu0 }
 0x4ac   :  { %v6256_v10 = vpop.f32.mrb[11].mxu0  ;;  %6354 = vmatmul.mubr.msk.f32.vlgmr.msra.gmra.mrb[8].mxu1 %vm439_vm3, %v757_v9 }
 0x4bb   :  { %v6294_v12 = vpop.f32.mrb[12].mxu0 }
 0x4bc   :  { %v940_v13 = vpop.f32.mrb[13].mxu0  ;;  %v946_v17 = vadd.f32 %v6294_v12, %v5425_v11  ;;  %v1585_v12 = vld [vmem:[%s8960_s15 + $0x8] sm:$0xff] }
 0x4bd   :  { %v941_v15 = vadd.f32 %v5425_v11, %v940_v13  ;;  %v1587_v13 = vld [vmem:[%s8960_s15 + $0x18] sm:$0xff] }
 0x4be   :  { %v6843_v14 = vpack.c.bf16 %v1587_v13, %v1585_v12 }
 0x4bf   :  { %6315 = vmatpush3.xpose.msk.msra.mxu0 %vm439_vm3, %v941_v15  ;;  %v1584_v15 = vld [vmem:[%s8960_s15] sm:$0xff] }
 0x4c0   :  { %6319 = vmatprep.subr.mxu0 %v7329_v6 }
 0x4c2   :  { %6317 = vmatmul.mubr.msk.f32.vlgmr.msra.gmra.mrb[14].mxu0 %vm439_vm3, %v849_v16  ;;  %v1586_v16 = vld [vmem:[%s8960_s15 + $0x10] sm:$0xff] }
 0x4c3   :  { %6320 = vmatpush3.xpose.msk.msra.mxu0 %vm439_vm3, %v946_v17  ;;  %6321 = vmatprep.mubr.msk.f32.mxu0 %vm7330_vm2, %v7329_v6  ;;  %v6845_v17 = vpack.c.bf16 %v1586_v16, %v1584_v15 }
 0x4c4   :  { %6324 = vmatprep.subr.mxu0 %v7329_v6 }
 0x4c6   :  { %6322 = vmatmul.mubr.msk.f32.vlgmr.msra.gmra.mrb[16].mxu0 %vm439_vm3, %v854_v18  ;;  %v1589_v18 = vld [vmem:[%s8960_s15 + $0x28] sm:$0xff] }
 0x4c7   :  { %6325 = vmatpush3.msra.mxu0 %v1033_v19  ;;  %6326 = vmatprep.mubr.msk.f32.mxu0 %vm7330_vm2, %v7329_v6  ;;  %v1591_v19 = vld [vmem:[%s8960_s15 + $0x38] sm:$0xff] }
 0x4c8   :  { %6329 = vmatprep.subr.mxu0 %v7329_v6 }
 0x57f   :  { %v6355_v20 = vpop.f32.mrb[8].mxu1 }
 0x580   :  { %v1519_v21 = vpop.f32.mrb[9].mxu1 }
 0x595   :  { %v1113_v23 = vpop.f32.mrb[14].mxu0 }
 0x596   :  { %v6318_v25 = vpop.f32.mrb[15].mxu0  ;;  %v1193_v28 = vsel %vm592_vm4, %v1113_v23, -inf }
 0x597   :  { %1194 = vmax.xlane.f32.xlu0 %v1193_v28  ;;  %v1593_v28 = vld [vmem:[%s8960_s15 + $0x48] sm:$0xff] }
 0x599   :  { %v1189_v22 = vpop.f32.mrb[16].mxu0 }
 0x59a   :  { %v6323_v29 = vpop.f32.mrb[17].mxu0  ;;  %v1196_v30 = vsel %vm592_vm4, %v1189_v22, -inf }
 0x59b   :  { %1197 = vmax.xlane.f32.xlu1 %v1196_v30  ;;  %v1592_v30 = vld [vmem:[%s8960_s15 + $0x40] sm:$0xff] }
 0x624   :  { %v1195_v24 = vpop.xlane.xlu0 %1194 }
 0x625   :  { %v1199_v27 = vsub.f32 %v1113_v23, %v1195_v24  ;;  %v1590_v23 = vld [vmem:[%s8960_s15 + $0x30] sm:$0xff] }
 0x626   :  { %v1594_v24 = vld [vmem:[%s8960_s15 + $0x50] sm:$0xff] }
 0x627   :  { %v1201_v31 = vmul.f32 1.442695, %v1199_v27  ;;  %v6853_v27 = vpack.c.bf16 %v1594_v24, %v1592_v30 }
 0x628   :  { %v1198_v32 = vpop.xlane.xlu1 %1197 }
 0x629   :  { %7241 = vpow2.f32 %v1201_v31  ;;  %v1200_v33 = vsub.f32 %v1189_v22, %v1198_v32  ;;  %v1595_v22 = vld [vmem:[%s8960_s15 + $0x58] sm:$0xff]  ;;  %v1597_v31 = vld [vmem:[%s8960_s15 + $0x68] sm:$0xff] }
 0x62a   :  { %v6851_v29 = vpack.c.bf16 %v1595_v22, %v1593_v28  ;;  %v1599_v32 = vld [vmem:[%s8960_s15 + $0x78] sm:$0xff]  ;;  %v5456_v22 = vld [vmem:[%s8957_s12] ss:$0 sm:$0xff] }
 0x62b   :  { %v1203_v34 = vmul.f32 1.442695, %v1200_v33  ;;  %v1596_v33 = vld [vmem:[%s8960_s15 + $0x60] sm:$0xff] }
 0x62d   :  { %7243 = vpow2.f32 %v1203_v34  ;;  %v6855_v34 = vpack.c.bf16 %v1599_v32, %v1597_v31  ;;  %v1729_v32 = vld [vmem:[%s8962_s17 + $0xf0] sm:$0xff] }
 0x633   :  { %v7242_v35 = vpop.eup %7241 }
 0x634   :  { %v1205_v36 = vsel %vm592_vm4, %v7242_v35, 0.0 }
 0x635   :  { %1206 = vadd.xlane.f32.xlu0 %v1205_v36 }
 0x637   :  { %v7244_v39 = vpop.eup %7243 }
 0x638   :  { %v1208_v40 = vsel %vm592_vm4, %v7244_v39, 0.0 }
 0x639   :  { %1209 = vadd.xlane.f32.xlu1 %v1208_v40  ;;  %v1716_v40 = vld [vmem:[%s8962_s17 + $0x88] sm:$0xff] }
 0x6c2   :  { %v1207_v41 = vpop.xlane.xlu0 %1206 }
 0x6c3   :  { %7245 = vrcp.f32 %v1207_v41  ;;  %v1699_v41 = vld [vmem:[%s8962_s17] sm:$0xff] }
 0x6c6   :  { %v1210_v42 = vpop.xlane.xlu1 %1209 }
 0x6c7   :  { %7247 = vrcp.f32 %v1210_v42 }
 0x6cd   :  { %v7246_v45 = vpop.eup %7245 }
 0x6ce   :  { %v1213_v46 = vmul.f32 %v7246_v45, %v7242_v35  ;;  %v1598_v35 = vld [vmem:[%s8960_s15 + $0x70] sm:$0xff]  ;;  %v1718_v45 = vld [vmem:[%s8962_s17 + $0x98] sm:$0xff] }
 0x6cf   :  { %v6857_v36 = vpack.c.bf16 %v1598_v35, %v1596_v33  ;;  %v1730_v33 = vld [vmem:[%s8962_s17 + $0xf8] sm:$0xff]  ;;  %v1713_v35 = vld [vmem:[%s8962_s17 + $0x70] sm:$0xff] }
 0x6d0   :  { %6327 = vmatmul.mubr.msk.f32.vlgmr.msra.gmra.mrb[18].mxu0 %vm592_vm4, %v1213_v46  ;;  %v6861_v46 = vpack.c.bf16 %v1700_v43, %v1699_v41  ;;  %v1600_v43 = vld [vmem:[%s8961_s16] sm:$0x3] }
 0x6d1   :  { %v7248_v48 = vpop.eup %7247  ;;  %6330 = vmatpush3.msra.mxu0 %v7637_v26  ;;  %6331 = vmatprep.mubr.msk.f32.mxu0 %vm7330_vm2, %v7329_v6 }
 0x6d2   :  { %v1214_v49 = vmul.f32 %v7248_v48, %v7244_v39  ;;  %6828 = vmatprep.subr.bf16.mxu0 %v6827_v47  ;;  %v1715_v39 = vld [vmem:[%s8962_s17 + $0x80] sm:$0xff]  ;;  %v1701_v48 = vld [vmem:[%s8962_s17 + $0x10] sm:$0xff] }
 0x6d3   :  { %v6859_v42 = vpack.c.bf16 %v1716_v40, %v1715_v39  ;;  %v1602_v40 = vlaneseq }
 0x6d4   :  { %6332 = vmatmul.mubr.msk.f32.vlgmr.msra.gmra.mrb[20].mxu0 %vm592_vm4, %v1214_v49  ;;  %v1702_v49 = vld [vmem:[%s8962_s17 + $0x18] sm:$0xff] }
 0x6d5   :  { %6830 = vmatpush3.bf16.msra.mxu0 %v6827_v47  ;;  %v6863_v47 = vpack.c.bf16 %v1718_v45, %v1717_v44  ;;  %6860 = vmatprep.subr.bf16.mxu1 %v6859_v42  ;;  %v1603_v41 = vshrl.u32 %v1602_v40, 7 }
 0x6d6   :  { %6832 = vmatprep.subr.bf16.mxu0 %v6831_v52  ;;  %6862 = vmatpush3.bf16.msra.mxu1 %v6861_v46 }
 0x6d7   :  { %6864 = vmatprep.subr.bf16.mxu1 %v6863_v47  ;;  %v7911_v42 = vsub.s32 0, %v1603_v41  ;;  %v7916_v44 = vsub.s32 1, %v1603_v41  ;;  %v5493_v41 = vld [vmem:[%s8982_s29 + $0xb8] sm:$0xff] }
 0x6d9   :  { %6834 = vmatpush3.bf16.msra.mxu0 %v6831_v52  ;;  %v6865_v52 = vpack.c.bf16 %v1702_v49, %v1701_v48  ;;  %v1605_v45 = vrot.slane %v1600_v43, %v7911_v42  ;;  %v1609_v46 = vrot.slane %v1600_v43, %v7916_v44 }
 0x6da   :  { %6844 = vmatprep.subr.bf16.mxu0 %v6843_v14 }
 0x6db   :  { %6866 = vmatpush3.bf16.msra.mxu1 %v6865_v52 }
 0x7a3   :  { %v1284_v26 = vpop.f32.mrb[18].mxu0 }
 0x7a4   :  { %v6328_v53 = vpop.f32.mrb[19].mxu0  ;;  %6342 = vmatprep.mubr.msk.f32.mxu0 %vm439_vm3, %v1284_v26  ;;  %v6867_v26 = vpack.c.bf16 %v1720_v51, %v1719_v50 }
 0x7a5   :  { %v1703_v53 = vld [vmem:[%s8962_s17 + $0x20] sm:$0xff] }
 0x7a6   :  { %6868 = vmatprep.subr.bf16.mxu1 %v6867_v26 }
 0x7a7   :  { %v1357_v54 = vpop.f32.mrb[20].mxu0 }
 0x7a8   :  { %v6333_v55 = vpop.f32.mrb[21].mxu0  ;;  %6343 = vmatmul.mubr.msk.f32.vlgmr.msra.gmra.mrb[22].mxu0 %vm439_vm3, %v1357_v54  ;;  %v1704_v54 = vld [vmem:[%s8962_s17 + $0x28] sm:$0xff] }
 0x7a9   :  { %1682 = vmatprep.mubr.f32.mxu0 %v7329_v6  ;;  %6846 = vmatpush1.bf16.msra.mxu0 %v6845_v17  ;;  %v1721_v55 = vld [vmem:[%s8962_s17 + $0xb0] sm:$0xff] }
 0x87b   :  { %v6344_v56 = vpop.f32.mrb[22].mxu0 }
 0x87c   :  { %v1525_v58 = vadd.f32 %v6355_v20, %v6344_v56  ;;  %v1438_v59 = vpop.f32.mrb[23].mxu0  ;;  %v6847_v20 = vpack.c.bf16 %v1591_v19, %v1589_v18  ;;  %v1722_v56 = vld [vmem:[%s8962_s17 + $0xb8] sm:$0xff] }
 0x87d   :  { %v1520_v60 = vadd.f32 %v1519_v21, %v1438_v59  ;;  %v1588_v21 = vld [vmem:[%s8960_s15 + $0x20] sm:$0xff]  ;;  %v1705_v59 = vld [vmem:[%s8962_s17 + $0x30] sm:$0xff] }
 0x87e   :  { %v1536_v61 = vadd.f32 %v5454_v57, %v1525_v58  ;;  %v6849_v25 = vpack.c.bf16 %v1590_v23, %v1588_v21  ;;  %6848 = vmatprep.subr.bf16.mxu0 %v6847_v20  ;;  %v6871_v58 = vpack.c.bf16 %v1722_v56, %v1721_v55  ;;  %v5455_v23 = vld [vmem:[%s8956_s11] ss:$0 sm:$0xff] }
 0x87f   :  { %v1535_v62 = vadd.f32 %v5454_v57, %v1520_v60  ;;  %v6869_v57 = vpack.c.bf16 %v1704_v54, %v1703_v53  ;;  %v1706_v60 = vld [vmem:[%s8962_s17 + $0x38] sm:$0xff] }
 0x880   :  { %v1538_v63 = vadd.f32 %v1536_v61, %v7522_v38  ;;  %6850 = vmatpush1.bf16.msra.mxu0 %v6849_v25  ;;  %v1723_v61 = vld [vmem:[%s8962_s17 + $0xc0] sm:$0xff] }
 0x881   :  { %v1537_v0 = vadd.f32 %v1535_v62, %v7520_v37  ;;  %6852 = vmatprep.subr.bf16.mxu0 %v6851_v29  ;;  %v1724_v62 = vld [vmem:[%s8962_s17 + $0xc8] sm:$0xff]  ;;  %6870 = vmatpush3.bf16.msra.mxu1 %v6869_v57 }
 0x882   :  { %v1544_v1 = vsel %vm177_vm1, %v1538_v63, 0.0  ;;  %6872 = vmatprep.subr.bf16.mxu1 %v6871_v58 }
 0x883   :  { %1545 = vadd.xlane.f32.xlu1 %v1544_v1  ;;  %v1541_v2 = vsel %vm177_vm1, %v1537_v0, 0.0  ;;  %v1707_v1 = vld [vmem:[%s8962_s17 + $0x40] sm:$0xff] }
 0x884   :  { %1542 = vadd.xlane.f32.xlu0 %v1541_v2  ;;  %6854 = vmatpush1.bf16.msra.mxu0 %v6853_v27  ;;  %v1708_v2 = vld [vmem:[%s8962_s17 + $0x48] sm:$0xff] }
 0x885   :  { %6856 = vmatprep.subr.bf16.mxu0 %v6855_v34  ;;  %v6887_v34 = vpack.c.bf16 %v1730_v33, %v1729_v32  ;;  %v5491_v33 = vld [vmem:[%s8982_s29 + $0xa8] sm:$0xff] }
 0x888   :  { %6858 = vmatpush1.bf16.msra.mxu0 %v6857_v36  ;;  %v1714_v36 = vld [vmem:[%s8962_s17 + $0x78] sm:$0xff] }
 0x889   :  { %v6889_v39 = vpack.c.bf16 %v1714_v36, %v1713_v35  ;;  %v5468_v35 = vld [vmem:[%s8980_s5 + $0xb0] sm:$0xff]  ;;  %v5469_v36 = vld [vmem:[%s8980_s5 + $0xb8] sm:$0xff] }
 0x88a   :  { %v6903_v40 = vpack.c.bf16 %v5469_v36, %v5468_v35 }
 0x910   :  { %v1546_v3 = vpop.xlane.xlu1 %1545 }
 0x911   :  { %v1549_v4 = vmul.f32 0.015625, %v1546_v3  ;;  %v1543_v5 = vpop.xlane.xlu0 %1542  ;;  %v1725_v3 = vld [vmem:[%s8962_s17 + $0xd0] sm:$0xff] }
 0x912   :  { %v1548_v7 = vmul.f32 0.015625, %v1543_v5  ;;  %v6877_v5 = vpack.c.bf16 %v1708_v2, %v1707_v1 }
 0x913   :  { %v7746_v8 = vsub.f32 %v1538_v63, %v1549_v4  ;;  %v6873_v63 = vpack.c.bf16 %v1706_v60, %v1705_v59  ;;  %v1726_v4 = vld [vmem:[%s8962_s17 + $0xd8] sm:$0xff]  ;;  %v5459_v59 = vld [vmem:[%s8963_s18] ss:$0 sm:$0xff] }
 0x914   :  { %v7748_v9 = vsub.f32 %v1537_v0, %v1548_v7  ;;  %v6875_v0 = vpack.c.bf16 %v1724_v62, %v1723_v61  ;;  %v6879_v7 = vpack.c.bf16 %v1726_v4, %v1725_v3 }
 0x915   :  { %v1553_v10 = vmul.f32 %v7746_v8, %v7746_v8  ;;  %6874 = vmatpush3.bf16.msra.mxu1 %v6873_v63 }
 0x916   :  { %v1552_v37 = vmul.f32 %v7748_v9, %v7748_v9  ;;  %6876 = vmatprep.subr.bf16.mxu1 %v6875_v0 }
 0x917   :  { %v1557_v38 = vsel %vm177_vm1, %v1553_v10, 0.0  ;;  %v1709_v10 = vld [vmem:[%s8962_s17 + $0x50] sm:$0xff] }
 0x918   :  { %1558 = vadd.xlane.f32.xlu1 %v1557_v38  ;;  %v1554_v11 = vsel %vm177_vm1, %v1552_v37, 0.0  ;;  %v1710_v37 = vld [vmem:[%s8962_s17 + $0x58] sm:$0xff]  ;;  %v1727_v38 = vld [vmem:[%s8962_s17 + $0xe0] sm:$0xff] }
 0x919   :  { %1555 = vadd.xlane.f32.xlu0 %v1554_v11  ;;  %v1728_v11 = vld [vmem:[%s8962_s17 + $0xe8] sm:$0xff]  ;;  %6878 = vmatpush3.bf16.msra.mxu1 %v6877_v5  ;;  %v6881_v12 = vpack.c.bf16 %v1710_v37, %v1709_v10 }
 0x91a   :  { %6880 = vmatprep.subr.bf16.mxu1 %v6879_v7  ;;  %v6883_v13 = vpack.c.bf16 %v1728_v11, %v1727_v38 }
 0x91d   :  { %6882 = vmatpush3.bf16.msra.mxu1 %v6881_v12 }
 0x91e   :  { %6884 = vmatprep.subr.bf16.mxu1 %v6883_v13 }
 0x9a5   :  { %v1559_v14 = vpop.xlane.xlu1 %1558 }
 0x9a6   :  { %v1561_v15 = vmul.f32 0.015625, %v1559_v14  ;;  %v1556_v16 = vpop.xlane.xlu0 %1555 }
 0x9a7   :  { %v1560_v17 = vmul.f32 0.015625, %v1556_v16 }
 0x9a8   :  { %v1563_v18 = vadd.f32 1e-05, %v1561_v15 }
 0x9a9   :  { %v1562_v19 = vadd.f32 1e-05, %v1560_v17 }
 0x9aa   :  { %7249 = vrsqrt.f32 %v1563_v18  ;;  %v5462_v18 = vld [vmem:[%s8980_s5 + $0x80] sm:$0xff] }
 0x9ab   :  { %7251 = vrsqrt.f32 %v1562_v19  ;;  %v5463_v19 = vld [vmem:[%s8980_s5 + $0x88] sm:$0xff] }
 0x9b4   :  { %v7250_v20 = vpop.eup %7249 }
 0x9b5   :  { %v7252_v21 = vpop.eup %7251  ;;  %v1567_v28 = vmul.f32 %v7250_v20, %v7746_v8  ;;  %v1712_v8 = vld [vmem:[%s8962_s17 + $0x68] sm:$0xff]  ;;  %v5486_v20 = vld [vmem:[%s8982_s29 + $0x80] sm:$0xff] }
 0x9b6   :  { %v1566_v25 = vmul.f32 %v7252_v21, %v7748_v9  ;;  %v1711_v9 = vld [vmem:[%s8962_s17 + $0x60] sm:$0xff]  ;;  %v6891_v21 = vpack.c.bf16 %v5463_v19, %v5462_v18  ;;  %v5515_v18 = vld [vmem:[%s8980_s5 + $0xf8] sm:$0xff] }
 0x9b7   :  { %v1575_v24 = vmul.f32 %v5455_v23, %v1567_v28  ;;  %v6885_v31 = vpack.c.bf16 %v1712_v8, %v1711_v9  ;;  %v5464_v28 = vld [vmem:[%s8980_s5 + $0x90] sm:$0xff]  ;;  %v5466_v9 = vld [vmem:[%s8980_s5 + $0xa0] sm:$0xff]  ;;  %v5467_v8 = vld [vmem:[%s8980_s5 + $0xa8] sm:$0xff] }
 0x9b8   :  { %v1574_v29 = vmul.f32 %v5455_v23, %v1566_v25  ;;  %v5487_v23 = vld [vmem:[%s8982_s29 + $0x88] sm:$0xff]  ;;  %6892 = vmatprep.subr.bf16.mxu0 %v6891_v21  ;;  %v6899_v32 = vpack.c.bf16 %v5467_v8, %v5466_v9  ;;  %v5538_v9 = vld [vmem:[%s8982_s29 + $0xf0] sm:$0xff]  ;;  %v5539_v8 = vld [vmem:[%s8982_s29 + $0xf8] sm:$0xff] }
 0x9b9   :  { %v1583_v27 = vadd.f32 %v5456_v22, %v1575_v24  ;;  %6886 = vmatpush3.bf16.msra.mxu1 %v6885_v31  ;;  %v6923_v25 = vpack.c.bf16 %v5487_v23, %v5486_v20  ;;  %v5489_v24 = vld [vmem:[%s8982_s29 + $0x98] sm:$0xff]  ;;  %v5490_v31 = vld [vmem:[%s8982_s29 + $0xa0] sm:$0xff]  ;;  %v5533_v23 = vld [vmem:[%s8982_s29 + $0xc8] sm:$0xff] }
 0x9ba   :  { %v1582_v30 = vadd.f32 %v5456_v22, %v1574_v29  ;;  %6888 = vmatprep.subr.bf16.mxu1 %v6887_v34  ;;  %v5465_v22 = vld [vmem:[%s8980_s5 + $0x98] sm:$0xff]  ;;  %v5488_v29 = vld [vmem:[%s8982_s29 + $0x90] sm:$0xff]  ;;  %v6931_v34 = vpack.c.bf16 %v5491_v33, %v5490_v31  ;;  %v6983_v31 = vpack.c.bf16 %v5539_v8, %v5538_v9 }
 0x9bc   :  { %5457 = vmatmul.mubr.msk.f32.vlgmr.msra.gmra.mrb[24].mxu0 %vm177_vm1, %v1582_v30 }
 0x9bd   :  { %1688 = vmatprep.mubr.f32.mxu0 %v7329_v6  ;;  %6890 = vmatpush3.bf16.msra.mxu1 %v6889_v39  ;;  %v5492_v39 = vld [vmem:[%s8982_s29 + $0xb0] sm:$0xff] }
 0x9be   :  { %6924 = vmatprep.subr.bf16.mxu1 %v6923_v25  ;;  %6894 = vmatpush3.bf16.msra.mxu0 %v6891_v21  ;;  %v6935_v43 = vpack.c.bf16 %v5493_v41, %v5492_v39  ;;  %v5532_v21 = vld [vmem:[%s8982_s29 + $0xc0] sm:$0xff] }
 0x9c0   :  { %5458 = vmatmul.mubr.msk.f32.gmra.mrb[26].mxu0 %vm177_vm1, %v1583_v27 }
 0xa8f   :  { %v1684_v47 = vpop.f32.mrb[24].mxu0 }
 0xa90   :  { %v1685_v48 = vadd.f32 %v1684_v47, %v1605_v45  ;;  %v1686_v49 = vpop.f32.mrb[25].mxu0  ;;  %v5508_v47 = vld [vmem:[%s8980_s5 + $0xc0] sm:$0xff] }
 0xa91   :  { %v1687_v50 = vadd.f32 %v1686_v49, %v1609_v46  ;;  %v5509_v49 = vld [vmem:[%s8980_s5 + $0xc8] sm:$0xff] }
 0xa92   :  { %v1695_v26 = vmax.f32 %v1685_v48, 0.0 }
 0xa93   :  { %v1696_v51 = vmax.f32 %v1687_v50, 0.0  ;;  %v1690_v52 = vpop.f32.mrb[26].mxu0  ;;  %v6939_v50 = vpack.c.bf16 %v5509_v49, %v5508_v47  ;;  %v5471_v47 = vld [vmem:[%s8951_s6 + $0x2] ss:$0 sm:$0xff] }
 0xa94   :  { %v1691_v53 = vadd.f32 %v1690_v52, %v1605_v45  ;;  %v1692_v54 = vpop.f32.mrb[27].mxu0  ;;  %v5474_v45 = vld [vmem:[%s8981_s2 + $0x80] sm:$0xff] }
 0xa95   :  { %v1693_v55 = vadd.f32 %v1692_v54, %v1609_v46  ;;  %1802 = vmatprep.mubr.f32.mxu1 %v1696_v51  ;;  %v5475_v46 = vld [vmem:[%s8981_s2 + $0x88] sm:$0xff] }
 0xa96   :  { %1803 = vmatmul.mubr.f32.vlgmr.msra.gmra.mrb[10].mxu1 %v1695_v26  ;;  %v1697_v57 = vmax.f32 %v1691_v53, 0.0  ;;  %v6907_v48 = vpack.c.bf16 %v5475_v46, %v5474_v45 }
 0xa97   :  { %v1698_v56 = vmax.f32 %v1693_v55, 0.0  ;;  %6926 = vmatpush3.bf16.msra.mxu1 %v6923_v25  ;;  %v6971_v25 = vpack.c.bf16 %v5533_v23, %v5532_v21 }
 0xa99   :  { %1807 = vmatprep.mubr.f32.mxu1 %v1698_v56 }
 0xa9a   :  { %1808 = vmatmul.mubr.f32.gmra.mrb[12].mxu1 %v1697_v57  ;;  %v5460_v57 = vld [vmem:[%s8958_s13] ss:$0 sm:$0xff] }
 0xb69   :  { %v5906_v58 = vpop.f32.mrb[10].mxu1 }
 0xb6a   :  { %v5907_v60 = vpop.f32.mrb[11].mxu1 }
 0xb6b   :  { %v5908_v61 = vadd.f32 %v5907_v60, %v5906_v58 }
 0xb6d   :  { %v1805_v62 = vadd.f32 %v5908_v61, %v5459_v59  ;;  %v5909_v63 = vpop.f32.mrb[12].mxu1 }
 0xb6e   :  { %v5910_v0 = vpop.f32.mrb[13].mxu1 }
 0xb6f   :  { %v5911_v1 = vadd.f32 %v5910_v0, %v5909_v63  ;;  %v1813_v2 = vadd.f32 %v1805_v62, %v1582_v30  ;;  %v6895_v30 = vpack.c.bf16 %v5465_v22, %v5464_v28  ;;  %v5476_v0 = vld [vmem:[%s8981_s2 + $0x90] sm:$0xff]  ;;  %v5535_v22 = vld [vmem:[%s8982_s29 + $0xd8] sm:$0xff] }
 0xb70   :  { %v5534_v28 = vld [vmem:[%s8982_s29 + $0xd0] sm:$0xff] }
 0xb71   :  { %v1810_v3 = vadd.f32 %v5911_v1, %v5459_v59  ;;  %v1817_v4 = vsel %vm177_vm1, %v1813_v2, 0.0  ;;  %6896 = vmatprep.subr.bf16.mxu0 %v6895_v30  ;;  %v5461_v59 = vld [vmem:[%s8959_s14] ss:$0 sm:$0xff] }
 0xb72   :  { %1818 = vadd.xlane.f32.xlu0 %v1817_v4  ;;  %6898 = vmatpush3.bf16.msra.mxu0 %v6895_v30  ;;  %v5511_v4 = vld [vmem:[%s8980_s5 + $0xd8] sm:$0xff]  ;;  %v5536_v30 = vld [vmem:[%s8982_s29 + $0xe0] sm:$0xff] }
 0xb73   :  { %v1814_v5 = vadd.f32 %v1810_v3, %v1583_v27  ;;  %v6927_v27 = vpack.c.bf16 %v5489_v24, %v5488_v29  ;;  %6900 = vmatprep.subr.bf16.mxu0 %v6899_v32  ;;  %v5510_v3 = vld [vmem:[%s8980_s5 + $0xd0] sm:$0xff]  ;;  %v6975_v29 = vpack.c.bf16 %v5535_v22, %v5534_v28  ;;  %v5537_v24 = vld [vmem:[%s8982_s29 + $0xe8] sm:$0xff] }
 0xb74   :  { %v5525_v28 = vld [vmem:[%s8981_s2 + $0xe8] sm:$0xff] }
 0xb75   :  { %v1820_v7 = vsel %vm177_vm1, %v1814_v5, 0.0  ;;  %6928 = vmatprep.subr.bf16.mxu1 %v6927_v27 }
 0xb76   :  { %1821 = vadd.xlane.f32.xlu1 %v1820_v7  ;;  %6930 = vmatpush3.bf16.msra.mxu1 %v6927_v27  ;;  %v5478_v7 = vld [vmem:[%s8981_s2 + $0xa0] sm:$0xff]  ;;  %v6979_v27 = vpack.c.bf16 %v5537_v24, %v5536_v30  ;;  %v5527_v30 = vld [vmem:[%s8981_s2 + $0xf8] sm:$0xff] }
 0xb77   :  { %6932 = vmatprep.subr.bf16.mxu1 %v6931_v34  ;;  %6902 = vmatpush3.bf16.msra.mxu0 %v6899_v32  ;;  %v5495_v32 = vld [vmem:[%s8953_s8 + $0x2] ss:$0 sm:$0xff] }
 0xb78   :  { %6904 = vmatprep.subr.bf16.mxu0 %v6903_v40 }
 0xb7a   :  { %6934 = vmatpush3.bf16.msra.mxu1 %v6931_v34 }
 0xb7b   :  { %6936 = vmatprep.subr.bf16.mxu1 %v6935_v43  ;;  %6906 = vmatpush3.bf16.msra.mxu0 %v6903_v40  ;;  %v5483_v40 = vld [vmem:[%s8952_s7 + $0x2] ss:$0 sm:$0xff] }
 0xb7c   :  { %6908 = vmatprep.subr.bf16.mxu0 %v6907_v48 }
 0xb7e   :  { %6938 = vmatpush3.bf16.msra.mxu1 %v6935_v43 }
 0xb7f   :  { %6940 = vmatprep.subr.bf16.mxu1 %v6939_v50 }
 0xbff   :  { %v1819_v10 = vpop.xlane.xlu0 %1818 }
 0xc00   :  { %v1823_v37 = vmul.f32 0.015625, %v1819_v10 }
 0xc02   :  { %v7925_v38 = vsub.f32 %v1813_v2, %v1823_v37  ;;  %v5477_v2 = vld [vmem:[%s8981_s2 + $0x98] sm:$0xff]  ;;  %v6943_v37 = vpack.c.bf16 %v5511_v4, %v5510_v3 }
 0xc03   :  { %v1822_v11 = vpop.xlane.xlu1 %1821  ;;  %v6911_v10 = vpack.c.bf16 %v5477_v2, %v5476_v0 }
 0xc04   :  { %v1824_v12 = vmul.f32 0.015625, %v1822_v11  ;;  %v1827_v13 = vmul.f32 %v7925_v38, %v7925_v38  ;;  %v5512_v11 = vld [vmem:[%s8980_s5 + $0xe0] sm:$0xff] }
 0xc06   :  { %v7929_v14 = vsub.f32 %v1814_v5, %v1824_v12  ;;  %v1829_v15 = vsel %vm177_vm1, %v1827_v13, 0.0  ;;  %v5513_v12 = vld [vmem:[%s8980_s5 + $0xe8] sm:$0xff] }
 0xc07   :  { %1830 = vadd.xlane.f32.xlu0 %v1829_v15  ;;  %v5480_v15 = vld [vmem:[%s8981_s2 + $0xb0] sm:$0xff] }
 0xc08   :  { %v1828_v16 = vmul.f32 %v7929_v14, %v7929_v14 }
 0xc0a   :  { %v1832_v17 = vsel %vm177_vm1, %v1828_v16, 0.0  ;;  %v5481_v16 = vld [vmem:[%s8981_s2 + $0xb8] sm:$0xff] }
 0xc0b   :  { %1833 = vadd.xlane.f32.xlu1 %v1832_v17  ;;  %v5514_v17 = vld [vmem:[%s8980_s5 + $0xf0] sm:$0xff]  ;;  %v6919_v19 = vpack.c.bf16 %v5481_v16, %v5480_v15 }
 0xc0c   :  { %v6951_v20 = vpack.c.bf16 %v5515_v18, %v5514_v17  ;;  %v5522_v18 = vld [vmem:[%s8981_s2 + $0xd0] sm:$0xff] }
 0xc94   :  { %v1831_v51 = vpop.xlane.xlu0 %1830 }
 0xc95   :  { %v1835_v52 = vmul.f32 0.015625, %v1831_v51 }
 0xc97   :  { %v1837_v26 = vadd.f32 1e-05, %v1835_v52 }
 0xc98   :  { %v1834_v53 = vpop.xlane.xlu1 %1833 }
 0xc99   :  { %7253 = vrsqrt.f32 %v1837_v26  ;;  %v1836_v54 = vmul.f32 0.015625, %v1834_v53  ;;  %v8117_v26 = vld [vmem:[%s8953_s8 + $0x3] ss:$0 sm:$0xff] }
 0xc9b   :  { %v1838_v55 = vadd.f32 1e-05, %v1836_v54 }
 0xc9d   :  { %7255 = vrsqrt.f32 %v1838_v55 }
 0xca3   :  { %v7254_v56 = vpop.eup %7253 }
 0xca4   :  { %v1841_v58 = vmul.f32 %v7254_v56, %v7925_v38  ;;  %v5479_v38 = vld [vmem:[%s8981_s2 + $0xa8] sm:$0xff] }
 0xca5   :  { %v6915_v13 = vpack.c.bf16 %v5479_v38, %v5478_v7 }
 0xca6   :  { %v1849_v60 = vmul.f32 %v5460_v57, %v1841_v58 }
 0xca7   :  { %v7256_v61 = vpop.eup %7255 }
 0xca8   :  { %v8002_v62 = vadd.f32 %v5461_v59, %v1849_v60  ;;  %v1842_v63 = vmul.f32 %v7256_v61, %v7929_v14  ;;  %v6947_v14 = vpack.c.bf16 %v5513_v12, %v5512_v11 }
 0xcaa   :  { %v1850_v1 = vmul.f32 %v5460_v57, %v1842_v63  ;;  %6372 = vmatprep.mubr.msk.f32.mxu0 %vm177_vm1, %v8002_v62  ;;  %6410 = vmatprep.mubr.msk.f32.mxu1 %vm177_vm1, %v8002_v62 }
 0xcac   :  { %v8021_v5 = vadd.f32 %v5461_v59, %v1850_v1 }
 0xcae   :  { %6373 = vmatmul.mubr.msk.f32.vlgmr.msra.gmra.mrb[28].mxu0 %vm177_vm1, %v8021_v5  ;;  %6411 = vmatmul.mubr.msk.f32.vlgmr.msra.gmra.mrb[14].mxu1 %vm177_vm1, %v8021_v5 }
 0xcaf   :  { %6910 = vmatpush3.bf16.msra.mxu0 %v6907_v48  ;;  %6942 = vmatpush3.bf16.msra.mxu1 %v6939_v50 }
 0xcb0   :  { %6391 = vmatprep.mubr.msk.f32.mxu0 %vm177_vm1, %v8002_v62  ;;  %6449 = vmatprep.mubr.msk.f32.mxu1 %vm177_vm1, %v8002_v62 }
 0xcb1   :  { %6912 = vmatprep.subr.bf16.mxu0 %v6911_v10  ;;  %6944 = vmatprep.subr.bf16.mxu1 %v6943_v37 }
 0xcb3   :  { %6914 = vmatpush3.bf16.msra.mxu0 %v6911_v10  ;;  %6946 = vmatpush3.bf16.msra.mxu1 %v6943_v37 }
 0xcb4   :  { %6916 = vmatprep.subr.bf16.mxu0 %v6915_v13  ;;  %6948 = vmatprep.subr.bf16.mxu1 %v6947_v14 }
 0xcb7   :  { %6918 = vmatpush3.bf16.msra.mxu0 %v6915_v13  ;;  %6950 = vmatpush3.bf16.msra.mxu1 %v6947_v14  ;;  %v5520_v13 = vld [vmem:[%s8981_s2 + $0xc0] sm:$0xff]  ;;  %v5521_v14 = vld [vmem:[%s8981_s2 + $0xc8] sm:$0xff] }
 0xcb8   :  { %6920 = vmatprep.subr.bf16.mxu0 %v6919_v19  ;;  %6952 = vmatprep.subr.bf16.mxu1 %v6951_v20  ;;  %v6955_v17 = vpack.c.bf16 %v5521_v14, %v5520_v13 }
 0xcbb   :  { %6922 = vmatpush3.bf16.msra.mxu0 %v6919_v19  ;;  %6954 = vmatpush3.bf16.msra.mxu1 %v6951_v20  ;;  %v5523_v19 = vld [vmem:[%s8981_s2 + $0xd8] sm:$0xff] }
 0xcbc   :  { %6972 = vmatprep.subr.bf16.mxu1 %v6971_v25  ;;  %6413 = vmatprep.subr.mxu0 %v7329_v6  ;;  %v6959_v23 = vpack.c.bf16 %v5523_v19, %v5522_v18 }
 0xcbe   :  { %6392 = vmatmul.mubr.msk.f32.vlgmr.msra.gmra.mrb[30].mxu0 %vm177_vm1, %v8021_v5  ;;  %6450 = vmatmul.mubr.msk.f32.vlgmr.msra.gmra.mrb[16].mxu1 %vm177_vm1, %v8021_v5 }
 0xcbf   :  { %6974 = vmatpush3.bf16.msra.mxu1 %v6971_v25  ;;  %6487 = vmatprep.mubr.msk.f32.mxu1 %vm177_vm1, %v8002_v62  ;;  %v5524_v25 = vld [vmem:[%s8981_s2 + $0xe0] sm:$0xff] }
 0xcc0   :  { %6976 = vmatprep.subr.bf16.mxu1 %v6975_v29  ;;  %6415 = vmatprep.mubr.msk.f32.mxu0 %vm7330_vm2, %v7329_v6  ;;  %v6963_v22 = vpack.c.bf16 %v5525_v28, %v5524_v25 }
 0xcc3   :  { %6978 = vmatpush3.bf16.msra.mxu1 %v6975_v29  ;;  %v5526_v29 = vld [vmem:[%s8981_s2 + $0xf0] sm:$0xff] }
 0xcc4   :  { %6980 = vmatprep.subr.bf16.mxu1 %v6979_v27  ;;  %v6967_v24 = vpack.c.bf16 %v5527_v30, %v5526_v29 }
 0xcc7   :  { %6982 = vmatpush3.bf16.msra.mxu1 %v6979_v27 }
 0xcc8   :  { %6984 = vmatprep.subr.bf16.mxu1 %v6983_v31 }
 0xccb   :  { %6986 = vmatpush3.bf16.msra.mxu1 %v6983_v31 }
 0xcce   :  { %6488 = vmatmul.mubr.msk.f32.vlgmr.msra.gmra.mrb[18].mxu1 %vm177_vm1, %v8021_v5 }
 0xd81   :  { %v6374_v33 = vpop.f32.mrb[28].mxu0  ;;  %v6412_v34 = vpop.f32.mrb[14].mxu1 }
 0xd82   :  { %v2138_v35 = vadd.f32 %v6412_v34, %v5495_v32  ;;  %v1948_v36 = vpop.f32.mrb[29].mxu0  ;;  %v2132_v39 = vpop.f32.mrb[15].mxu1  ;;  %v1954_v51 = vadd.f32 %v6374_v33, %v5471_v47 }
 0xd83   :  { %v1949_v49 = vadd.f32 %v5471_v47, %v1948_v36  ;;  %v2133_v52 = vadd.f32 %v5495_v32, %v2132_v39  ;;  %v5529_v32 = vld [vmem:[%s8952_s7 + $0x3] ss:$0 sm:$0xff] }
 0xd91   :  { %v6393_v41 = vpop.f32.mrb[30].mxu0  ;;  %v8096_v43 = vpop.f32.mrb[16].mxu1 }
 0xd92   :  { %v2040_v45 = vpop.f32.mrb[31].mxu0  ;;  %v8098_v46 = vpop.f32.mrb[17].mxu1  ;;  %v2046_v50 = vadd.f32 %v6393_v41, %v5483_v40 }
 0xd93   :  { %v2041_v48 = vadd.f32 %v5483_v40, %v2040_v45 }
 0xd95   :  { %6414 = vmatpush3.xpose.msk.msra.mxu0 %vm439_vm3, %v2041_v48 }
 0xd96   :  { %6418 = vmatprep.subr.mxu0 %v7329_v6 }
 0xd98   :  { %6416 = vmatmul.mubr.msk.f32.vlgmr.msra.gmra.mrb[32].mxu0 %vm439_vm3, %v1949_v49 }
 0xd99   :  { %6419 = vmatpush3.xpose.msk.msra.mxu0 %vm439_vm3, %v2046_v50  ;;  %6420 = vmatprep.mubr.msk.f32.mxu0 %vm7330_vm2, %v7329_v6 }
 0xd9a   :  { %6423 = vmatprep.subr.mxu0 %v7329_v6 }
 0xd9c   :  { %6421 = vmatmul.mubr.msk.f32.vlgmr.msra.gmra.mrb[34].mxu0 %vm439_vm3, %v1954_v51 }
 0xd9d   :  { %6424 = vmatpush3.msra.mxu0 %v2133_v52  ;;  %6425 = vmatprep.mubr.msk.f32.mxu0 %vm7330_vm2, %v7329_v6 }
 0xd9e   :  { %6428 = vmatprep.subr.mxu0 %v7329_v6 }
 0xda1   :  { %v6489_v53 = vpop.f32.mrb[18].mxu1 }
 0xda2   :  { %v8120_v54 = vadd.f32 %v6489_v53, %v8117_v26  ;;  %v8122_v55 = vpop.f32.mrb[19].mxu1 }
 0xda3   :  { %v2734_v45 = vadd.f32 %v8117_v26, %v8122_v55 }
 0xe6b   :  { %v2213_v56 = vpop.f32.mrb[32].mxu0 }
 0xe6c   :  { %v6417_v57 = vpop.f32.mrb[33].mxu0  ;;  %v2293_v58 = vsel %vm592_vm4, %v2213_v56, -inf }
 0xe6d   :  { %2294 = vmax.xlane.f32.xlu0 %v2293_v58 }
 0xe6f   :  { %v2289_v59 = vpop.f32.mrb[34].mxu0 }
 0xe70   :  { %v6422_v60 = vpop.f32.mrb[35].mxu0  ;;  %v2296_v61 = vsel %vm592_vm4, %v2289_v59, -inf }
 0xe71   :  { %2297 = vmax.xlane.f32.xlu1 %v2296_v61  ;;  %v5550_v61 = vld [vmem:[%s8954_s9 + $0x60] sm:$0xff] }
 0xefa   :  { %v2295_v63 = vpop.xlane.xlu0 %2294 }
 0xefb   :  { %v2299_v0 = vsub.f32 %v2213_v56, %v2295_v63  ;;  %v5551_v63 = vld [vmem:[%s8954_s9 + $0x68] sm:$0xff] }
 0xefd   :  { %v2301_v1 = vmul.f32 1.442695, %v2299_v0  ;;  %v6987_v0 = vpack.c.bf16 %v5551_v63, %v5550_v61  ;;  %v5576_v61 = vld [vmem:[%s8960_s15 + $0xe0] sm:$0xff] }
 0xefe   :  { %v2298_v2 = vpop.xlane.xlu1 %2297 }
 0xeff   :  { %7257 = vpow2.f32 %v2301_v1  ;;  %v2300_v3 = vsub.f32 %v2289_v59, %v2298_v2  ;;  %6988 = vmatprep.subr.bf16.mxu1 %v6987_v0 }
 0xf00   :  { %6990 = vmatpush3.bf16.msra.mxu1 %v6987_v0  ;;  %v5578_v0 = vld [vmem:[%s8960_s15 + $0xf0] sm:$0xff] }
 0xf01   :  { %v2303_v4 = vmul.f32 1.442695, %v2300_v3 }
 0xf03   :  { %7259 = vpow2.f32 %v2303_v4 }
 0xf09   :  { %v7258_v7 = vpop.eup %7257 }
 0xf0a   :  { %v2305_v10 = vsel %vm592_vm4, %v7258_v7, 0.0 }
 0xf0b   :  { %2306 = vadd.xlane.f32.xlu0 %v2305_v10 }
 0xf0d   :  { %v7260_v37 = vpop.eup %7259 }
 0xf0e   :  { %v2308_v38 = vsel %vm592_vm4, %v7260_v37, 0.0 }
 0xf0f   :  { %2309 = vadd.xlane.f32.xlu1 %v2308_v38  ;;  %v5553_v38 = vld [vmem:[%s8954_s9 + $0x78] sm:$0xff] }
 0xf98   :  { %v2307_v11 = vpop.xlane.xlu0 %2306 }
 0xf99   :  { %7261 = vrcp.f32 %v2307_v11 }
 0xf9c   :  { %v2310_v12 = vpop.xlane.xlu1 %2309 }
 0xf9d   :  { %7263 = vrcp.f32 %v2310_v12  ;;  %v5505_v12 = vld [vmem:[%s8954_s9 + $0x48] sm:$0xff] }
 0xfa3   :  { %v7262_v15 = vpop.eup %7261 }
 0xfa4   :  { %v2313_v16 = vmul.f32 %v7262_v15, %v7258_v7  ;;  %v5506_v15 = vld [vmem:[%s8954_s9 + $0x50] sm:$0xff] }
 0xfa6   :  { %6426 = vmatmul.mubr.msk.f32.vlgmr.msra.gmra.mrb[36].mxu0 %vm592_vm4, %v2313_v16  ;;  %v5507_v16 = vld [vmem:[%s8954_s9 + $0x58] sm:$0xff] }
 0xfa7   :  { %v7264_v20 = vpop.eup %7263  ;;  %6429 = vmatpush3.msra.mxu0 %v2138_v35  ;;  %6430 = vmatprep.mubr.msk.f32.mxu0 %vm7330_vm2, %v7329_v6  ;;  %v5517_v35 = vld [vmem:[%s8951_s6 + $0x3] ss:$0 sm:$0xff]  ;;  %v6999_v18 = vpack.c.bf16 %v5507_v16, %v5506_v15  ;;  %v5604_v15 = vld [vmem:[%s8962_s17 + $0x1a8] sm:$0xff] }
 0xfa8   :  { %v2314_v21 = vmul.f32 %v7264_v20, %v7260_v37  ;;  %6956 = vmatprep.subr.bf16.mxu0 %v6955_v17  ;;  %v2550_v39 = vadd.f32 %v5517_v35, %v8098_v46  ;;  %v2555_v41 = vadd.f32 %v8096_v43, %v5517_v35  ;;  %v5552_v37 = vld [vmem:[%s8954_s9 + $0x70] sm:$0xff] }
 0xfa9   :  { %v6991_v11 = vpack.c.bf16 %v5553_v38, %v5552_v37  ;;  %v5601_v37 = vld [vmem:[%s8962_s17 + $0x190] sm:$0xff]  ;;  %v5602_v38 = vld [vmem:[%s8962_s17 + $0x198] sm:$0xff] }
 0xfaa   :  { %6431 = vmatmul.mubr.msk.f32.vlgmr.msra.gmra.mrb[38].mxu0 %vm592_vm4, %v2314_v21  ;;  %v5559_v21 = vld [vmem:[%s8955_s10 + $0x1] ss:$0 sm:$0xff] }
 0xfab   :  { %6958 = vmatpush3.bf16.msra.mxu0 %v6955_v17  ;;  %6468 = vmatprep.mubr.msk.f32.mxu0 %vm177_vm1, %v8002_v62 }
 0xfac   :  { %6960 = vmatprep.subr.bf16.mxu0 %v6959_v23  ;;  %6992 = vmatprep.subr.bf16.mxu1 %v6991_v11 }
 0xfad   :  { %6994 = vmatpush3.bf16.msra.mxu1 %v6991_v11 }
 0xfaf   :  { %6962 = vmatpush3.bf16.msra.mxu0 %v6959_v23 }
 0xfb0   :  { %6964 = vmatprep.subr.bf16.mxu0 %v6963_v22 }
 0xfb3   :  { %6966 = vmatpush3.bf16.msra.mxu0 %v6963_v22 }
 0xfb4   :  { %6968 = vmatprep.subr.bf16.mxu0 %v6967_v24 }
 0xfb7   :  { %6970 = vmatpush3.bf16.msra.mxu0 %v6967_v24 }
 0xfb8   :  { %6490 = vmatprep.subr.mxu0 %v7329_v6 }
 0xfba   :  { %6469 = vmatmul.mubr.msk.f32.vlgmr.msra.gmra.mrb[40].mxu0 %vm177_vm1, %v8021_v5 }
 0xfbb   :  { %6492 = vmatprep.mubr.msk.f32.mxu0 %vm7330_vm2, %v7329_v6 }
0x1079   :  { %v8163_v27 = vpop.f32.mrb[36].mxu0 }
0x107a   :  { %v6427_v9 = vpop.f32.mrb[37].mxu0 }
0x107d   :  { %v8165_v8 = vpop.f32.mrb[38].mxu0 }
0x107e   :  { %v6432_v31 = vpop.f32.mrb[39].mxu0 }
0x108d   :  { %v6470_v33 = vpop.f32.mrb[40].mxu0 }
0x108e   :  { %v2641_v34 = vpop.f32.mrb[41].mxu0  ;;  %v2647_v40 = vadd.f32 %v6470_v33, %v5529_v32 }
0x108f   :  { %v2642_v36 = vadd.f32 %v5529_v32, %v2641_v34 }
0x1091   :  { %6491 = vmatpush3.xpose.msk.msra.mxu0 %vm439_vm3, %v2642_v36 }
0x1092   :  { %6495 = vmatprep.subr.mxu0 %v7329_v6 }
0x1094   :  { %6493 = vmatmul.mubr.msk.f32.vlgmr.msra.gmra.mrb[42].mxu0 %vm439_vm3, %v2550_v39  ;;  %v5565_v39 = vld [vmem:[%s8960_s15 + $0x88] sm:$0xff] }
0x1095   :  { %6496 = vmatpush3.xpose.msk.msra.mxu0 %vm439_vm3, %v2647_v40  ;;  %6497 = vmatprep.mubr.msk.f32.mxu0 %vm7330_vm2, %v7329_v6  ;;  %v5567_v40 = vld [vmem:[%s8960_s15 + $0x98] sm:$0xff] }
0x1096   :  { %6500 = vmatprep.subr.mxu0 %v7329_v6 }
0x1098   :  { %6498 = vmatmul.mubr.msk.f32.vlgmr.msra.gmra.mrb[44].mxu0 %vm439_vm3, %v2555_v41  ;;  %v7003_v41 = vpack.c.bf16 %v5567_v40, %v5565_v39  ;;  %v5611_v39 = vld [vmem:[%s8962_s17 + $0x1e0] sm:$0xff]  ;;  %v5612_v40 = vld [vmem:[%s8962_s17 + $0x1e8] sm:$0xff] }
0x1099   :  { %6501 = vmatpush3.msra.mxu0 %v2734_v45  ;;  %6502 = vmatprep.mubr.msk.f32.mxu0 %vm7330_vm2, %v7329_v6  ;;  %v5564_v45 = vld [vmem:[%s8960_s15 + $0x80] sm:$0xff] }
0x109a   :  { %6505 = vmatprep.subr.mxu0 %v7329_v6 }
0x1167   :  { %v2814_v46 = vpop.f32.mrb[42].mxu0 }
0x1168   :  { %v6494_v47 = vpop.f32.mrb[43].mxu0  ;;  %v2894_v48 = vsel %vm592_vm4, %v2814_v46, -inf }
0x1169   :  { %2895 = vmax.xlane.f32.xlu0 %v2894_v48  ;;  %v5569_v48 = vld [vmem:[%s8960_s15 + $0xa8] sm:$0xff] }
0x116b   :  { %v2890_v49 = vpop.f32.mrb[44].mxu0 }
0x116c   :  { %v6499_v43 = vpop.f32.mrb[45].mxu0  ;;  %v2897_v50 = vsel %vm592_vm4, %v2890_v49, -inf }
0x116d   :  { %2898 = vmax.xlane.f32.xlu1 %v2897_v50  ;;  %v5568_v50 = vld [vmem:[%s8960_s15 + $0xa0] sm:$0xff] }
0x11f6   :  { %v2896_v51 = vpop.xlane.xlu0 %2895 }
0x11f7   :  { %v2900_v52 = vsub.f32 %v2814_v46, %v2896_v51  ;;  %v5566_v46 = vld [vmem:[%s8960_s15 + $0x90] sm:$0xff] }
0x11f8   :  { %v7005_v47 = vpack.c.bf16 %v5566_v46, %v5564_v45  ;;  %v5570_v51 = vld [vmem:[%s8960_s15 + $0xb0] sm:$0xff]  ;;  %v7043_v45 = vpack.c.bf16 %v5612_v40, %v5611_v39 }
0x11f9   :  { %v2902_v26 = vmul.f32 1.442695, %v2900_v52  ;;  %v7009_v52 = vpack.c.bf16 %v5570_v51, %v5568_v50 }
0x11fa   :  { %v2899_v53 = vpop.xlane.xlu1 %2898 }
0x11fb   :  { %7265 = vpow2.f32 %v2902_v26  ;;  %v2901_v55 = vsub.f32 %v2890_v49, %v2899_v53  ;;  %v5571_v49 = vld [vmem:[%s8960_s15 + $0xb8] sm:$0xff]  ;;  %v5573_v26 = vld [vmem:[%s8960_s15 + $0xc8] sm:$0xff] }
0x11fc   :  { %v7007_v43 = vpack.c.bf16 %v5571_v49, %v5569_v48  ;;  %v5575_v53 = vld [vmem:[%s8960_s15 + $0xd8] sm:$0xff] }
0x11fd   :  { %v2904_v56 = vmul.f32 1.442695, %v2901_v55  ;;  %v7011_v55 = vpack.c.bf16 %v5575_v53, %v5573_v26  ;;  %v5562_v26 = vld [vmem:[%s8956_s11 + $0x1] ss:$0 sm:$0xff] }
0x11ff   :  { %7267 = vpow2.f32 %v2904_v56  ;;  %v5572_v56 = vld [vmem:[%s8960_s15 + $0xc0] sm:$0xff] }
0x1205   :  { %v7266_v57 = vpop.eup %7265 }
0x1206   :  { %v2906_v58 = vsel %vm592_vm4, %v7266_v57, 0.0 }
0x1207   :  { %2907 = vadd.xlane.f32.xlu0 %v2906_v58 }
0x1209   :  { %v7268_v59 = vpop.eup %7267 }
0x120a   :  { %v2909_v60 = vsel %vm592_vm4, %v7268_v59, 0.0 }
0x120b   :  { %2910 = vadd.xlane.f32.xlu1 %v2909_v60  ;;  %v5579_v60 = vld [vmem:[%s8960_s15 + $0xf8] sm:$0xff] }
0x1294   :  { %v2908_v1 = vpop.xlane.xlu0 %2907 }
0x1295   :  { %7269 = vrcp.f32 %v2908_v1  ;;  %v7017_v1 = vpack.c.bf16 %v5578_v0, %v5576_v61  ;;  %v5614_v0 = vld [vmem:[%s8962_s17 + $0x1f8] sm:$0xff] }
0x1298   :  { %v2911_v2 = vpop.xlane.xlu1 %2910 }
0x1299   :  { %7271 = vrcp.f32 %v2911_v2  ;;  %v5599_v2 = vld [vmem:[%s8962_s17 + $0x180] sm:$0xff] }
0x129f   :  { %v7270_v3 = vpop.eup %7269 }
0x12a0   :  { %v2914_v4 = vmul.f32 %v7270_v3, %v7266_v57  ;;  %v5574_v57 = vld [vmem:[%s8960_s15 + $0xd0] sm:$0xff]  ;;  %v5600_v3 = vld [vmem:[%s8962_s17 + $0x188] sm:$0xff] }
0x12a1   :  { %v7013_v58 = vpack.c.bf16 %v5574_v57, %v5572_v56  ;;  %v5563_v56 = vld [vmem:[%s8957_s12 + $0x1] ss:$0 sm:$0xff] }
0x12a2   :  { %6503 = vmatmul.mubr.msk.f32.vlgmr.msra.gmra.mrb[46].mxu0 %vm592_vm4, %v2914_v4  ;;  %v5583_v4 = vld [vmem:[%s8962_s17 + $0x100] sm:$0xff] }
0x12a3   :  { %v7272_v7 = vpop.eup %7271  ;;  %6506 = vmatpush3.msra.mxu0 %v8120_v54  ;;  %6507 = vmatprep.mubr.msk.f32.mxu0 %vm7330_vm2, %v7329_v6  ;;  %v5504_v54 = vld [vmem:[%s8954_s9 + $0x40] sm:$0xff] }
0x12a4   :  { %v2915_v10 = vmul.f32 %v7272_v7, %v7268_v59  ;;  %v6995_v13 = vpack.c.bf16 %v5505_v12, %v5504_v54  ;;  %7004 = vmatprep.subr.bf16.mxu0 %v7003_v41  ;;  %v5577_v59 = vld [vmem:[%s8960_s15 + $0xe8] sm:$0xff]  ;;  %v7019_v7 = vpack.c.bf16 %v5600_v3, %v5599_v2  ;;  %v7023_v54 = vpack.c.bf16 %v5602_v38, %v5601_v37  ;;  %v5585_v12 = vld [vmem:[%s8962_s17 + $0x110] sm:$0xff]  ;;  %v5598_v3 = vld [vmem:[%s8962_s17 + $0x178] sm:$0xff] }
0x12a5   :  { %v7015_v63 = vpack.c.bf16 %v5579_v60, %v5577_v59  ;;  %v5597_v2 = vld [vmem:[%s8962_s17 + $0x170] sm:$0xff] }
0x12a6   :  { %6508 = vmatmul.mubr.msk.f32.vlgmr.msra.gmra.mrb[48].mxu0 %vm592_vm4, %v2915_v10  ;;  %6996 = vmatprep.subr.bf16.mxu1 %v6995_v13  ;;  %v5584_v10 = vld [vmem:[%s8962_s17 + $0x108] sm:$0xff] }
0x12a7   :  { %3387 = vmatprep.mubr.f32.mxu0 %v7329_v6  ;;  %7006 = vmatpush1.bf16.msra.mxu0 %v7005_v47  ;;  %v7021_v11 = vpack.c.bf16 %v5584_v10, %v5583_v4  ;;  %v7049_v4 = vpack.c.bf16 %v5598_v3, %v5597_v2  ;;  %v5651_v2 = vld [vmem:[%s8982_s29 + $0x130] sm:$0xff] }
0x12a8   :  { %7008 = vmatprep.subr.bf16.mxu0 %v7007_v43 }
0x12ab   :  { %7010 = vmatpush1.bf16.msra.mxu0 %v7009_v52 }
0x12ac   :  { %7012 = vmatprep.subr.bf16.mxu0 %v7011_v55 }
0x12af   :  { %7014 = vmatpush1.bf16.msra.mxu0 %v7013_v58 }
0x12b0   :  { %7016 = vmatprep.subr.bf16.mxu0 %v7015_v63  ;;  %v5613_v63 = vld [vmem:[%s8962_s17 + $0x1f0] sm:$0xff] }
0x12b3   :  { %7018 = vmatpush1.bf16.msra.mxu0 %v7017_v1  ;;  %v7047_v1 = vpack.c.bf16 %v5614_v0, %v5613_v63  ;;  %v5627_v0 = vld [vmem:[%s8980_s5 + $0x130] sm:$0xff] }
0x1375   :  { %v2985_v14 = vpop.f32.mrb[46].mxu0 }
0x1376   :  { %v6504_v17 = vpop.f32.mrb[47].mxu0  ;;  %6518 = vmatprep.mubr.msk.f32.mxu1 %vm439_vm3, %v2985_v14  ;;  %v5603_v14 = vld [vmem:[%s8962_s17 + $0x1a0] sm:$0xff] }
0x1377   :  { %v7027_v17 = vpack.c.bf16 %v5604_v15, %v5603_v14 }
0x1379   :  { %v3058_v19 = vpop.f32.mrb[48].mxu0 }
0x137a   :  { %v6509_v20 = vpop.f32.mrb[49].mxu0  ;;  %6519 = vmatmul.mubr.msk.f32.vlgmr.msra.gmra.mrb[20].mxu1 %vm439_vm3, %v3058_v19  ;;  %v5588_v19 = vld [vmem:[%s8962_s17 + $0x128] sm:$0xff] }
0x137b   :  { %6998 = vmatpush3.bf16.msra.mxu1 %v6995_v13  ;;  %6529 = vmatprep.mubr.msk.f32.mxu1 %vm439_vm3, %v8163_v27  ;;  %v5586_v13 = vld [vmem:[%s8962_s17 + $0x118] sm:$0xff]  ;;  %v5605_v20 = vld [vmem:[%s8962_s17 + $0x1b0] sm:$0xff] }
0x137c   :  { %7000 = vmatprep.subr.bf16.mxu1 %v6999_v18  ;;  %v7025_v16 = vpack.c.bf16 %v5586_v13, %v5585_v12 }
0x137f   :  { %7002 = vmatpush3.bf16.msra.mxu1 %v6999_v18  ;;  %v5587_v18 = vld [vmem:[%s8962_s17 + $0x120] sm:$0xff] }
0x1380   :  { %7020 = vmatprep.subr.bf16.mxu1 %v7019_v7  ;;  %v5580_v7 = vld [vmem:[%s8961_s16 + $0x2] sm:$0x3] }
0x1381   :  { %v3310_v10 = vrot.slane %v5580_v7, %v7911_v42  ;;  %v3314_v37 = vrot.slane %v5580_v7, %v7916_v44 }
0x1382   :  { %6530 = vmatmul.mubr.msk.f32.vlgmr.msra.gmra.mrb[20].mxu1 %vm439_vm3, %v8165_v8 }
0x1383   :  { %7022 = vmatpush3.bf16.msra.mxu1 %v7021_v11 }
0x1384   :  { %7024 = vmatprep.subr.bf16.mxu1 %v7023_v54 }
0x1387   :  { %7026 = vmatpush3.bf16.msra.mxu1 %v7025_v16 }
0x1388   :  { %7028 = vmatprep.subr.bf16.mxu1 %v7027_v17 }
0x1455   :  { %v6531_v23 = vpop.f32.mrb[20].mxu1 }
0x1456   :  { %v3238_v25 = vadd.f32 %v6531_v23, %v5559_v21  ;;  %v3220_v28 = vpop.f32.mrb[21].mxu1  ;;  %v7029_v23 = vpack.c.bf16 %v5588_v19, %v5587_v18 }
0x1457   :  { %v3237_v22 = vadd.f32 %v5559_v21, %v3220_v28  ;;  %v5606_v21 = vld [vmem:[%s8962_s17 + $0x1b8] sm:$0xff]  ;;  %v5589_v28 = vld [vmem:[%s8962_s17 + $0x130] sm:$0xff] }
0x1458   :  { %v3240_v29 = vadd.f32 %v3238_v25, %v8021_v5  ;;  %v7031_v25 = vpack.c.bf16 %v5606_v21, %v5605_v20  ;;  %7030 = vmatpush3.bf16.msra.mxu1 %v7029_v23  ;;  %v5616_v23 = vld [vmem:[%s8963_s18 + $0x1] ss:$0 sm:$0xff] }
0x1459   :  { %v3239_v30 = vadd.f32 %v3237_v22, %v8002_v62  ;;  %v5590_v22 = vld [vmem:[%s8962_s17 + $0x138] sm:$0xff] }
0x145a   :  { %v3248_v24 = vsel %vm177_vm1, %v3240_v29, 0.0  ;;  %7032 = vmatprep.subr.bf16.mxu1 %v7031_v25 }
0x145b   :  { %3249 = vadd.xlane.f32.xlu1 %v3248_v24  ;;  %v3245_v27 = vsel %vm177_vm1, %v3239_v30, 0.0  ;;  %v7033_v24 = vpack.c.bf16 %v5590_v22, %v5589_v28 }
0x145c   :  { %3246 = vadd.xlane.f32.xlu0 %v3245_v27 }
0x145d   :  { %7034 = vmatpush3.bf16.msra.mxu1 %v7033_v24 }
0x14e8   :  { %v3250_v9 = vpop.xlane.xlu1 %3249 }
0x14e9   :  { %v3252_v8 = vmul.f32 0.015625, %v3250_v9  ;;  %v3247_v31 = vpop.xlane.xlu0 %3246  ;;  %v5591_v9 = vld [vmem:[%s8962_s17 + $0x140] sm:$0xff] }
0x14ea   :  { %v3251_v32 = vmul.f32 0.015625, %v3247_v31  ;;  %v5609_v31 = vld [vmem:[%s8962_s17 + $0x1d0] sm:$0xff] }
0x14eb   :  { %v8235_v33 = vsub.f32 %v3240_v29, %v3252_v8  ;;  %v5607_v29 = vld [vmem:[%s8962_s17 + $0x1c0] sm:$0xff]  ;;  %v5592_v8 = vld [vmem:[%s8962_s17 + $0x148] sm:$0xff] }
0x14ec   :  { %v8237_v34 = vsub.f32 %v3239_v30, %v3251_v32  ;;  %v5608_v30 = vld [vmem:[%s8962_s17 + $0x1c8] sm:$0xff]  ;;  %v5610_v32 = vld [vmem:[%s8962_s17 + $0x1d8] sm:$0xff] }
0x14ed   :  { %v3256_v35 = vmul.f32 %v8235_v33, %v8235_v33  ;;  %v7035_v27 = vpack.c.bf16 %v5608_v30, %v5607_v29 }
0x14ee   :  { %v3255_v62 = vmul.f32 %v8237_v34, %v8237_v34 }
0x14ef   :  { %v3260_v5 = vsel %vm177_vm1, %v3256_v35, 0.0  ;;  %v7037_v35 = vpack.c.bf16 %v5592_v8, %v5591_v9  ;;  %7036 = vmatprep.subr.bf16.mxu1 %v7035_v27 }
0x14f0   :  { %3261 = vadd.xlane.f32.xlu1 %v3260_v5  ;;  %v3257_v36 = vsel %vm177_vm1, %v3255_v62, 0.0  ;;  %v7039_v62 = vpack.c.bf16 %v5610_v32, %v5609_v31  ;;  %v5593_v5 = vld [vmem:[%s8962_s17 + $0x150] sm:$0xff] }
0x14f1   :  { %3258 = vadd.xlane.f32.xlu0 %v3257_v36  ;;  %v5594_v36 = vld [vmem:[%s8962_s17 + $0x158] sm:$0xff]  ;;  %7038 = vmatpush3.bf16.msra.mxu1 %v7037_v35 }
0x14f2   :  { %v7041_v41 = vpack.c.bf16 %v5594_v36, %v5593_v5  ;;  %7040 = vmatprep.subr.bf16.mxu1 %v7039_v62 }
0x14f5   :  { %7042 = vmatpush3.bf16.msra.mxu1 %v7041_v41 }
0x14f6   :  { %7044 = vmatprep.subr.bf16.mxu1 %v7043_v45 }
0x157d   :  { %v3262_v46 = vpop.xlane.xlu1 %3261 }
0x157e   :  { %v3264_v47 = vmul.f32 0.015625, %v3262_v46  ;;  %v3259_v48 = vpop.xlane.xlu0 %3258 }
0x157f   :  { %v3263_v49 = vmul.f32 0.015625, %v3259_v48  ;;  %v5621_v48 = vld [vmem:[%s8980_s5 + $0x100] sm:$0xff] }
0x1580   :  { %v3266_v43 = vadd.f32 1e-05, %v3264_v47 }
0x1581   :  { %v3265_v50 = vadd.f32 1e-05, %v3263_v49  ;;  %v5622_v49 = vld [vmem:[%s8980_s5 + $0x108] sm:$0xff] }
0x1582   :  { %7273 = vrsqrt.f32 %v3266_v43  ;;  %v5645_v43 = vld [vmem:[%s8982_s29 + $0x100] sm:$0xff] }
0x1583   :  { %7275 = vrsqrt.f32 %v3265_v50  ;;  %v7051_v50 = vpack.c.bf16 %v5622_v49, %v5621_v48  ;;  %v5674_v48 = vld [vmem:[%s8980_s5 + $0x178] sm:$0xff] }
0x1585   :  { %7052 = vmatprep.subr.bf16.mxu0 %v7051_v50 }
0x158c   :  { %v7274_v51 = vpop.eup %7273 }
0x158d   :  { %v7276_v52 = vpop.eup %7275  ;;  %v3270_v55 = vmul.f32 %v7274_v51, %v8235_v33  ;;  %v5596_v33 = vld [vmem:[%s8962_s17 + $0x168] sm:$0xff] }
0x158e   :  { %v3269_v53 = vmul.f32 %v7276_v52, %v8237_v34  ;;  %v5595_v34 = vld [vmem:[%s8962_s17 + $0x160] sm:$0xff]  ;;  %v5646_v51 = vld [vmem:[%s8982_s29 + $0x108] sm:$0xff] }
0x158f   :  { %v3278_v59 = vmul.f32 %v5562_v26, %v3270_v55  ;;  %v7045_v61 = vpack.c.bf16 %v5596_v33, %v5595_v34  ;;  %v7083_v52 = vpack.c.bf16 %v5646_v51, %v5645_v43  ;;  %v5647_v55 = vld [vmem:[%s8982_s29 + $0x110] sm:$0xff]  ;;  %v5649_v34 = vld [vmem:[%s8982_s29 + $0x120] sm:$0xff]  ;;  %v5692_v51 = vld [vmem:[%s8982_s29 + $0x148] sm:$0xff] }
0x1590   :  { %v3277_v57 = vmul.f32 %v5562_v26, %v3269_v53  ;;  %v5623_v26 = vld [vmem:[%s8980_s5 + $0x110] sm:$0xff]  ;;  %v5624_v53 = vld [vmem:[%s8980_s5 + $0x118] sm:$0xff] }
0x1591   :  { %v3286_v60 = vadd.f32 %v5563_v56, %v3278_v59  ;;  %7046 = vmatpush3.bf16.msra.mxu1 %v7045_v61  ;;  %v5625_v59 = vld [vmem:[%s8980_s5 + $0x120] sm:$0xff]  ;;  %v5650_v61 = vld [vmem:[%s8982_s29 + $0x128] sm:$0xff] }
0x1592   :  { %v3285_v58 = vadd.f32 %v5563_v56, %v3277_v57  ;;  %7048 = vmatprep.subr.bf16.mxu1 %v7047_v1  ;;  %v7055_v56 = vpack.c.bf16 %v5624_v53, %v5623_v26  ;;  %v5648_v57 = vld [vmem:[%s8982_s29 + $0x118] sm:$0xff]  ;;  %v7091_v63 = vpack.c.bf16 %v5650_v61, %v5649_v34  ;;  %v5693_v26 = vld [vmem:[%s8982_s29 + $0x150] sm:$0xff] }
0x1593   :  { %v5628_v1 = vld [vmem:[%s8980_s5 + $0x138] sm:$0xff] }
0x1594   :  { %5581 = vmatmul.mubr.msk.f32.vlgmr.msra.gmra.mrb[50].mxu0 %vm177_vm1, %v3285_v58  ;;  %v7063_v3 = vpack.c.bf16 %v5628_v1, %v5627_v0  ;;  %v5694_v53 = vld [vmem:[%s8982_s29 + $0x158] sm:$0xff] }
0x1595   :  { %3393 = vmatprep.mubr.f32.mxu0 %v7329_v6  ;;  %7050 = vmatpush3.bf16.msra.mxu1 %v7049_v4  ;;  %v5652_v4 = vld [vmem:[%s8982_s29 + $0x138] sm:$0xff] }
0x1596   :  { %7084 = vmatprep.subr.bf16.mxu1 %v7083_v52  ;;  %7054 = vmatpush3.bf16.msra.mxu0 %v7051_v50  ;;  %v7095_v7 = vpack.c.bf16 %v5652_v4, %v5651_v2  ;;  %v5691_v50 = vld [vmem:[%s8982_s29 + $0x140] sm:$0xff] }
0x1597   :  { %7056 = vmatprep.subr.bf16.mxu0 %v7055_v56 }
0x1598   :  { %5582 = vmatmul.mubr.msk.f32.gmra.mrb[52].mxu0 %vm177_vm1, %v3286_v60 }
0x159a   :  { %7058 = vmatpush3.bf16.msra.mxu0 %v7055_v56  ;;  %v5695_v56 = vld [vmem:[%s8982_s29 + $0x160] sm:$0xff] }
0x1667   :  { %v3389_v38 = vpop.f32.mrb[50].mxu0 }
0x1668   :  { %v3390_v11 = vadd.f32 %v3389_v38, %v3310_v10  ;;  %v3391_v54 = vpop.f32.mrb[51].mxu0  ;;  %v5667_v38 = vld [vmem:[%s8980_s5 + $0x140] sm:$0xff] }
0x1669   :  { %v3392_v12 = vadd.f32 %v3391_v54, %v3314_v37  ;;  %v5668_v54 = vld [vmem:[%s8980_s5 + $0x148] sm:$0xff] }
0x166a   :  { %v3400_v15 = vmax.f32 %v3390_v11, 0.0 }
0x166b   :  { %v3401_v13 = vmax.f32 %v3392_v12, 0.0  ;;  %v3395_v14 = vpop.f32.mrb[52].mxu0  ;;  %v7099_v12 = vpack.c.bf16 %v5668_v54, %v5667_v38  ;;  %v5630_v38 = vld [vmem:[%s8951_s6 + $0x4] ss:$0 sm:$0xff] }
0x166c   :  { %v3396_v16 = vadd.f32 %v3395_v14, %v3310_v10  ;;  %v3397_v17 = vpop.f32.mrb[53].mxu0  ;;  %v5633_v10 = vld [vmem:[%s8981_s2 + $0x100] sm:$0xff] }
0x166d   :  { %v3398_v18 = vadd.f32 %v3397_v17, %v3314_v37  ;;  %3509 = vmatprep.mubr.f32.mxu1 %v3401_v13  ;;  %v5634_v37 = vld [vmem:[%s8981_s2 + $0x108] sm:$0xff] }
0x166e   :  { %3510 = vmatmul.mubr.f32.vlgmr.msra.gmra.mrb[22].mxu1 %v3400_v15  ;;  %v3402_v20 = vmax.f32 %v3396_v16, 0.0  ;;  %v7067_v11 = vpack.c.bf16 %v5634_v37, %v5633_v10 }
0x166f   :  { %v3403_v19 = vmax.f32 %v3398_v18, 0.0  ;;  %7086 = vmatpush3.bf16.msra.mxu1 %v7083_v52  ;;  %v7131_v52 = vpack.c.bf16 %v5692_v51, %v5691_v50 }
0x1671   :  { %3514 = vmatprep.mubr.f32.mxu1 %v3403_v19 }
0x1672   :  { %3515 = vmatmul.mubr.f32.gmra.mrb[24].mxu1 %v3402_v20  ;;  %v5619_v20 = vld [vmem:[%s8958_s13 + $0x1] ss:$0 sm:$0xff] }
0x1741   :  { %v6032_v21 = vpop.f32.mrb[22].mxu1 }
0x1742   :  { %v6033_v25 = vpop.f32.mrb[23].mxu1 }
0x1743   :  { %v6034_v28 = vadd.f32 %v6033_v25, %v6032_v21 }
0x1745   :  { %v3512_v22 = vadd.f32 %v6034_v28, %v5616_v23  ;;  %v6035_v29 = vpop.f32.mrb[24].mxu1 }
0x1746   :  { %v6036_v30 = vpop.f32.mrb[25].mxu1 }
0x1747   :  { %v6037_v24 = vadd.f32 %v6036_v30, %v6035_v29  ;;  %v3520_v27 = vadd.f32 %v3512_v22, %v3285_v58  ;;  %v7087_v58 = vpack.c.bf16 %v5648_v57, %v5647_v55  ;;  %v5635_v30 = vld [vmem:[%s8981_s2 + $0x110] sm:$0xff]  ;;  %v7135_v55 = vpack.c.bf16 %v5694_v53, %v5693_v26  ;;  %v5696_v57 = vld [vmem:[%s8982_s29 + $0x168] sm:$0xff] }
0x1748   :  { %v5684_v26 = vld [vmem:[%s8981_s2 + $0x168] sm:$0xff] }
0x1749   :  { %v3517_v9 = vadd.f32 %v6037_v24, %v5616_v23  ;;  %v3526_v8 = vsel %vm177_vm1, %v3520_v27, 0.0  ;;  %7088 = vmatprep.subr.bf16.mxu1 %v7087_v58  ;;  %v5620_v23 = vld [vmem:[%s8959_s14 + $0x1] ss:$0 sm:$0xff] }
0x174a   :  { %3527 = vadd.xlane.f32.xlu0 %v3526_v8  ;;  %7090 = vmatpush3.bf16.msra.mxu1 %v7087_v58  ;;  %v5670_v8 = vld [vmem:[%s8980_s5 + $0x158] sm:$0xff]  ;;  %v7139_v58 = vpack.c.bf16 %v5696_v57, %v5695_v56 }
0x174b   :  { %v3521_v31 = vadd.f32 %v3517_v9, %v3286_v60  ;;  %v5626_v60 = vld [vmem:[%s8980_s5 + $0x128] sm:$0xff]  ;;  %7092 = vmatprep.subr.bf16.mxu1 %v7091_v63  ;;  %v5669_v9 = vld [vmem:[%s8980_s5 + $0x150] sm:$0xff]  ;;  %v5686_v56 = vld [vmem:[%s8981_s2 + $0x178] sm:$0xff] }
0x174c   :  { %v7059_v33 = vpack.c.bf16 %v5626_v60, %v5625_v59  ;;  %v5697_v59 = vld [vmem:[%s8982_s29 + $0x170] sm:$0xff]  ;;  %v5698_v60 = vld [vmem:[%s8982_s29 + $0x178] sm:$0xff] }
0x174d   :  { %v3529_v32 = vsel %vm177_vm1, %v3521_v31, 0.0  ;;  %v7143_v34 = vpack.c.bf16 %v5698_v60, %v5697_v59 }
0x174e   :  { %3530 = vadd.xlane.f32.xlu1 %v3529_v32  ;;  %7060 = vmatprep.subr.bf16.mxu0 %v7059_v33  ;;  %v5637_v32 = vld [vmem:[%s8981_s2 + $0x120] sm:$0xff] }
0x174f   :  { %7062 = vmatpush3.bf16.msra.mxu0 %v7059_v33  ;;  %7094 = vmatpush3.bf16.msra.mxu1 %v7091_v63  ;;  %v5654_v33 = vld [vmem:[%s8953_s8 + $0x4] ss:$0 sm:$0xff] }
0x1750   :  { %7064 = vmatprep.subr.bf16.mxu0 %v7063_v3  ;;  %7096 = vmatprep.subr.bf16.mxu1 %v7095_v7 }
0x1753   :  { %7066 = vmatpush3.bf16.msra.mxu0 %v7063_v3  ;;  %7098 = vmatpush3.bf16.msra.mxu1 %v7095_v7  ;;  %v5642_v3 = vld [vmem:[%s8952_s7 + $0x4] ss:$0 sm:$0xff] }
0x1754   :  { %7068 = vmatprep.subr.bf16.mxu0 %v7067_v11  ;;  %7100 = vmatprep.subr.bf16.mxu1 %v7099_v12 }
0x17d7   :  { %v3528_v35 = vpop.xlane.xlu0 %3527 }
0x17d8   :  { %v3532_v62 = vmul.f32 0.015625, %v3528_v35 }
0x17da   :  { %v8410_v5 = vsub.f32 %v3520_v27, %v3532_v62  ;;  %v5636_v27 = vld [vmem:[%s8981_s2 + $0x118] sm:$0xff]  ;;  %v7103_v62 = vpack.c.bf16 %v5670_v8, %v5669_v9 }
0x17db   :  { %v3531_v36 = vpop.xlane.xlu1 %3530  ;;  %v7071_v35 = vpack.c.bf16 %v5636_v27, %v5635_v30 }
0x17dc   :  { %v3533_v39 = vmul.f32 0.015625, %v3531_v36  ;;  %v3536_v40 = vmul.f32 %v8410_v5, %v8410_v5  ;;  %v5671_v36 = vld [vmem:[%s8980_s5 + $0x160] sm:$0xff] }
0x17de   :  { %v8414_v41 = vsub.f32 %v3521_v31, %v3533_v39  ;;  %v3538_v45 = vsel %vm177_vm1, %v3536_v40, 0.0  ;;  %v5672_v39 = vld [vmem:[%s8980_s5 + $0x168] sm:$0xff] }
0x17df   :  { %3539 = vadd.xlane.f32.xlu0 %v3538_v45  ;;  %v5639_v45 = vld [vmem:[%s8981_s2 + $0x130] sm:$0xff] }
0x17e0   :  { %v3537_v46 = vmul.f32 %v8414_v41, %v8414_v41 }
0x17e2   :  { %v3541_v47 = vsel %vm177_vm1, %v3537_v46, 0.0  ;;  %v5640_v46 = vld [vmem:[%s8981_s2 + $0x138] sm:$0xff] }
0x17e3   :  { %3542 = vadd.xlane.f32.xlu1 %v3541_v47  ;;  %v5673_v47 = vld [vmem:[%s8980_s5 + $0x170] sm:$0xff]  ;;  %v7079_v49 = vpack.c.bf16 %v5640_v46, %v5639_v45 }
0x17e4   :  { %v7111_v43 = vpack.c.bf16 %v5674_v48, %v5673_v47  ;;  %v5681_v48 = vld [vmem:[%s8981_s2 + $0x150] sm:$0xff] }
0x186c   :  { %v3540_v13 = vpop.xlane.xlu0 %3539 }
0x186d   :  { %v3544_v14 = vmul.f32 0.015625, %v3540_v13 }
0x186f   :  { %v3546_v15 = vadd.f32 1e-05, %v3544_v14 }
0x1870   :  { %v3543_v16 = vpop.xlane.xlu1 %3542 }
0x1871   :  { %7277 = vrsqrt.f32 %v3546_v15  ;;  %v3545_v17 = vmul.f32 0.015625, %v3543_v16  ;;  %v8602_v15 = vld [vmem:[%s8953_s8 + $0x5] ss:$0 sm:$0xff] }
0x1873   :  { %v3547_v18 = vadd.f32 1e-05, %v3545_v17 }
0x1875   :  { %7279 = vrsqrt.f32 %v3547_v18 }
0x187b   :  { %v7278_v19 = vpop.eup %7277 }
0x187c   :  { %v3550_v21 = vmul.f32 %v7278_v19, %v8410_v5  ;;  %v5638_v5 = vld [vmem:[%s8981_s2 + $0x128] sm:$0xff] }
0x187d   :  { %v7075_v40 = vpack.c.bf16 %v5638_v5, %v5637_v32 }
0x187e   :  { %v3558_v25 = vmul.f32 %v5619_v20, %v3550_v21 }
0x187f   :  { %v7280_v28 = vpop.eup %7279 }
0x1880   :  { %v8487_v22 = vadd.f32 %v5620_v23, %v3558_v25  ;;  %v3551_v29 = vmul.f32 %v7280_v28, %v8414_v41  ;;  %v7107_v41 = vpack.c.bf16 %v5672_v39, %v5671_v36 }
0x1882   :  { %v3559_v24 = vmul.f32 %v5619_v20, %v3551_v29  ;;  %6548 = vmatprep.mubr.msk.f32.mxu0 %vm177_vm1, %v8487_v22  ;;  %6586 = vmatprep.mubr.msk.f32.mxu1 %vm177_vm1, %v8487_v22 }
0x1884   :  { %v8506_v31 = vadd.f32 %v5620_v23, %v3559_v24 }
0x1886   :  { %6549 = vmatmul.mubr.msk.f32.vlgmr.msra.gmra.mrb[54].mxu0 %vm177_vm1, %v8506_v31  ;;  %6587 = vmatmul.mubr.msk.f32.vlgmr.msra.gmra.mrb[26].mxu1 %vm177_vm1, %v8506_v31 }
0x1887   :  { %7070 = vmatpush3.bf16.msra.mxu0 %v7067_v11  ;;  %7102 = vmatpush3.bf16.msra.mxu1 %v7099_v12 }
0x1888   :  { %6567 = vmatprep.mubr.msk.f32.mxu0 %vm177_vm1, %v8487_v22  ;;  %6625 = vmatprep.mubr.msk.f32.mxu1 %vm177_vm1, %v8487_v22 }
0x1889   :  { %7072 = vmatprep.subr.bf16.mxu0 %v7071_v35  ;;  %7104 = vmatprep.subr.bf16.mxu1 %v7103_v62 }
0x188b   :  { %7074 = vmatpush3.bf16.msra.mxu0 %v7071_v35  ;;  %7106 = vmatpush3.bf16.msra.mxu1 %v7103_v62 }
0x188c   :  { %7076 = vmatprep.subr.bf16.mxu0 %v7075_v40  ;;  %7108 = vmatprep.subr.bf16.mxu1 %v7107_v41 }
0x188f   :  { %7078 = vmatpush3.bf16.msra.mxu0 %v7075_v40  ;;  %7110 = vmatpush3.bf16.msra.mxu1 %v7107_v41  ;;  %v5679_v40 = vld [vmem:[%s8981_s2 + $0x140] sm:$0xff]  ;;  %v5680_v41 = vld [vmem:[%s8981_s2 + $0x148] sm:$0xff] }
0x1890   :  { %7080 = vmatprep.subr.bf16.mxu0 %v7079_v49  ;;  %7112 = vmatprep.subr.bf16.mxu1 %v7111_v43  ;;  %v7115_v47 = vpack.c.bf16 %v5680_v41, %v5679_v40 }
0x1893   :  { %7082 = vmatpush3.bf16.msra.mxu0 %v7079_v49  ;;  %7114 = vmatpush3.bf16.msra.mxu1 %v7111_v43  ;;  %v5682_v49 = vld [vmem:[%s8981_s2 + $0x158] sm:$0xff] }
0x1894   :  { %7132 = vmatprep.subr.bf16.mxu1 %v7131_v52  ;;  %6589 = vmatprep.subr.mxu0 %v7329_v6  ;;  %v7119_v51 = vpack.c.bf16 %v5682_v49, %v5681_v48 }
0x1896   :  { %6568 = vmatmul.mubr.msk.f32.vlgmr.msra.gmra.mrb[56].mxu0 %vm177_vm1, %v8506_v31  ;;  %6626 = vmatmul.mubr.msk.f32.vlgmr.msra.gmra.mrb[28].mxu1 %vm177_vm1, %v8506_v31 }
0x1897   :  { %7134 = vmatpush3.bf16.msra.mxu1 %v7131_v52  ;;  %6663 = vmatprep.mubr.msk.f32.mxu1 %vm177_vm1, %v8487_v22  ;;  %v5683_v52 = vld [vmem:[%s8981_s2 + $0x160] sm:$0xff] }
0x1898   :  { %7136 = vmatprep.subr.bf16.mxu1 %v7135_v55  ;;  %6591 = vmatprep.mubr.msk.f32.mxu0 %vm7330_vm2, %v7329_v6  ;;  %v7123_v53 = vpack.c.bf16 %v5684_v26, %v5683_v52 }
0x189b   :  { %7138 = vmatpush3.bf16.msra.mxu1 %v7135_v55  ;;  %v5685_v55 = vld [vmem:[%s8981_s2 + $0x170] sm:$0xff] }
0x189c   :  { %7140 = vmatprep.subr.bf16.mxu1 %v7139_v58  ;;  %v7127_v57 = vpack.c.bf16 %v5686_v56, %v5685_v55 }
0x189f   :  { %7142 = vmatpush3.bf16.msra.mxu1 %v7139_v58 }
0x18a0   :  { %7144 = vmatprep.subr.bf16.mxu1 %v7143_v34 }
0x18a3   :  { %7146 = vmatpush3.bf16.msra.mxu1 %v7143_v34 }
0x18a6   :  { %6664 = vmatmul.mubr.msk.f32.vlgmr.msra.gmra.mrb[30].mxu1 %vm177_vm1, %v8506_v31 }
0x1959   :  { %v6550_v61 = vpop.f32.mrb[54].mxu0  ;;  %v6588_v63 = vpop.f32.mrb[26].mxu1 }
0x195a   :  { %v3847_v0 = vadd.f32 %v6588_v63, %v5654_v33  ;;  %v3657_v1 = vpop.f32.mrb[55].mxu0  ;;  %v3841_v2 = vpop.f32.mrb[27].mxu1  ;;  %v3663_v13 = vadd.f32 %v6550_v61, %v5630_v38 }
0x195b   :  { %v3658_v54 = vadd.f32 %v5630_v38, %v3657_v1  ;;  %v3842_v14 = vadd.f32 %v5654_v33, %v3841_v2  ;;  %v5688_v33 = vld [vmem:[%s8952_s7 + $0x5] ss:$0 sm:$0xff] }
0x1969   :  { %v6569_v4 = vpop.f32.mrb[56].mxu0  ;;  %v8581_v7 = vpop.f32.mrb[28].mxu1 }
0x196a   :  { %v3749_v10 = vpop.f32.mrb[57].mxu0  ;;  %v8583_v37 = vpop.f32.mrb[29].mxu1  ;;  %v3755_v12 = vadd.f32 %v6569_v4, %v5642_v3 }
0x196b   :  { %v3750_v11 = vadd.f32 %v5642_v3, %v3749_v10 }
0x196d   :  { %6590 = vmatpush3.xpose.msk.msra.mxu0 %vm439_vm3, %v3750_v11 }
0x196e   :  { %6594 = vmatprep.subr.mxu0 %v7329_v6 }
0x1970   :  { %6592 = vmatmul.mubr.msk.f32.vlgmr.msra.gmra.mrb[58].mxu0 %vm439_vm3, %v3658_v54 }
0x1971   :  { %6595 = vmatpush3.xpose.msk.msra.mxu0 %vm439_vm3, %v3755_v12  ;;  %6596 = vmatprep.mubr.msk.f32.mxu0 %vm7330_vm2, %v7329_v6 }
0x1972   :  { %6599 = vmatprep.subr.mxu0 %v7329_v6 }
0x1974   :  { %6597 = vmatmul.mubr.msk.f32.vlgmr.msra.gmra.mrb[60].mxu0 %vm439_vm3, %v3663_v13 }
0x1975   :  { %6600 = vmatpush3.msra.mxu0 %v3842_v14  ;;  %6601 = vmatprep.mubr.msk.f32.mxu0 %vm7330_vm2, %v7329_v6 }
0x1976   :  { %6604 = vmatprep.subr.mxu0 %v7329_v6 }
0x1979   :  { %v6665_v16 = vpop.f32.mrb[30].mxu1 }
0x197a   :  { %v8605_v17 = vadd.f32 %v6665_v16, %v8602_v15  ;;  %v8607_v18 = vpop.f32.mrb[31].mxu1 }
0x197b   :  { %v4443_v10 = vadd.f32 %v8602_v15, %v8607_v18 }
0x1a43   :  { %v3922_v19 = vpop.f32.mrb[58].mxu0 }
0x1a44   :  { %v6593_v20 = vpop.f32.mrb[59].mxu0  ;;  %v4002_v21 = vsel %vm592_vm4, %v3922_v19, -inf }
0x1a45   :  { %4003 = vmax.xlane.f32.xlu0 %v4002_v21 }
0x1a47   :  { %v3998_v23 = vpop.f32.mrb[60].mxu0 }
0x1a48   :  { %v6598_v25 = vpop.f32.mrb[61].mxu0  ;;  %v4005_v28 = vsel %vm592_vm4, %v3998_v23, -inf }
0x1a49   :  { %4006 = vmax.xlane.f32.xlu1 %v4005_v28  ;;  %v5709_v28 = vld [vmem:[%s8954_s9 + $0xa0] sm:$0xff] }
0x1ad2   :  { %v4004_v29 = vpop.xlane.xlu0 %4003 }
0x1ad3   :  { %v4008_v30 = vsub.f32 %v3922_v19, %v4004_v29  ;;  %v5710_v29 = vld [vmem:[%s8954_s9 + $0xa8] sm:$0xff] }
0x1ad5   :  { %v4010_v24 = vmul.f32 1.442695, %v4008_v30  ;;  %v7147_v30 = vpack.c.bf16 %v5710_v29, %v5709_v28  ;;  %v5735_v28 = vld [vmem:[%s8960_s15 + $0x160] sm:$0xff] }
0x1ad6   :  { %v4007_v27 = vpop.xlane.xlu1 %4006 }
0x1ad7   :  { %7281 = vpow2.f32 %v4010_v24  ;;  %v4009_v9 = vsub.f32 %v3998_v23, %v4007_v27  ;;  %7148 = vmatprep.subr.bf16.mxu1 %v7147_v30 }
0x1ad8   :  { %7150 = vmatpush3.bf16.msra.mxu1 %v7147_v30  ;;  %v5737_v30 = vld [vmem:[%s8960_s15 + $0x170] sm:$0xff] }
0x1ad9   :  { %v4012_v8 = vmul.f32 1.442695, %v4009_v9 }
0x1adb   :  { %7283 = vpow2.f32 %v4012_v8 }
0x1ae1   :  { %v7282_v32 = vpop.eup %7281 }
0x1ae2   :  { %v4014_v35 = vsel %vm592_vm4, %v7282_v32, 0.0 }
0x1ae3   :  { %4015 = vadd.xlane.f32.xlu0 %v4014_v35 }
0x1ae5   :  { %v7284_v62 = vpop.eup %7283 }
0x1ae6   :  { %v4017_v5 = vsel %vm592_vm4, %v7284_v62, 0.0 }
0x1ae7   :  { %4018 = vadd.xlane.f32.xlu1 %v4017_v5  ;;  %v5712_v5 = vld [vmem:[%s8954_s9 + $0xb8] sm:$0xff] }
0x1b70   :  { %v4016_v36 = vpop.xlane.xlu0 %4015 }
0x1b71   :  { %7285 = vrcp.f32 %v4016_v36 }
0x1b74   :  { %v4019_v39 = vpop.xlane.xlu1 %4018 }
0x1b75   :  { %7287 = vrcp.f32 %v4019_v39  ;;  %v5664_v39 = vld [vmem:[%s8954_s9 + $0x88] sm:$0xff] }
0x1b7b   :  { %v7286_v45 = vpop.eup %7285 }
0x1b7c   :  { %v4022_v46 = vmul.f32 %v7286_v45, %v7282_v32  ;;  %v5665_v45 = vld [vmem:[%s8954_s9 + $0x90] sm:$0xff] }
0x1b7e   :  { %6602 = vmatmul.mubr.msk.f32.vlgmr.msra.gmra.mrb[62].mxu0 %vm592_vm4, %v4022_v46  ;;  %v5666_v46 = vld [vmem:[%s8954_s9 + $0x98] sm:$0xff] }
0x1b7f   :  { %v7288_v43 = vpop.eup %7287  ;;  %6605 = vmatpush3.msra.mxu0 %v3847_v0  ;;  %6606 = vmatprep.mubr.msk.f32.mxu0 %vm7330_vm2, %v7329_v6  ;;  %v5676_v0 = vld [vmem:[%s8951_s6 + $0x5] ss:$0 sm:$0xff]  ;;  %v7159_v48 = vpack.c.bf16 %v5666_v46, %v5665_v45  ;;  %v5763_v45 = vld [vmem:[%s8962_s17 + $0x2a8] sm:$0xff] }
0x1b80   :  { %v4023_v50 = vmul.f32 %v7288_v43, %v7284_v62  ;;  %7116 = vmatprep.subr.bf16.mxu0 %v7115_v47  ;;  %v4259_v2 = vadd.f32 %v5676_v0, %v8583_v37  ;;  %v4264_v4 = vadd.f32 %v8581_v7, %v5676_v0  ;;  %v5711_v62 = vld [vmem:[%s8954_s9 + $0xb0] sm:$0xff] }
0x1b81   :  { %v7151_v36 = vpack.c.bf16 %v5712_v5, %v5711_v62  ;;  %v5760_v62 = vld [vmem:[%s8962_s17 + $0x290] sm:$0xff]  ;;  %v5761_v5 = vld [vmem:[%s8962_s17 + $0x298] sm:$0xff] }
0x1b82   :  { %6607 = vmatmul.mubr.msk.f32.vlgmr.msra.gmra.mrb[64].mxu0 %vm592_vm4, %v4023_v50  ;;  %v5718_v50 = vld [vmem:[%s8955_s10 + $0x2] ss:$0 sm:$0xff] }
0x1b83   :  { %7118 = vmatpush3.bf16.msra.mxu0 %v7115_v47  ;;  %6644 = vmatprep.mubr.msk.f32.mxu0 %vm177_vm1, %v8487_v22 }
0x1b84   :  { %7120 = vmatprep.subr.bf16.mxu0 %v7119_v51  ;;  %7152 = vmatprep.subr.bf16.mxu1 %v7151_v36 }
0x1b85   :  { %7154 = vmatpush3.bf16.msra.mxu1 %v7151_v36 }
0x1b87   :  { %7122 = vmatpush3.bf16.msra.mxu0 %v7119_v51 }
0x1b88   :  { %7124 = vmatprep.subr.bf16.mxu0 %v7123_v53 }
0x1b8b   :  { %7126 = vmatpush3.bf16.msra.mxu0 %v7123_v53 }
0x1b8c   :  { %7128 = vmatprep.subr.bf16.mxu0 %v7127_v57 }
0x1b8f   :  { %7130 = vmatpush3.bf16.msra.mxu0 %v7127_v57 }
0x1b90   :  { %6666 = vmatprep.subr.mxu0 %v7329_v6 }
0x1b92   :  { %6645 = vmatmul.mubr.msk.f32.vlgmr.msra.gmra.mrb[66].mxu0 %vm177_vm1, %v8506_v31 }
0x1b93   :  { %6668 = vmatprep.mubr.msk.f32.mxu0 %vm7330_vm2, %v7329_v6 }
0x1c51   :  { %v8648_v58 = vpop.f32.mrb[62].mxu0 }
0x1c52   :  { %v6603_v59 = vpop.f32.mrb[63].mxu0 }
0x1c55   :  { %v8650_v60 = vpop.f32.mrb[64].mxu0 }
0x1c56   :  { %v6608_v34 = vpop.f32.mrb[65].mxu0 }
0x1c65   :  { %v6646_v61 = vpop.f32.mrb[66].mxu0 }
0x1c66   :  { %v4350_v63 = vpop.f32.mrb[67].mxu0  ;;  %v4356_v3 = vadd.f32 %v6646_v61, %v5688_v33 }
0x1c67   :  { %v4351_v1 = vadd.f32 %v5688_v33, %v4350_v63 }
0x1c69   :  { %6667 = vmatpush3.xpose.msk.msra.mxu0 %vm439_vm3, %v4351_v1 }
0x1c6a   :  { %6671 = vmatprep.subr.mxu0 %v7329_v6 }
0x1c6c   :  { %6669 = vmatmul.mubr.msk.f32.vlgmr.msra.gmra.mrb[68].mxu0 %vm439_vm3, %v4259_v2  ;;  %v5724_v2 = vld [vmem:[%s8960_s15 + $0x108] sm:$0xff] }
0x1c6d   :  { %6672 = vmatpush3.xpose.msk.msra.mxu0 %vm439_vm3, %v4356_v3  ;;  %6673 = vmatprep.mubr.msk.f32.mxu0 %vm7330_vm2, %v7329_v6  ;;  %v5726_v3 = vld [vmem:[%s8960_s15 + $0x118] sm:$0xff] }
0x1c6e   :  { %6676 = vmatprep.subr.mxu0 %v7329_v6 }
0x1c70   :  { %6674 = vmatmul.mubr.msk.f32.vlgmr.msra.gmra.mrb[70].mxu0 %vm439_vm3, %v4264_v4  ;;  %v7163_v4 = vpack.c.bf16 %v5726_v3, %v5724_v2  ;;  %v5770_v2 = vld [vmem:[%s8962_s17 + $0x2e0] sm:$0xff]  ;;  %v5771_v3 = vld [vmem:[%s8962_s17 + $0x2e8] sm:$0xff] }
0x1c71   :  { %6677 = vmatpush3.msra.mxu0 %v4443_v10  ;;  %6678 = vmatprep.mubr.msk.f32.mxu0 %vm7330_vm2, %v7329_v6  ;;  %v5723_v10 = vld [vmem:[%s8960_s15 + $0x100] sm:$0xff] }
0x1c72   :  { %6681 = vmatprep.subr.mxu0 %v7329_v6 }
0x1d3f   :  { %v4523_v37 = vpop.f32.mrb[68].mxu0 }
0x1d40   :  { %v6670_v38 = vpop.f32.mrb[69].mxu0  ;;  %v4603_v11 = vsel %vm592_vm4, %v4523_v37, -inf }
0x1d41   :  { %4604 = vmax.xlane.f32.xlu0 %v4603_v11  ;;  %v5728_v11 = vld [vmem:[%s8960_s15 + $0x128] sm:$0xff] }
0x1d43   :  { %v4599_v54 = vpop.f32.mrb[70].mxu0 }
0x1d44   :  { %v6675_v7 = vpop.f32.mrb[71].mxu0  ;;  %v4606_v12 = vsel %vm592_vm4, %v4599_v54, -inf }
0x1d45   :  { %4607 = vmax.xlane.f32.xlu1 %v4606_v12  ;;  %v5727_v12 = vld [vmem:[%s8960_s15 + $0x120] sm:$0xff] }
0x1dce   :  { %v4605_v13 = vpop.xlane.xlu0 %4604 }
0x1dcf   :  { %v4609_v14 = vsub.f32 %v4523_v37, %v4605_v13  ;;  %v5725_v37 = vld [vmem:[%s8960_s15 + $0x110] sm:$0xff] }
0x1dd0   :  { %v7165_v38 = vpack.c.bf16 %v5725_v37, %v5723_v10  ;;  %v5729_v13 = vld [vmem:[%s8960_s15 + $0x130] sm:$0xff]  ;;  %v7203_v10 = vpack.c.bf16 %v5771_v3, %v5770_v2 }
0x1dd1   :  { %v4611_v15 = vmul.f32 1.442695, %v4609_v14  ;;  %v7169_v14 = vpack.c.bf16 %v5729_v13, %v5727_v12 }
0x1dd2   :  { %v4608_v16 = vpop.xlane.xlu1 %4607 }
0x1dd3   :  { %7289 = vpow2.f32 %v4611_v15  ;;  %v4610_v18 = vsub.f32 %v4599_v54, %v4608_v16  ;;  %v5730_v54 = vld [vmem:[%s8960_s15 + $0x138] sm:$0xff]  ;;  %v5732_v15 = vld [vmem:[%s8960_s15 + $0x148] sm:$0xff] }
0x1dd4   :  { %v7167_v7 = vpack.c.bf16 %v5730_v54, %v5728_v11  ;;  %v5734_v16 = vld [vmem:[%s8960_s15 + $0x158] sm:$0xff] }
0x1dd5   :  { %v4613_v19 = vmul.f32 1.442695, %v4610_v18  ;;  %v7171_v18 = vpack.c.bf16 %v5734_v16, %v5732_v15  ;;  %v5721_v15 = vld [vmem:[%s8956_s11 + $0x2] ss:$0 sm:$0xff] }
0x1dd7   :  { %7291 = vpow2.f32 %v4613_v19  ;;  %v5731_v19 = vld [vmem:[%s8960_s15 + $0x140] sm:$0xff] }
0x1ddd   :  { %v7290_v20 = vpop.eup %7289 }
0x1dde   :  { %v4615_v21 = vsel %vm592_vm4, %v7290_v20, 0.0 }
0x1ddf   :  { %4616 = vadd.xlane.f32.xlu0 %v4615_v21 }
0x1de1   :  { %v7292_v23 = vpop.eup %7291 }
0x1de2   :  { %v4618_v25 = vsel %vm592_vm4, %v7292_v23, 0.0 }
0x1de3   :  { %4619 = vadd.xlane.f32.xlu1 %v4618_v25  ;;  %v5738_v25 = vld [vmem:[%s8960_s15 + $0x178] sm:$0xff] }
0x1e6c   :  { %v4617_v24 = vpop.xlane.xlu0 %4616 }
0x1e6d   :  { %7293 = vrcp.f32 %v4617_v24  ;;  %v7177_v24 = vpack.c.bf16 %v5737_v30, %v5735_v28  ;;  %v5773_v30 = vld [vmem:[%s8962_s17 + $0x2f8] sm:$0xff] }
0x1e70   :  { %v4620_v27 = vpop.xlane.xlu1 %4619 }
0x1e71   :  { %7295 = vrcp.f32 %v4620_v27  ;;  %v5758_v27 = vld [vmem:[%s8962_s17 + $0x280] sm:$0xff] }
0x1e77   :  { %v7294_v9 = vpop.eup %7293 }
0x1e78   :  { %v4623_v8 = vmul.f32 %v7294_v9, %v7290_v20  ;;  %v5733_v20 = vld [vmem:[%s8960_s15 + $0x150] sm:$0xff]  ;;  %v5759_v9 = vld [vmem:[%s8962_s17 + $0x288] sm:$0xff] }
0x1e79   :  { %v7173_v21 = vpack.c.bf16 %v5733_v20, %v5731_v19  ;;  %v5722_v19 = vld [vmem:[%s8957_s12 + $0x2] ss:$0 sm:$0xff] }
0x1e7a   :  { %6679 = vmatmul.mubr.msk.f32.vlgmr.msra.gmra.mrb[72].mxu0 %vm592_vm4, %v4623_v8  ;;  %v5742_v8 = vld [vmem:[%s8962_s17 + $0x200] sm:$0xff] }
0x1e7b   :  { %v7296_v32 = vpop.eup %7295  ;;  %6682 = vmatpush3.msra.mxu0 %v8605_v17  ;;  %6683 = vmatprep.mubr.msk.f32.mxu0 %vm7330_vm2, %v7329_v6  ;;  %v5663_v17 = vld [vmem:[%s8954_s9 + $0x80] sm:$0xff] }
0x1e7c   :  { %v4624_v35 = vmul.f32 %v7296_v32, %v7292_v23  ;;  %v7155_v40 = vpack.c.bf16 %v5664_v39, %v5663_v17  ;;  %7164 = vmatprep.subr.bf16.mxu0 %v7163_v4  ;;  %v5736_v23 = vld [vmem:[%s8960_s15 + $0x168] sm:$0xff]  ;;  %v7179_v32 = vpack.c.bf16 %v5759_v9, %v5758_v27  ;;  %v7183_v17 = vpack.c.bf16 %v5761_v5, %v5760_v62  ;;  %v5744_v39 = vld [vmem:[%s8962_s17 + $0x210] sm:$0xff]  ;;  %v5757_v27 = vld [vmem:[%s8962_s17 + $0x278] sm:$0xff] }
0x1e7d   :  { %v7175_v29 = vpack.c.bf16 %v5738_v25, %v5736_v23 }
0x1e7e   :  { %6684 = vmatmul.mubr.msk.f32.vlgmr.msra.gmra.mrb[74].mxu0 %vm592_vm4, %v4624_v35  ;;  %7156 = vmatprep.subr.bf16.mxu1 %v7155_v40  ;;  %v5743_v35 = vld [vmem:[%s8962_s17 + $0x208] sm:$0xff] }
0x1e7f   :  { %5096 = vmatprep.mubr.f32.mxu0 %v7329_v6  ;;  %7166 = vmatpush1.bf16.msra.mxu0 %v7165_v38  ;;  %v7181_v36 = vpack.c.bf16 %v5743_v35, %v5742_v8  ;;  %v5739_v8 = vld [vmem:[%s8961_s16 + $0x4] sm:$0x3] }
0x1e80   :  { %7168 = vmatprep.subr.bf16.mxu0 %v7167_v7  ;;  %v5023_v35 = vrot.slane %v5739_v8, %v7916_v44 }
0x1e83   :  { %7170 = vmatpush1.bf16.msra.mxu0 %v7169_v14 }
0x1e84   :  { %7172 = vmatprep.subr.bf16.mxu0 %v7171_v18 }
0x1e87   :  { %7174 = vmatpush1.bf16.msra.mxu0 %v7173_v21 }
0x1e88   :  { %7176 = vmatprep.subr.bf16.mxu0 %v7175_v29  ;;  %v5772_v29 = vld [vmem:[%s8962_s17 + $0x2f0] sm:$0xff] }
0x1e8b   :  { %7178 = vmatpush1.bf16.msra.mxu0 %v7177_v24  ;;  %v7207_v24 = vpack.c.bf16 %v5773_v30, %v5772_v29  ;;  %v5778_v29 = vld [vmem:[%s8958_s13 + $0x2] ss:$0 sm:$0xff]  ;;  %s7332_s13 = smov [#allocation2]  }
0x1e8c   :  { %s5378_s1 = sshll.u32 %s7332_s13, 4  ;;  %s5379_s1 = int_to_ptr.vmem [resolvable:$true] %s5378_s1 }
0x1e8d   :  { %p7310_p1 = scmp.lt.s32.totalorder %s5379_s1, %s5379_s1 }
0x1f4d   :  { %v4694_v41 = vpop.f32.mrb[72].mxu0 }
0x1f4e   :  { %v6680_v47 = vpop.f32.mrb[73].mxu0  ;;  %6694 = vmatprep.mubr.msk.f32.mxu1 %vm439_vm3, %v4694_v41  ;;  %v5762_v41 = vld [vmem:[%s8962_s17 + $0x2a0] sm:$0xff] }
0x1f4f   :  { %v7187_v47 = vpack.c.bf16 %v5763_v45, %v5762_v41 }
0x1f51   :  { %v4767_v49 = vpop.f32.mrb[74].mxu0 }
0x1f52   :  { %v6685_v43 = vpop.f32.mrb[75].mxu0  ;;  %6695 = vmatmul.mubr.msk.f32.vlgmr.msra.gmra.mrb[32].mxu1 %vm439_vm3, %v4767_v49  ;;  %v5747_v49 = vld [vmem:[%s8962_s17 + $0x228] sm:$0xff] }
0x1f53   :  { %7158 = vmatpush3.bf16.msra.mxu1 %v7155_v40  ;;  %6705 = vmatprep.mubr.msk.f32.mxu1 %vm439_vm3, %v8648_v58  ;;  %v5745_v40 = vld [vmem:[%s8962_s17 + $0x218] sm:$0xff]  ;;  %v5764_v43 = vld [vmem:[%s8962_s17 + $0x2b0] sm:$0xff] }
0x1f54   :  { %7160 = vmatprep.subr.bf16.mxu1 %v7159_v48  ;;  %v7185_v46 = vpack.c.bf16 %v5745_v40, %v5744_v39 }
0x1f57   :  { %7162 = vmatpush3.bf16.msra.mxu1 %v7159_v48  ;;  %v5746_v48 = vld [vmem:[%s8962_s17 + $0x220] sm:$0xff] }
0x1f58   :  { %7180 = vmatprep.subr.bf16.mxu1 %v7179_v32  ;;  %v5019_v32 = vrot.slane %v5739_v8, %v7911_v42  ;;  %v5775_v42 = vld [vmem:[%s8963_s18 + $0x2] ss:$0 sm:$0xff] }
0x1f5a   :  { %6706 = vmatmul.mubr.msk.f32.vlgmr.msra.gmra.mrb[32].mxu1 %vm439_vm3, %v8650_v60 }
0x1f5b   :  { %7182 = vmatpush3.bf16.msra.mxu1 %v7181_v36 }
0x1f5c   :  { %7184 = vmatprep.subr.bf16.mxu1 %v7183_v17 }
0x1f5f   :  { %7186 = vmatpush3.bf16.msra.mxu1 %v7185_v46 }
0x1f60   :  { %7188 = vmatprep.subr.bf16.mxu1 %v7187_v47 }
0x202d   :  { %v6707_v51 = vpop.f32.mrb[32].mxu1 }
0x202e   :  { %v4947_v52 = vadd.f32 %v6707_v51, %v5718_v50  ;;  %v4929_v26 = vpop.f32.mrb[33].mxu1  ;;  %v7189_v51 = vpack.c.bf16 %v5747_v49, %v5746_v48 }
0x202f   :  { %v4946_v53 = vadd.f32 %v5718_v50, %v4929_v26  ;;  %v5765_v50 = vld [vmem:[%s8962_s17 + $0x2b8] sm:$0xff]  ;;  %v5748_v26 = vld [vmem:[%s8962_s17 + $0x230] sm:$0xff] }
0x2030   :  { %v4949_v55 = vadd.f32 %v4947_v52, %v8506_v31  ;;  %v7191_v52 = vpack.c.bf16 %v5765_v50, %v5764_v43  ;;  %7190 = vmatpush3.bf16.msra.mxu1 %v7189_v51 }
0x2031   :  { %v4948_v56 = vadd.f32 %v4946_v53, %v8487_v22  ;;  %v5749_v53 = vld [vmem:[%s8962_s17 + $0x238] sm:$0xff] }
0x2032   :  { %v4957_v57 = vsel %vm177_vm1, %v4949_v55, 0.0  ;;  %7192 = vmatprep.subr.bf16.mxu1 %v7191_v52 }
0x2033   :  { %4958 = vadd.xlane.f32.xlu1 %v4957_v57  ;;  %v4954_v58 = vsel %vm177_vm1, %v4948_v56, 0.0  ;;  %v7193_v57 = vpack.c.bf16 %v5749_v53, %v5748_v26 }
0x2034   :  { %4955 = vadd.xlane.f32.xlu0 %v4954_v58 }
0x2035   :  { %7194 = vmatpush3.bf16.msra.mxu1 %v7193_v57 }
0x20c0   :  { %v4959_v59 = vpop.xlane.xlu1 %4958 }
0x20c1   :  { %v4961_v60 = vmul.f32 0.015625, %v4959_v59  ;;  %v4956_v34 = vpop.xlane.xlu0 %4955  ;;  %v5750_v59 = vld [vmem:[%s8962_s17 + $0x240] sm:$0xff] }
0x20c2   :  { %v4960_v33 = vmul.f32 0.015625, %v4956_v34  ;;  %v5768_v34 = vld [vmem:[%s8962_s17 + $0x2d0] sm:$0xff] }
0x20c3   :  { %v8720_v61 = vsub.f32 %v4949_v55, %v4961_v60  ;;  %v5766_v55 = vld [vmem:[%s8962_s17 + $0x2c0] sm:$0xff]  ;;  %v5751_v60 = vld [vmem:[%s8962_s17 + $0x248] sm:$0xff] }
0x20c4   :  { %v8722_v63 = vsub.f32 %v4948_v56, %v4960_v33  ;;  %v5767_v56 = vld [vmem:[%s8962_s17 + $0x2c8] sm:$0xff]  ;;  %v5769_v33 = vld [vmem:[%s8962_s17 + $0x2d8] sm:$0xff] }
0x20c5   :  { %v4965_v0 = vmul.f32 %v8720_v61, %v8720_v61  ;;  %v7195_v58 = vpack.c.bf16 %v5767_v56, %v5766_v55 }
0x20c6   :  { %v4964_v22 = vmul.f32 %v8722_v63, %v8722_v63 }
0x20c7   :  { %v4969_v31 = vsel %vm177_vm1, %v4965_v0, 0.0  ;;  %v7197_v0 = vpack.c.bf16 %v5751_v60, %v5750_v59  ;;  %7196 = vmatprep.subr.bf16.mxu1 %v7195_v58 }
0x20c8   :  { %4970 = vadd.xlane.f32.xlu1 %v4969_v31  ;;  %v4966_v1 = vsel %vm177_vm1, %v4964_v22, 0.0  ;;  %v7199_v22 = vpack.c.bf16 %v5769_v33, %v5768_v34  ;;  %v5752_v31 = vld [vmem:[%s8962_s17 + $0x250] sm:$0xff] }
0x20c9   :  { %4967 = vadd.xlane.f32.xlu0 %v4966_v1  ;;  %v5753_v1 = vld [vmem:[%s8962_s17 + $0x258] sm:$0xff]  ;;  %7198 = vmatpush3.bf16.msra.mxu1 %v7197_v0 }
0x20ca   :  { %v7201_v4 = vpack.c.bf16 %v5753_v1, %v5752_v31  ;;  %7200 = vmatprep.subr.bf16.mxu1 %v7199_v22 }
0x20cd   :  { %7202 = vmatpush3.bf16.msra.mxu1 %v7201_v4 }
0x20ce   :  { %7204 = vmatprep.subr.bf16.mxu1 %v7203_v10  ;;  %v5277_v10 = vld [vmem:[%s8964_s19] sm:$0xff] }
0x2155   :  { %v4971_v37 = vpop.xlane.xlu1 %4970 }
0x2156   :  { %v4973_v38 = vmul.f32 0.015625, %v4971_v37  ;;  %v4968_v11 = vpop.xlane.xlu0 %4967  ;;  %v5278_v37 = vld [vmem:[%s8964_s19 + $0x8] sm:$0xff] }
0x2157   :  { %v4972_v54 = vmul.f32 0.015625, %v4968_v11  ;;  %v7331_v11 = vmov 0.0|0.0  }
0x2158   :  { %v4975_v7 = vadd.f32 1e-05, %v4973_v38  ;;  %v7212_v38 = vpack.c.bf16 %v5278_v37, %v5277_v10  ;;  %7211 = vmatprep.subr.bf16.mxu0 %v7331_v11 }
0x2159   :  { %v4974_v12 = vadd.f32 1e-05, %v4972_v54  ;;  %v5279_v54 = vld [vmem:[%s8964_s19 + $0x10] sm:$0xff] }
0x215a   :  { %7297 = vrsqrt.f32 %v4975_v7  ;;  %v5280_v7 = vld [vmem:[%s8964_s19 + $0x18] sm:$0xff] }
0x215b   :  { %7299 = vrsqrt.f32 %v4974_v12  ;;  %v7215_v12 = vpack.c.bf16 %v5280_v7, %v5279_v54 }
0x2164   :  { %v7298_v13 = vpop.eup %7297 }
0x2165   :  { %v7300_v14 = vpop.eup %7299  ;;  %v4979_v18 = vmul.f32 %v7298_v13, %v8720_v61  ;;  %v5754_v61 = vld [vmem:[%s8962_s17 + $0x260] sm:$0xff] }
0x2166   :  { %v4978_v16 = vmul.f32 %v7300_v14, %v8722_v63  ;;  %v5755_v63 = vld [vmem:[%s8962_s17 + $0x268] sm:$0xff]  ;;  %v5281_v13 = vld [vmem:[%s8964_s19 + $0x20] sm:$0xff] }
0x2167   :  { %v4987_v23 = vmul.f32 %v5721_v15, %v4979_v18  ;;  %v7205_v28 = vpack.c.bf16 %v5755_v63, %v5754_v61  ;;  %v5282_v14 = vld [vmem:[%s8964_s19 + $0x28] sm:$0xff]  ;;  %v5284_v18 = vld [vmem:[%s8964_s19 + $0x38] sm:$0xff] }
0x2168   :  { %v4986_v20 = vmul.f32 %v5721_v15, %v4978_v16  ;;  %v7218_v15 = vpack.c.bf16 %v5282_v14, %v5281_v13  ;;  %v5283_v16 = vld [vmem:[%s8964_s19 + $0x30] sm:$0xff] }
0x2169   :  { %v4995_v25 = vadd.f32 %v5722_v19, %v4987_v23  ;;  %7206 = vmatpush3.bf16.msra.mxu1 %v7205_v28 }
0x216a   :  { %v4994_v21 = vadd.f32 %v5722_v19, %v4986_v20  ;;  %7208 = vmatprep.subr.bf16.mxu1 %v7207_v24  ;;  %v7221_v19 = vpack.c.bf16 %v5284_v18, %v5283_v16 }
0x216c   :  { %5740 = vmatmul.mubr.msk.f32.vlgmr.msra.gmra.mrb[76].mxu0 %vm177_vm1, %v4994_v21 }
0x216d   :  { %5102 = vmatprep.mubr.f32.mxu0 %v7329_v6  ;;  %7213 = vmatpush3.bf16.msra.mxu0 %v7212_v38 }
0x216e   :  { %7214 = vmatprep.subr.bf16.mxu0 %v7331_v11 }
0x2170   :  { %5741 = vmatmul.mubr.msk.f32.gmra.mrb[78].mxu0 %vm177_vm1, %v4995_v25 }
0x2171   :  { %6724 = vmatprep.mubr.msk.f32.mxu0 %vm7330_vm2, %v7329_v6  ;;  %v5756_v6 = vld [vmem:[%s8962_s17 + $0x270] sm:$0xff]  ;;  %7216 = vmatpush3.bf16.msra.mxu0 %v7215_v12 }
0x2172   :  { %v7209_v9 = vpack.c.bf16 %v5757_v27, %v5756_v6  ;;  %7217 = vmatprep.subr.bf16.mxu0 %v7331_v11  ;;  %v5779_v27 = vld [vmem:[%s8959_s14 + $0x2] ss:$0 sm:$0xff]  ;;  %s7305_s14 = scalar_lea.vmem %s5379_s1, 32 }
0x2173   :  { %p7306_p0 = scmp.ne.s32.totalorder %s5379_s1, %s7305_s14  ;;  %p7311_p2 = scmp.lt.s32.totalorder %s7305_s14, %s7305_s14 }
0x2174   :  { %7210 = vmatpush3.bf16.msra.mxu1 %v7209_v9 }
0x2175   :  { %7219 = vmatpush3.bf16.msra.mxu0 %v7218_v15  ;;  %p7312_p3 = por %p7311_p2, %p7310_p1 }
0x2176   :  { %7220 = vmatprep.subr.bf16.mxu0 %v7331_v11 }
0x2177   :  { %p7313_p4 = pnand %p7312_p3, %p7306_p0 }
0x2179   :  { %7222 = vmatpush3.bf16.msra.mxu0 %v7221_v19 }
0x223f   :  { %v5098_v62 = vpop.f32.mrb[76].mxu0 }
0x2240   :  { %v5099_v5 = vadd.f32 %v5098_v62, %v5019_v32  ;;  %v5100_v36 = vpop.f32.mrb[77].mxu0 }
0x2241   :  { %v5101_v17 = vadd.f32 %v5100_v36, %v5023_v35 }
0x2242   :  { %v5109_v41 = vmax.f32 %v5099_v5, 0.0 }
0x2243   :  { %v5110_v39 = vmax.f32 %v5101_v17, 0.0  ;;  %v5104_v40 = vpop.f32.mrb[78].mxu0  ;;  %v5780_v17 = vld [vmem:[%s8965_s20] ss:$0 sm:$0xff] }
0x2244   :  { %v5105_v45 = vadd.f32 %v5104_v40, %v5019_v32  ;;  %v5106_v46 = vpop.f32.mrb[79].mxu0 }
0x2245   :  { %v5107_v47 = vadd.f32 %v5106_v46, %v5023_v35  ;;  %5218 = vmatprep.mubr.f32.mxu1 %v5110_v39 }
0x2246   :  { %5219 = vmatmul.mubr.f32.vlgmr.msra.gmra.mrb[34].mxu1 %v5109_v41  ;;  %v5111_v49 = vmax.f32 %v5105_v45, 0.0 }
0x2247   :  { %v5112_v48 = vmax.f32 %v5107_v47, 0.0 }
0x2249   :  { %5223 = vmatprep.mubr.f32.mxu1 %v5112_v48 }
0x224a   :  { %5224 = vmatmul.mubr.f32.gmra.mrb[36].mxu1 %v5111_v49 }
0x2319   :  { %v6158_v43 = vpop.f32.mrb[34].mxu1 }
0x231a   :  { %v6159_v44 = vpop.f32.mrb[35].mxu1 }
0x231b   :  { %v6160_v50 = vadd.f32 %v6159_v44, %v6158_v43 }
0x231d   :  { %v5221_v51 = vadd.f32 %v6160_v50, %v5775_v42  ;;  %v6161_v52 = vpop.f32.mrb[36].mxu1 }
0x231e   :  { %v6162_v26 = vpop.f32.mrb[37].mxu1 }
0x231f   :  { %v6163_v53 = vadd.f32 %v6162_v26, %v6161_v52  ;;  %v5229_v55 = vadd.f32 %v5221_v51, %v4994_v21 }
0x2321   :  { %v5226_v56 = vadd.f32 %v6163_v53, %v5775_v42  ;;  %v5235_v57 = vsel %vm177_vm1, %v5229_v55, 0.0 }
0x2322   :  { %5236 = vadd.xlane.f32.xlu0 %v5235_v57 }
0x2323   :  { %v5230_v58 = vadd.f32 %v5226_v56, %v4995_v25 }
0x2325   :  { %v5238_v59 = vsel %vm177_vm1, %v5230_v58, 0.0 }
0x2326   :  { %5239 = vadd.xlane.f32.xlu1 %v5238_v59 }
0x23af   :  { %v5237_v60 = vpop.xlane.xlu0 %5236 }
0x23b0   :  { %v5241_v34 = vmul.f32 0.015625, %v5237_v60 }
0x23b2   :  { %v5243_v33 = vsub.f32 %v5229_v55, %v5241_v34 }
0x23b3   :  { %v5240_v0 = vpop.xlane.xlu1 %5239 }
0x23b4   :  { %v5242_v22 = vmul.f32 0.015625, %v5240_v0  ;;  %v5245_v31 = vmul.f32 %v5243_v33, %v5243_v33 }
0x23b6   :  { %v5244_v1 = vsub.f32 %v5230_v58, %v5242_v22  ;;  %v5247_v2 = vsel %vm177_vm1, %v5245_v31, 0.0 }
0x23b7   :  { %5248 = vadd.xlane.f32.xlu0 %v5247_v2 }
0x23b8   :  { %v5246_v3 = vmul.f32 %v5244_v1, %v5244_v1 }
0x23ba   :  { %v5250_v4 = vsel %vm177_vm1, %v5246_v3, 0.0 }
0x23bb   :  { %5251 = vadd.xlane.f32.xlu1 %v5250_v4 }
0x2444   :  { %v5249_v20 = vpop.xlane.xlu0 %5248 }
0x2445   :  { %v5253_v21 = vmul.f32 0.015625, %v5249_v20 }
0x2447   :  { %v5255_v23 = vadd.f32 1e-05, %v5253_v21 }
0x2448   :  { %v5252_v25 = vpop.xlane.xlu1 %5251 }
0x2449   :  { %7301 = vrsqrt.f32 %v5255_v23  ;;  %v5254_v61 = vmul.f32 0.015625, %v5252_v25 }
0x244b   :  { %v5256_v63 = vadd.f32 1e-05, %v5254_v61 }
0x244d   :  { %7303 = vrsqrt.f32 %v5256_v63 }
0x2453   :  { %v7302_v28 = vpop.eup %7301 }
0x2454   :  { %v5259_v30 = vmul.f32 %v7302_v28, %v5243_v33 }
0x2456   :  { %v5267_v24 = vmul.f32 %v5778_v29, %v5259_v30 }
0x2457   :  { %v7304_v6 = vpop.eup %7303 }
0x2458   :  { %v5260_v9 = vmul.f32 %v7304_v6, %v5244_v1  ;;  %v5275_v32 = vadd.f32 %v5779_v27, %v5267_v24 }
0x245a   :  { %v5268_v8 = vmul.f32 %v5778_v29, %v5260_v9  ;;  %v5294_v62 = vrot.slane %v5275_v32, 7 }
0x245c   :  { %v5276_v35 = vadd.f32 %v5779_v27, %v5268_v8 }
0x245e   :  { %v5295_v5 = vrot.slane %v5276_v35, 6 }
0x2460   :  { %v5297_v36 = vsel %vm5296_vm5, %v5295_v5, %v5294_v62 }
0x2461   :  { %6725 = vmatmul.mubr.msk.f32.vlgmr.msra.gmra.mrb[80].mxu0 %vm177_vm1, %v5297_v36 }
0x2534   :  { %v5366_v39 = vpop.f32.mrb[80].mxu0 }
0x2535   :  { %v5367_v40 = vadd.f32 %v5780_v17, %v5366_v39  ;;  %v6726_v41 = vpop.f32.mrb[81].mxu0 }
0x2537   :  { %5371 = vst.msk [vmem:[#allocation2] sm:$0x3] %vm5370_vm6, %v5367_v40 }
0x2538   :  { %7316 = shalt.err (!%p7313_p4)
}
0x2539   :  { %s7317_s16 = scalar_lea.hbm %s8966_s21, 32 }
0x253a   :  { %p7318_p5 = scmp.ne.s32.totalorder %s8966_s21, %s7317_s16  ;;  %p7321_p6 = scmp.lt.u32.totalorder %s7317_s16, %s8966_s21 }
0x253c   :  { %p7323_p7 = pnand %p7321_p6, %p7318_p5 }
0x253e   :  { %7326 = shalt.err (!%p7323_p7)
}
0x253f   :  { %5381 = dma.vmem_to_hbm [thread:$0]  %s5379_s1, 32, %s8966_s21, [#allocation3]  }
0x2540   :  { %7327 = dma.done.wait [#allocation3], 32  }
0x2541   :  { %7328 = vsyncadd [#allocation3], 4294967264 }
0x2542   :  { %5385 = vsyncpa [#allocation3], 1 }

</bundles_post_ra>
